<compile_context>
chip_gen: v5e
topology: v5e:2x2
jax: 0.10.0
libtpu: 0.0.40
codegen_flags: <defaults>
</compile_context>

<pallas_src>
import math

import jax
import jax.numpy as jnp
from jax import lax
from jax.experimental import pallas as pl
from jax.experimental.pallas import tpu as pltpu  # noqa: F401  (TPU backend assumed)

# ----------------------------- config (mini model) -----------------------------
B = 2                  # batch
N_SAMPLES = 2048       # audio samples per example
FRAME = 64             # frame length == hop (no overlap)
F_MEL = 16             # "mel" feature dim (real model: 80)
D = 32                 # d_model (real model: 1024)
H = 4                  # attention heads
DH = D // H            # head dim
FFN = 64               # ffn hidden
V = 64                 # vocab size
ENC_LAYERS = 2
DEC_LAYERS = 2
L_MAX = 6              # max generated length
PAD_ID = 1
DECODER_START = 2
TOKEN_FR = 9           # synthetic lang_code_to_id['fr']
SAMPLING_RATE = 16000

NEG_INF = -1e9


# ----------------------------- in-kernel helpers --------------------------------
def _mm(x, w):
    """MXU matmul: bf16 operands, f32 accumulation (elementwise math stays f32)."""
    return jnp.dot(x.astype(jnp.bfloat16), w.astype(jnp.bfloat16),
                   preferred_element_type=jnp.float32)


def _apply_act(y, act):
    if act == "relu":
        return jnp.maximum(y, 0.0)
    if act == "glu":
        h = y.shape[-1] // 2
        return y[:, :h] * jax.nn.sigmoid(y[:, h:])
    if act == "logpow":
        return jnp.log(y * y + 1e-6)
    return y


def _layernorm_f32(x, g, b):
    mu = jnp.mean(x, axis=-1, keepdims=True)
    var = jnp.mean(jnp.square(x - mu), axis=-1, keepdims=True)
    return (x - mu) * lax.rsqrt(var + 1e-5) * g + b


# ----------------------------- Pallas kernels ------------------------------------
def _make_linear_kernel(act):
    def kernel(x_ref, w_ref, b_ref, o_ref):
        y = _mm(x_ref[...], w_ref[...]) + b_ref[...].astype(jnp.float32)
        o_ref[...] = _apply_act(y, act).astype(o_ref.dtype)
    return kernel


def _linear_residual_kernel(x_ref, w_ref, b_ref, r_ref, o_ref):
    y = _mm(x_ref[...], w_ref[...]) + b_ref[...].astype(jnp.float32)
    o_ref[...] = (y + r_ref[...].astype(jnp.float32)).astype(o_ref.dtype)


def _layernorm_kernel(x_ref, g_ref, b_ref, o_ref):
    o_ref[...] = _layernorm_f32(x_ref[...].astype(jnp.float32),
                                g_ref[...].astype(jnp.float32),
                                b_ref[...].astype(jnp.float32)).astype(o_ref.dtype)


def _make_ln_linear_kernel(act):
    def kernel(x_ref, g_ref, bg_ref, w_ref, b_ref, o_ref):
        h = _layernorm_f32(x_ref[...].astype(jnp.float32),
                           g_ref[...].astype(jnp.float32),
                           bg_ref[...].astype(jnp.float32))
        y = _mm(h, w_ref[...]) + b_ref[...].astype(jnp.float32)
        o_ref[...] = _apply_act(y, act).astype(o_ref.dtype)
    return kernel


def _ln_ffn_kernel(x_ref, g_ref, bg_ref, w1_ref, b1_ref, w2_ref, b2_ref, o_ref):
    x = x_ref[...].astype(jnp.float32)
    h = _layernorm_f32(x, g_ref[...].astype(jnp.float32), bg_ref[...].astype(jnp.float32))
    h = jnp.maximum(_mm(h, w1_ref[...]) + b1_ref[...].astype(jnp.float32), 0.0)
    y = _mm(h, w2_ref[...]) + b2_ref[...].astype(jnp.float32)
    o_ref[...] = (x + y).astype(o_ref.dtype)


def _make_attn_kernel(scale, causal):
    def kernel(q_ref, k_ref, v_ref, o_ref):
        q = q_ref[...].astype(jnp.float32)
        k = k_ref[...].astype(jnp.float32)
        v = v_ref[...].astype(jnp.float32)
        s = jnp.einsum("bqd,bkd->bqk", q.astype(jnp.bfloat16), k.astype(jnp.bfloat16),
                       preferred_element_type=jnp.float32) * scale
        if causal:
            row = lax.broadcasted_iota(jnp.int32, s.shape, 1)
            col = lax.broadcasted_iota(jnp.int32, s.shape, 2)
            s = jnp.where(col <= row, s, NEG_INF)
        s = s - jnp.max(s, axis=-1, keepdims=True)
        p = jnp.exp(s)
        p = p * pl.reciprocal(jnp.sum(p, axis=-1, keepdims=True), approx=True)
        o_ref[...] = jnp.einsum("bqk,bkd->bqd", p.astype(jnp.bfloat16),
                                v.astype(jnp.bfloat16),
                                preferred_element_type=jnp.float32).astype(o_ref.dtype)
    return kernel


# ----------------------------- kernel wrappers (single VMEM block, no grid) ------
def pallas_linear(x, w, b, act=None):
    """y = act(x @ w + b); x: (..., K), w: (K, N), b: (N,)."""
    shp = x.shape
    K = shp[-1]
    M = int(math.prod(shp[:-1]))
    N = w.shape[1]
    N_out = N // 2 if act == "glu" else N
    out = pl.pallas_call(
        _make_linear_kernel(act),
        out_shape=jax.ShapeDtypeStruct((M, N_out), jnp.float32),
    )(x.reshape(M, K), w, b.reshape(1, N))
    return out.reshape(shp[:-1] + (N_out,))


def pallas_linear_residual(x, w, b, res):
    """y = x @ w + b + res (out-proj / fc2 fused with residual add)."""
    shp = res.shape
    K = x.shape[-1]
    M = int(math.prod(shp[:-1]))
    N = w.shape[1]
    out = pl.pallas_call(
        _linear_residual_kernel,
        out_shape=jax.ShapeDtypeStruct((M, N), jnp.float32),
    )(x.reshape(M, K), w, b.reshape(1, N), res.reshape(M, N))
    return out.reshape(shp)


def pallas_layernorm(x, g, b):
    shp = x.shape
    Dm = shp[-1]
    M = int(math.prod(shp[:-1]))
    out = pl.pallas_call(
        _layernorm_kernel,
        out_shape=jax.ShapeDtypeStruct((M, Dm), jnp.float32),
    )(x.reshape(M, Dm), g.reshape(1, Dm), b.reshape(1, Dm))
    return out.reshape(shp)


def pallas_ln_linear(x, g, bg, w, b, act=None):
    """y = act(LayerNorm(x) @ w + b) -- fused pre-LN + projection."""
    shp = x.shape
    K = shp[-1]
    M = int(math.prod(shp[:-1]))
    N = w.shape[1]
    N_out = N // 2 if act == "glu" else N
    out = pl.pallas_call(
        _make_ln_linear_kernel(act),
        out_shape=jax.ShapeDtypeStruct((M, N_out), jnp.float32),
    )(x.reshape(M, K), g.reshape(1, K), bg.reshape(1, K), w, b.reshape(1, N))
    return out.reshape(shp[:-1] + (N_out,))


def pallas_ln_ffn(x, g, bg, w1, b1, w2, b2):
    """y = x + fc2(relu(fc1(LayerNorm(x)))) -- whole pre-LN FFN block in one kernel."""
    shp = x.shape
    Dm = shp[-1]
    M = int(math.prod(shp[:-1]))
    F = w1.shape[1]
    out = pl.pallas_call(
        _ln_ffn_kernel,
        out_shape=jax.ShapeDtypeStruct((M, Dm), jnp.float32),
    )(x.reshape(M, Dm), g.reshape(1, Dm), bg.reshape(1, Dm),
      w1, b1.reshape(1, F), w2, b2.reshape(1, Dm))
    return out.reshape(shp)


def pallas_attention(q, k, v, causal=False):
    """q: (BH, Tq, DH), k/v: (BH, Tk, DH); all heads in one block; mask built in-kernel."""
    BH, Tq, Dh = q.shape
    scale = 1.0 / math.sqrt(Dh)
    return pl.pallas_call(
        _make_attn_kernel(scale, causal),
        out_shape=jax.ShapeDtypeStruct((BH, Tq, Dh), jnp.float32),
    )(q, k, v)


# ----------------------------- model glue (plain JAX, inside jit) ----------------
def sinusoidal_pos(T, d):
    pos = jnp.arange(T, dtype=jnp.float32)[:, None]
    i = jnp.arange(d // 2, dtype=jnp.float32)[None, :]
    angle = pos / jnp.power(10000.0, 2.0 * i / d)
    return jnp.concatenate([jnp.sin(angle), jnp.cos(angle)], axis=-1)


def split_heads(t):
    Bb, T, _ = t.shape
    return t.reshape(Bb, T, H, DH).transpose(0, 2, 1, 3).reshape(Bb * H, T, DH)


def merge_heads(t, Bb):
    T = t.shape[1]
    return t.reshape(Bb, H, T, DH).transpose(0, 2, 1, 3).reshape(Bb, T, D)


def conv1d_glu(x, w, b, ksize=3, stride=2, pad=1):
    """Conv1d(stride=2) + GLU as unfold (host glue, tiny under jit) + fused matmul+GLU."""
    # TODO(synk): the unfold could be folded into the kernel via strided pl.ds reads.
    Bb, T, C = x.shape
    xp = jnp.pad(x, ((0, 0), (pad, pad), (0, 0)))
    t_out = (T + 2 * pad - ksize) // stride + 1
    base = jnp.arange(t_out) * stride
    windows = jnp.stack([xp[:, base + j, :] for j in range(ksize)], axis=2)  # (B,To,K,C)
    unf = windows.reshape(Bb, t_out, ksize * C)
    return pallas_linear(unf, w, b, act="glu")


def self_attention_block(x, p, causal):
    Bb = x.shape[0]
    qkv = pallas_ln_linear(x, p["ln_g"], p["ln_b"], p["wqkv"], p["bqkv"])  # (B,T,3D)
    q, k, v = qkv[..., :D], qkv[..., D:2 * D], qkv[..., 2 * D:]
    o = pallas_attention(split_heads(q), split_heads(k), split_heads(v), causal=causal)
    o = merge_heads(o, Bb)
    return pallas_linear_residual(o, p["wo"], p["bo"], x)


def cross_attention_block(x, enc_kv, p):
    Bb = x.shape[0]
    q = pallas_ln_linear(x, p["ln_g"], p["ln_b"], p["wq"], p["bq"])
    kh, vh = enc_kv  # precomputed once per generation
    o = pallas_attention(split_heads(q), kh, vh, causal=False)
    o = merge_heads(o, Bb)
    return pallas_linear_residual(o, p["wo"], p["bo"], x)


def ffn_block(x, p):
    return pallas_ln_ffn(x, p["ln_g"], p["ln_b"],
                         p["fc1_w"], p["fc1_b"], p["fc2_w"], p["fc2_b"])


def encoder_layer(x, p):
    x = self_attention_block(x, p["self_attn"], causal=False)
    return ffn_block(x, p["ffn"])


def decoder_layer(x, enc_kv, p):
    x = self_attention_block(x, p["self_attn"], causal=True)
    x = cross_attention_block(x, enc_kv, p["cross_attn"])
    return ffn_block(x, p["ffn"])


def encode(audio, params):
    Bb, N = audio.shape
    frames = audio.reshape(Bb, N // FRAME, FRAME)
    # "feature extractor": framed linear filterbank + log-power (fused in kernel).
    feats = pallas_linear(frames, params["fbank_w"], params["fbank_b"], act="logpow")
    # per-utterance mean/var normalization (processor does this too) -- glue.
    mu = feats.mean(axis=(1, 2), keepdims=True)
    sd = feats.std(axis=(1, 2), keepdims=True) + 1e-5
    feats = (feats - mu) / sd

    x = conv1d_glu(feats, params["conv1_w"], params["conv1_b"])
    x = conv1d_glu(x, params["conv2_w"], params["conv2_b"])
    t_enc = x.shape[1]
    x = x * math.sqrt(D) + sinusoidal_pos(t_enc, D)[None]

    for lp in params["enc_layers"]:
        x = encoder_layer(x, lp)
    return pallas_layernorm(x, params["enc_lnf_g"], params["enc_lnf_b"])


def precompute_cross_kv(enc_out, params):
    """Cross-attention K/V depend only on the encoder output: project once per layer."""
    kvs = []
    for lp in params["dec_layers"]:
        ca = lp["cross_attn"]
        kv = pallas_linear(enc_out, ca["wkv"], ca["bkv"])  # (B, Tenc, 2D)
        k, v = kv[..., :D], kv[..., D:]
        kvs.append((split_heads(k), split_heads(v)))
    return kvs


@jax.jit
def speech2text_forward(audio, params):
    """Mirrors Speech2Text.forward: features -> encoder -> greedy generate with
    forced 'fr' BOS -> 'batch_decode' (done on host)."""
    Bb = audio.shape[0]
    enc_out = encode(audio, params)
    cross_kvs = precompute_cross_kv(enc_out, params)

    embed_t = params["embed"].T                       # tied LM head, hoisted
    pos_dec = sinusoidal_pos(L_MAX, D)[None]          # hoisted out of decode loop
    zero_v = jnp.zeros((V,), jnp.float32)

    tokens = jnp.full((Bb, L_MAX), PAD_ID, dtype=jnp.int32)
    tokens = tokens.at[:, 0].set(DECODER_START)
    tokens = tokens.at[:, 1].set(TOKEN_FR)            # forced_bos_token_id ('fr')

    def decode_body(step, tokens):
        x = jnp.take(params["embed"], tokens, axis=0) * math.sqrt(D) + pos_dec
        for lp, ekv in zip(params["dec_layers"], cross_kvs):
            x = decoder_layer(x, ekv, lp)
        # only the position being consumed goes through the final LN + LM head
        h = lax.dynamic_slice_in_dim(x, step - 1, 1, axis=1)          # (B,1,D)
        logits = pallas_ln_linear(h, params["dec_lnf_g"], params["dec_lnf_b"],
                                  embed_t, zero_v)                    # (B,1,V)
        nxt = jnp.argmax(logits[:, 0, :], axis=-1).astype(jnp.int32)
        return lax.dynamic_update_slice_in_dim(tokens, nxt[:, None], step, axis=1)

    # TODO(synk): a self-attention KV cache (input_output_aliases) would make the
    # decoder incremental instead of re-running all L_MAX positions each step.
    tokens = lax.fori_loop(2, L_MAX, decode_body, tokens)
    return tokens


def batch_decode(ids):
    special = {PAD_ID, DECODER_START, 0, 3}
    out = []
    for row in ids.tolist():
        out.append(" ".join(f"tok{t}" for t in row if t not in special))
    return out


# ----------------------------- deterministic parameters -------------------------
def _dense(key, din, dout, scale=0.02):
    kw, kb = jax.random.split(key)
    return (scale * jax.random.normal(kw, (din, dout), jnp.float32),
            scale * jax.random.normal(kb, (dout,), jnp.float32))


def _self_attn_params(key):
    ks = jax.random.split(key, 2)
    wqkv, bqkv = _dense(ks[0], D, 3 * D)     # fused Q|K|V projection
    wo, bo = _dense(ks[1], D, D)
    return dict(ln_g=jnp.ones((D,)), ln_b=jnp.zeros((D,)),
                wqkv=wqkv, bqkv=bqkv, wo=wo, bo=bo)


def _cross_attn_params(key):
    ks = jax.random.split(key, 3)
    wq, bq = _dense(ks[0], D, D)
    wkv, bkv = _dense(ks[1], D, 2 * D)       # fused K|V projection (precomputed)
    wo, bo = _dense(ks[2], D, D)
    return dict(ln_g=jnp.ones((D,)), ln_b=jnp.zeros((D,)),
                wq=wq, bq=bq, wkv=wkv, bkv=bkv, wo=wo, bo=bo)


def _ffn_params(key):
    ks = jax.random.split(key, 2)
    fc1_w, fc1_b = _dense(ks[0], D, FFN)
    fc2_w, fc2_b = _dense(ks[1], FFN, D)
    return dict(ln_g=jnp.ones((D,)), ln_b=jnp.zeros((D,)),
                fc1_w=fc1_w, fc1_b=fc1_b, fc2_w=fc2_w, fc2_b=fc2_b)


def _enc_layer_params(key):
    ks = jax.random.split(key, 2)
    return dict(self_attn=_self_attn_params(ks[0]), ffn=_ffn_params(ks[1]))


def _dec_layer_params(key):
    ks = jax.random.split(key, 3)
    return dict(self_attn=_self_attn_params(ks[0]),
                cross_attn=_cross_attn_params(ks[1]),
                ffn=_ffn_params(ks[2]))


def init_params(key):
    ks = jax.random.split(key, 8)
    fbank_w, fbank_b = _dense(ks[0], FRAME, F_MEL, scale=0.1)
    conv1_w, conv1_b = _dense(ks[1], 3 * F_MEL, 2 * D)
    conv2_w, conv2_b = _dense(ks[2], 3 * D, 2 * D)
    embed = 0.02 * jax.random.normal(ks[3], (V, D), jnp.float32)
    enc_keys = jax.random.split(ks[4], ENC_LAYERS)
    dec_keys = jax.random.split(ks[5], DEC_LAYERS)
    return dict(
        fbank_w=fbank_w, fbank_b=fbank_b,
        conv1_w=conv1_w, conv1_b=conv1_b,
        conv2_w=conv2_w, conv2_b=conv2_b,
        embed=embed,
        enc_layers=[_enc_layer_params(k) for k in enc_keys],
        dec_layers=[_dec_layer_params(k) for k in dec_keys],
        enc_lnf_g=jnp.ones((D,)), enc_lnf_b=jnp.zeros((D,)),
        dec_lnf_g=jnp.ones((D,)), dec_lnf_b=jnp.zeros((D,)),
    )


# ----------------------------- main ---------------------------------------------
if __name__ == "__main__":
    key = jax.random.PRNGKey(0)
    k_audio, k_params = jax.random.split(key)
    audio = jax.random.normal(k_audio, (B, N_SAMPLES), dtype=jnp.float32)
    params = init_params(k_params)

    generated_ids = speech2text_forward(audio, params)
    jax.block_until_ready(generated_ids)
    transcription = batch_decode(jax.device_get(generated_ids))
    assert len(transcription) == B and all(isinstance(s, str) for s in transcription)
    print("KERNEL_OK")
</pallas_src>

<mosaic_0001>
module attributes {stable_mosaic.version = 11 : i64} {
  func.func @kernel(%arg0: memref<64x64xf32, #tpu.memory_space<vmem>>, %arg1: memref<64x16xf32, #tpu.memory_space<vmem>>, %arg2: memref<1x16xf32, #tpu.memory_space<vmem>>, %arg3: memref<64x16xf32, #tpu.memory_space<vmem>>) attributes {dimension_semantics = [], scalar_prefetch = 0 : i64, scratch_operands = 0 : i64, tpu.core_type = #tpu.core_type<tc>} {
    %c0 = arith.constant 0 : index
    %c0_0 = arith.constant 0 : index
    %0 = vector.load %arg0[%c0, %c0_0] : memref<64x64xf32, #tpu.memory_space<vmem>>, vector<64x64xf32>
    %c0_1 = arith.constant 0 : index
    %c0_2 = arith.constant 0 : index
    %1 = vector.load %arg1[%c0_1, %c0_2] : memref<64x16xf32, #tpu.memory_space<vmem>>, vector<64x16xf32>
    %2 = arith.truncf %0 : vector<64x64xf32> to vector<64x64xbf16>
    %3 = arith.truncf %1 : vector<64x16xf32> to vector<64x16xbf16>
    %cst = arith.constant dense<0.000000e+00> : vector<64x16xf32>
    %4 = tpu.matmul %2, %3, %cst {dimension_numbers = #tpu.dot_dimension_numbers<[1], [0], [0], [1], [0, 0, 1, 1], [], []>} : vector<64x64xbf16>, vector<64x16xbf16>, vector<64x16xf32> -> vector<64x16xf32>
    %c0_3 = arith.constant 0 : index
    %c0_4 = arith.constant 0 : index
    %5 = vector.load %arg2[%c0_3, %c0_4] : memref<1x16xf32, #tpu.memory_space<vmem>>, vector<1x16xf32>
    %6 = vector.broadcast %5 : vector<1x16xf32> to vector<64x16xf32>
    %7 = arith.addf %4, %6 : vector<64x16xf32>
    %8 = arith.mulf %7, %7 : vector<64x16xf32>
    %cst_5 = arith.constant 9.99999997E-7 : f32
    %9 = vector.broadcast %cst_5 : f32 to vector<64x16xf32>
    %10 = arith.addf %8, %9 : vector<64x16xf32>
    %11 = math.log %10 : vector<64x16xf32>
    %c0_6 = arith.constant 0 : index
    %c0_7 = arith.constant 0 : index
    %12 = vector.load %arg3[%c0_6, %c0_7] : memref<64x16xf32, #tpu.memory_space<vmem>>, vector<64x16xf32>
    tpu.vector_store %arg3[%c0_6, %c0_7], %11 {strides = array<i32>} : memref<64x16xf32, #tpu.memory_space<vmem>>, vector<64x16xf32>,
    return
  }
}

module attributes {stable_mosaic.version = 11 : i64} {
  func.func @kernel(%arg0: memref<32x48xf32, #tpu.memory_space<vmem>>, %arg1: memref<48x64xf32, #tpu.memory_space<vmem>>, %arg2: memref<1x64xf32, #tpu.memory_space<vmem>>, %arg3: memref<32x32xf32, #tpu.memory_space<vmem>>) attributes {dimension_semantics = [], scalar_prefetch = 0 : i64, scratch_operands = 0 : i64, tpu.core_type = #tpu.core_type<tc>} {
    %c0 = arith.constant 0 : index
    %c0_0 = arith.constant 0 : index
    %0 = vector.load %arg0[%c0, %c0_0] : memref<32x48xf32, #tpu.memory_space<vmem>>, vector<32x48xf32>
    %c0_1 = arith.constant 0 : index
    %c0_2 = arith.constant 0 : index
    %1 = vector.load %arg1[%c0_1, %c0_2] : memref<48x64xf32, #tpu.memory_space<vmem>>, vector<48x64xf32>
    %2 = arith.truncf %0 : vector<32x48xf32> to vector<32x48xbf16>
    %3 = arith.truncf %1 : vector<48x64xf32> to vector<48x64xbf16>
    %cst = arith.constant dense<0.000000e+00> : vector<32x64xf32>
    %4 = tpu.matmul %2, %3, %cst {dimension_numbers = #tpu.dot_dimension_numbers<[1], [0], [0], [1], [0, 0, 1, 1], [], []>} : vector<32x48xbf16>, vector<48x64xbf16>, vector<32x64xf32> -> vector<32x64xf32>
    %c0_3 = arith.constant 0 : index
    %c0_4 = arith.constant 0 : index
    %5 = vector.load %arg2[%c0_3, %c0_4] : memref<1x64xf32, #tpu.memory_space<vmem>>, vector<1x64xf32>
    %6 = vector.broadcast %5 : vector<1x64xf32> to vector<32x64xf32>
    %7 = arith.addf %4, %6 : vector<32x64xf32>
    %8 = vector.extract_strided_slice %7 {offsets = [0, 0], sizes = [32, 32], strides = [1, 1]} : vector<32x64xf32> to vector<32x32xf32>
    %9 = vector.extract_strided_slice %7 {offsets = [0, 32], sizes = [32, 32], strides = [1, 1]} : vector<32x64xf32> to vector<32x32xf32>
    %10 = arith.negf %9 : vector<32x32xf32>
    %11 = math.exp %10 : vector<32x32xf32>
    %cst_5 = arith.constant 1.000000e+00 : f32
    %12 = vector.broadcast %cst_5 : f32 to vector<32x32xf32>
    %13 = arith.addf %12, %11 : vector<32x32xf32>
    %14 = arith.divf %12, %13 : vector<32x32xf32>
    %15 = arith.mulf %8, %14 : vector<32x32xf32>
    %c0_6 = arith.constant 0 : index
    %c0_7 = arith.constant 0 : index
    %16 = vector.load %arg3[%c0_6, %c0_7] : memref<32x32xf32, #tpu.memory_space<vmem>>, vector<32x32xf32>
    tpu.vector_store %arg3[%c0_6, %c0_7], %15 {strides = array<i32>} : memref<32x32xf32, #tpu.memory_space<vmem>>, vector<32x32xf32>,
    return
  }
}

module attributes {stable_mosaic.version = 11 : i64} {
  func.func @kernel(%arg0: memref<16x32xf32, #tpu.memory_space<vmem>>, %arg1: memref<1x32xf32, #tpu.memory_space<vmem>>, %arg2: memref<1x32xf32, #tpu.memory_space<vmem>>, %arg3: memref<32x96xf32, #tpu.memory_space<vmem>>, %arg4: memref<1x96xf32, #tpu.memory_space<vmem>>, %arg5: memref<16x96xf32, #tpu.memory_space<vmem>>) attributes {dimension_semantics = [], scalar_prefetch = 0 : i64, scratch_operands = 0 : i64, tpu.core_type = #tpu.core_type<tc>} {
    %c0 = arith.constant 0 : index
    %c0_0 = arith.constant 0 : index
    %0 = vector.load %arg0[%c0, %c0_0] : memref<16x32xf32, #tpu.memory_space<vmem>>, vector<16x32xf32>
    %c0_1 = arith.constant 0 : index
    %c0_2 = arith.constant 0 : index
    %1 = vector.load %arg1[%c0_1, %c0_2] : memref<1x32xf32, #tpu.memory_space<vmem>>, vector<1x32xf32>
    %c0_3 = arith.constant 0 : index
    %c0_4 = arith.constant 0 : index
    %2 = vector.load %arg2[%c0_3, %c0_4] : memref<1x32xf32, #tpu.memory_space<vmem>>, vector<1x32xf32>
    %cst = arith.constant dense<0.000000e+00> : vector<16xf32>
    %3 = vector.multi_reduction <add>, %0, %cst [1] : vector<16x32xf32> to vector<16xf32>
    %4 = vector.shape_cast %3 : vector<16xf32> to vector<16x1xf32>
    %cst_5 = arith.constant 3.200000e+01 : f32
    %5 = vector.broadcast %cst_5 : f32 to vector<16x1xf32>
    %6 = arith.divf %4, %5 : vector<16x1xf32>
    %7 = vector.broadcast %6 : vector<16x1xf32> to vector<16x32xf32>
    %8 = arith.subf %0, %7 : vector<16x32xf32>
    %9 = arith.mulf %8, %8 : vector<16x32xf32>
    %cst_6 = arith.constant dense<0.000000e+00> : vector<16xf32>
    %10 = vector.multi_reduction <add>, %9, %cst_6 [1] : vector<16x32xf32> to vector<16xf32>
    %11 = vector.shape_cast %10 : vector<16xf32> to vector<16x1xf32>
    %cst_7 = arith.constant 3.200000e+01 : f32
    %12 = vector.broadcast %cst_7 : f32 to vector<16x1xf32>
    %13 = arith.divf %11, %12 : vector<16x1xf32>
    %14 = vector.broadcast %6 : vector<16x1xf32> to vector<16x32xf32>
    %15 = arith.subf %0, %14 : vector<16x32xf32>
    %cst_8 = arith.constant 9.99999974E-6 : f32
    %16 = vector.broadcast %cst_8 : f32 to vector<16x1xf32>
    %17 = arith.addf %13, %16 : vector<16x1xf32>
    %18 = math.rsqrt %17 : vector<16x1xf32>
    %19 = vector.broadcast %18 : vector<16x1xf32> to vector<16x32xf32>
    %20 = arith.mulf %15, %19 : vector<16x32xf32>
    %21 = vector.broadcast %1 : vector<1x32xf32> to vector<16x32xf32>
    %22 = arith.mulf %20, %21 : vector<16x32xf32>
    %23 = vector.broadcast %2 : vector<1x32xf32> to vector<16x32xf32>
    %24 = arith.addf %22, %23 : vector<16x32xf32>
    %c0_9 = arith.constant 0 : index
    %c0_10 = arith.constant 0 : index
    %25 = vector.load %arg3[%c0_9, %c0_10] : memref<32x96xf32, #tpu.memory_space<vmem>>, vector<32x96xf32>
    %26 = arith.truncf %24 : vector<16x32xf32> to vector<16x32xbf16>
    %27 = arith.truncf %25 : vector<32x96xf32> to vector<32x96xbf16>
    %cst_11 = arith.constant dense<0.000000e+00> : vector<16x96xf32>
    %28 = tpu.matmul %26, %27, %cst_11 {dimension_numbers = #tpu.dot_dimension_numbers<[1], [0], [0], [1], [0, 0, 1, 1], [], []>} : vector<16x32xbf16>, vector<32x96xbf16>, vector<16x96xf32> -> vector<16x96xf32>
    %c0_12 = arith.constant 0 : index
    %c0_13 = arith.constant 0 : index
    %29 = vector.load %arg4[%c0_12, %c0_13] : memref<1x96xf32, #tpu.memory_space<vmem>>, vector<1x96xf32>
    %30 = vector.broadcast %29 : vector<1x96xf32> to vector<16x96xf32>
    %31 = arith.addf %28, %30 : vector<16x96xf32>
    %c0_14 = arith.constant 0 : index
    %c0_15 = arith.constant 0 : index
    %32 = vector.load %arg5[%c0_14, %c0_15] : memref<16x96xf32, #tpu.memory_space<vmem>>, vector<16x96xf32>
    tpu.vector_store %arg5[%c0_14, %c0_15], %31 {strides = array<i32>} : memref<16x96xf32, #tpu.memory_space<vmem>>, vector<16x96xf32>,
    return
  }
}

module attributes {stable_mosaic.version = 11 : i64} {
  func.func @kernel(%arg0: memref<16x96xf32, #tpu.memory_space<vmem>>, %arg1: memref<96x64xf32, #tpu.memory_space<vmem>>, %arg2: memref<1x64xf32, #tpu.memory_space<vmem>>, %arg3: memref<16x32xf32, #tpu.memory_space<vmem>>) attributes {dimension_semantics = [], scalar_prefetch = 0 : i64, scratch_operands = 0 : i64, tpu.core_type = #tpu.core_type<tc>} {
    %c0 = arith.constant 0 : index
    %c0_0 = arith.constant 0 : index
    %0 = vector.load %arg0[%c0, %c0_0] : memref<16x96xf32, #tpu.memory_space<vmem>>, vector<16x96xf32>
    %c0_1 = arith.constant 0 : index
    %c0_2 = arith.constant 0 : index
    %1 = vector.load %arg1[%c0_1, %c0_2] : memref<96x64xf32, #tpu.memory_space<vmem>>, vector<96x64xf32>
    %2 = arith.truncf %0 : vector<16x96xf32> to vector<16x96xbf16>
    %3 = arith.truncf %1 : vector<96x64xf32> to vector<96x64xbf16>
    %cst = arith.constant dense<0.000000e+00> : vector<16x64xf32>
    %4 = tpu.matmul %2, %3, %cst {dimension_numbers = #tpu.dot_dimension_numbers<[1], [0], [0], [1], [0, 0, 1, 1], [], []>} : vector<16x96xbf16>, vector<96x64xbf16>, vector<16x64xf32> -> vector<16x64xf32>
    %c0_3 = arith.constant 0 : index
    %c0_4 = arith.constant 0 : index
    %5 = vector.load %arg2[%c0_3, %c0_4] : memref<1x64xf32, #tpu.memory_space<vmem>>, vector<1x64xf32>
    %6 = vector.broadcast %5 : vector<1x64xf32> to vector<16x64xf32>
    %7 = arith.addf %4, %6 : vector<16x64xf32>
    %8 = vector.extract_strided_slice %7 {offsets = [0, 0], sizes = [16, 32], strides = [1, 1]} : vector<16x64xf32> to vector<16x32xf32>
    %9 = vector.extract_strided_slice %7 {offsets = [0, 32], sizes = [16, 32], strides = [1, 1]} : vector<16x64xf32> to vector<16x32xf32>
    %10 = arith.negf %9 : vector<16x32xf32>
    %11 = math.exp %10 : vector<16x32xf32>
    %cst_5 = arith.constant 1.000000e+00 : f32
    %12 = vector.broadcast %cst_5 : f32 to vector<16x32xf32>
    %13 = arith.addf %12, %11 : vector<16x32xf32>
    %14 = arith.divf %12, %13 : vector<16x32xf32>
    %15 = arith.mulf %8, %14 : vector<16x32xf32>
    %c0_6 = arith.constant 0 : index
    %c0_7 = arith.constant 0 : index
    %16 = vector.load %arg3[%c0_6, %c0_7] : memref<16x32xf32, #tpu.memory_space<vmem>>, vector<16x32xf32>
    tpu.vector_store %arg3[%c0_6, %c0_7], %15 {strides = array<i32>} : memref<16x32xf32, #tpu.memory_space<vmem>>, vector<16x32xf32>,
    return
  }
}

module attributes {stable_mosaic.version = 11 : i64} {
  func.func @kernel(%arg0: memref<8x8x8xf32, #tpu.memory_space<vmem>>, %arg1: memref<8x8x8xf32, #tpu.memory_space<vmem>>, %arg2: memref<8x8x8xf32, #tpu.memory_space<vmem>>, %arg3: memref<8x8x8xf32, #tpu.memory_space<vmem>>) attributes {dimension_semantics = [], scalar_prefetch = 0 : i64, scratch_operands = 0 : i64, tpu.core_type = #tpu.core_type<tc>} {
    %c0 = arith.constant 0 : index
    %c0_0 = arith.constant 0 : index
    %c0_1 = arith.constant 0 : index
    %0 = vector.load %arg0[%c0, %c0_0, %c0_1] : memref<8x8x8xf32, #tpu.memory_space<vmem>>, vector<8x8x8xf32>
    %c0_2 = arith.constant 0 : index
    %c0_3 = arith.constant 0 : index
    %c0_4 = arith.constant 0 : index
    %1 = vector.load %arg1[%c0_2, %c0_3, %c0_4] : memref<8x8x8xf32, #tpu.memory_space<vmem>>, vector<8x8x8xf32>
    %c0_5 = arith.constant 0 : index
    %c0_6 = arith.constant 0 : index
    %c0_7 = arith.constant 0 : index
    %2 = vector.load %arg2[%c0_5, %c0_6, %c0_7] : memref<8x8x8xf32, #tpu.memory_space<vmem>>, vector<8x8x8xf32>
    %3 = arith.truncf %0 : vector<8x8x8xf32> to vector<8x8x8xbf16>
    %4 = arith.truncf %1 : vector<8x8x8xf32> to vector<8x8x8xbf16>
    "tpu.trace_start"() <{level = 10 : i32, message = "bqd,bkd->bqk"}> : () -> ()
    %cst = arith.constant dense<0.000000e+00> : vector<8x8x8xf32>
    %5 = tpu.matmul %3, %4, %cst {dimension_numbers = #tpu.dot_dimension_numbers<[2], [2], [1], [1], [0, 0, 0, 1, 1, 1], [0], [0]>} : vector<8x8x8xbf16>, vector<8x8x8xbf16>, vector<8x8x8xf32> -> vector<8x8x8xf32>
    "tpu.trace_stop"() : () -> ()
    %cst_8 = arith.constant 0.353553385 : f32
    %6 = vector.broadcast %cst_8 : f32 to vector<8x8x8xf32>
    %7 = arith.mulf %5, %6 : vector<8x8x8xf32>
    %cst_9 = arith.constant dense<0xFF800000> : vector<8x8xf32>
    %8 = vector.multi_reduction <maximumf>, %7, %cst_9 [2] : vector<8x8x8xf32> to vector<8x8xf32>
    %9 = vector.shape_cast %8 : vector<8x8xf32> to vector<8x8x1xf32>
    %10 = vector.broadcast %9 : vector<8x8x1xf32> to vector<8x8x8xf32>
    %11 = arith.subf %7, %10 : vector<8x8x8xf32>
    %12 = math.exp %11 : vector<8x8x8xf32>
    %cst_10 = arith.constant dense<0.000000e+00> : vector<8x8xf32>
    %13 = vector.multi_reduction <add>, %12, %cst_10 [2] : vector<8x8x8xf32> to vector<8x8xf32>
    %14 = vector.shape_cast %13 : vector<8x8xf32> to vector<8x8x1xf32>
    %15 = tpu.reciprocal %14 {approx = true} : vector<8x8x1xf32> -> vector<8x8x1xf32>
    %16 = vector.broadcast %15 : vector<8x8x1xf32> to vector<8x8x8xf32>
    %17 = arith.mulf %12, %16 : vector<8x8x8xf32>
    %18 = arith.truncf %17 : vector<8x8x8xf32> to vector<8x8x8xbf16>
    %19 = arith.truncf %2 : vector<8x8x8xf32> to vector<8x8x8xbf16>
    "tpu.trace_start"() <{level = 10 : i32, message = "bqk,bkd->bqd"}> : () -> ()
    %cst_11 = arith.constant dense<0.000000e+00> : vector<8x8x8xf32>
    %20 = tpu.matmul %18, %19, %cst_11 {dimension_numbers = #tpu.dot_dimension_numbers<[2], [1], [1], [2], [0, 0, 0, 1, 1, 2], [0], [0]>} : vector<8x8x8xbf16>, vector<8x8x8xbf16>, vector<8x8x8xf32> -> vector<8x8x8xf32>
    "tpu.trace_stop"() : () -> ()
    %c0_12 = arith.constant 0 : index
    %c0_13 = arith.constant 0 : index
    %c0_14 = arith.constant 0 : index
    %21 = vector.load %arg3[%c0_12, %c0_13, %c0_14] : memref<8x8x8xf32, #tpu.memory_space<vmem>>, vector<8x8x8xf32>
    tpu.vector_store %arg3[%c0_12, %c0_13, %c0_14], %20 {strides = array<i32>} : memref<8x8x8xf32, #tpu.memory_space<vmem>>, vector<8x8x8xf32>,
    return
  }
}

module attributes {stable_mosaic.version = 11 : i64} {
  func.func @_linear_residual_kernel(%arg0: memref<16x32xf32, #tpu.memory_space<vmem>>, %arg1: memref<32x32xf32, #tpu.memory_space<vmem>>, %arg2: memref<1x32xf32, #tpu.memory_space<vmem>>, %arg3: memref<16x32xf32, #tpu.memory_space<vmem>>, %arg4: memref<16x32xf32, #tpu.memory_space<vmem>>) attributes {dimension_semantics = [], scalar_prefetch = 0 : i64, scratch_operands = 0 : i64, tpu.core_type = #tpu.core_type<tc>} {
    %c0 = arith.constant 0 : index
    %c0_0 = arith.constant 0 : index
    %0 = vector.load %arg0[%c0, %c0_0] : memref<16x32xf32, #tpu.memory_space<vmem>>, vector<16x32xf32>
    %c0_1 = arith.constant 0 : index
    %c0_2 = arith.constant 0 : index
    %1 = vector.load %arg1[%c0_1, %c0_2] : memref<32x32xf32, #tpu.memory_space<vmem>>, vector<32x32xf32>
    %2 = arith.truncf %0 : vector<16x32xf32> to vector<16x32xbf16>
    %3 = arith.truncf %1 : vector<32x32xf32> to vector<32x32xbf16>
    %cst = arith.constant dense<0.000000e+00> : vector<16x32xf32>
    %4 = tpu.matmul %2, %3, %cst {dimension_numbers = #tpu.dot_dimension_numbers<[1], [0], [0], [1], [0, 0, 1, 1], [], []>} : vector<16x32xbf16>, vector<32x32xbf16>, vector<16x32xf32> -> vector<16x32xf32>
    %c0_3 = arith.constant 0 : index
    %c0_4 = arith.constant 0 : index
    %5 = vector.load %arg2[%c0_3, %c0_4] : memref<1x32xf32, #tpu.memory_space<vmem>>, vector<1x32xf32>
    %6 = vector.broadcast %5 : vector<1x32xf32> to vector<16x32xf32>
    %7 = arith.addf %4, %6 : vector<16x32xf32>
    %c0_5 = arith.constant 0 : index
    %c0_6 = arith.constant 0 : index
    %8 = vector.load %arg3[%c0_5, %c0_6] : memref<16x32xf32, #tpu.memory_space<vmem>>, vector<16x32xf32>
    %9 = arith.addf %7, %8 : vector<16x32xf32>
    %c0_7 = arith.constant 0 : index
    %c0_8 = arith.constant 0 : index
    %10 = vector.load %arg4[%c0_7, %c0_8] : memref<16x32xf32, #tpu.memory_space<vmem>>, vector<16x32xf32>
    tpu.vector_store %arg4[%c0_7, %c0_8], %9 {strides = array<i32>} : memref<16x32xf32, #tpu.memory_space<vmem>>, vector<16x32xf32>,
    return
  }
}

module attributes {stable_mosaic.version = 11 : i64} {
  func.func @_layernorm_kernel(%arg0: memref<16x32xf32, #tpu.memory_space<vmem>>, %arg1: memref<1x32xf32, #tpu.memory_space<vmem>>, %arg2: memref<1x32xf32, #tpu.memory_space<vmem>>, %arg3: memref<16x32xf32, #tpu.memory_space<vmem>>) attributes {dimension_semantics = [], scalar_prefetch = 0 : i64, scratch_operands = 0 : i64, tpu.core_type = #tpu.core_type<tc>} {
    %c0 = arith.constant 0 : index
    %c0_0 = arith.constant 0 : index
    %0 = vector.load %arg0[%c0, %c0_0] : memref<16x32xf32, #tpu.memory_space<vmem>>, vector<16x32xf32>
    %c0_1 = arith.constant 0 : index
    %c0_2 = arith.constant 0 : index
    %1 = vector.load %arg1[%c0_1, %c0_2] : memref<1x32xf32, #tpu.memory_space<vmem>>, vector<1x32xf32>
    %c0_3 = arith.constant 0 : index
    %c0_4 = arith.constant 0 : index
    %2 = vector.load %arg2[%c0_3, %c0_4] : memref<1x32xf32, #tpu.memory_space<vmem>>, vector<1x32xf32>
    %cst = arith.constant dense<0.000000e+00> : vector<16xf32>
    %3 = vector.multi_reduction <add>, %0, %cst [1] : vector<16x32xf32> to vector<16xf32>
    %4 = vector.shape_cast %3 : vector<16xf32> to vector<16x1xf32>
    %cst_5 = arith.constant 3.200000e+01 : f32
    %5 = vector.broadcast %cst_5 : f32 to vector<16x1xf32>
    %6 = arith.divf %4, %5 : vector<16x1xf32>
    %7 = vector.broadcast %6 : vector<16x1xf32> to vector<16x32xf32>
    %8 = arith.subf %0, %7 : vector<16x32xf32>
    %9 = arith.mulf %8, %8 : vector<16x32xf32>
    %cst_6 = arith.constant dense<0.000000e+00> : vector<16xf32>
    %10 = vector.multi_reduction <add>, %9, %cst_6 [1] : vector<16x32xf32> to vector<16xf32>
    %11 = vector.shape_cast %10 : vector<16xf32> to vector<16x1xf32>
    %cst_7 = arith.constant 3.200000e+01 : f32
    %12 = vector.broadcast %cst_7 : f32 to vector<16x1xf32>
    %13 = arith.divf %11, %12 : vector<16x1xf32>
    %14 = vector.broadcast %6 : vector<16x1xf32> to vector<16x32xf32>
    %15 = arith.subf %0, %14 : vector<16x32xf32>
    %cst_8 = arith.constant 9.99999974E-6 : f32
    %16 = vector.broadcast %cst_8 : f32 to vector<16x1xf32>
    %17 = arith.addf %13, %16 : vector<16x1xf32>
    %18 = math.rsqrt %17 : vector<16x1xf32>
    %19 = vector.broadcast %18 : vector<16x1xf32> to vector<16x32xf32>
    %20 = arith.mulf %15, %19 : vector<16x32xf32>
    %21 = vector.broadcast %1 : vector<1x32xf32> to vector<16x32xf32>
    %22 = arith.mulf %20, %21 : vector<16x32xf32>
    %23 = vector.broadcast %2 : vector<1x32xf32> to vector<16x32xf32>
    %24 = arith.addf %22, %23 : vector<16x32xf32>
    %c0_9 = arith.constant 0 : index
    %c0_10 = arith.constant 0 : index
    %25 = vector.load %arg3[%c0_9, %c0_10] : memref<16x32xf32, #tpu.memory_space<vmem>>, vector<16x32xf32>
    tpu.vector_store %arg3[%c0_9, %c0_10], %24 {strides = array<i32>} : memref<16x32xf32, #tpu.memory_space<vmem>>, vector<16x32xf32>,
    return
  }
}

module attributes {stable_mosaic.version = 11 : i64} {
  func.func @_ln_ffn_kernel(%arg0: memref<16x32xf32, #tpu.memory_space<vmem>>, %arg1: memref<1x32xf32, #tpu.memory_space<vmem>>, %arg2: memref<1x32xf32, #tpu.memory_space<vmem>>, %arg3: memref<32x64xf32, #tpu.memory_space<vmem>>, %arg4: memref<1x64xf32, #tpu.memory_space<vmem>>, %arg5: memref<64x32xf32, #tpu.memory_space<vmem>>, %arg6: memref<1x32xf32, #tpu.memory_space<vmem>>, %arg7: memref<16x32xf32, #tpu.memory_space<vmem>>) attributes {dimension_semantics = [], scalar_prefetch = 0 : i64, scratch_operands = 0 : i64, tpu.core_type = #tpu.core_type<tc>} {
    %c0 = arith.constant 0 : index
    %c0_0 = arith.constant 0 : index
    %0 = vector.load %arg0[%c0, %c0_0] : memref<16x32xf32, #tpu.memory_space<vmem>>, vector<16x32xf32>
    %c0_1 = arith.constant 0 : index
    %c0_2 = arith.constant 0 : index
    %1 = vector.load %arg1[%c0_1, %c0_2] : memref<1x32xf32, #tpu.memory_space<vmem>>, vector<1x32xf32>
    %c0_3 = arith.constant 0 : index
    %c0_4 = arith.constant 0 : index
    %2 = vector.load %arg2[%c0_3, %c0_4] : memref<1x32xf32, #tpu.memory_space<vmem>>, vector<1x32xf32>
    %cst = arith.constant dense<0.000000e+00> : vector<16xf32>
    %3 = vector.multi_reduction <add>, %0, %cst [1] : vector<16x32xf32> to vector<16xf32>
    %4 = vector.shape_cast %3 : vector<16xf32> to vector<16x1xf32>
    %cst_5 = arith.constant 3.200000e+01 : f32
    %5 = vector.broadcast %cst_5 : f32 to vector<16x1xf32>
    %6 = arith.divf %4, %5 : vector<16x1xf32>
    %7 = vector.broadcast %6 : vector<16x1xf32> to vector<16x32xf32>
    %8 = arith.subf %0, %7 : vector<16x32xf32>
    %9 = arith.mulf %8, %8 : vector<16x32xf32>
    %cst_6 = arith.constant dense<0.000000e+00> : vector<16xf32>
    %10 = vector.multi_reduction <add>, %9, %cst_6 [1] : vector<16x32xf32> to vector<16xf32>
    %11 = vector.shape_cast %10 : vector<16xf32> to vector<16x1xf32>
    %cst_7 = arith.constant 3.200000e+01 : f32
    %12 = vector.broadcast %cst_7 : f32 to vector<16x1xf32>
    %13 = arith.divf %11, %12 : vector<16x1xf32>
    %14 = vector.broadcast %6 : vector<16x1xf32> to vector<16x32xf32>
    %15 = arith.subf %0, %14 : vector<16x32xf32>
    %cst_8 = arith.constant 9.99999974E-6 : f32
    %16 = vector.broadcast %cst_8 : f32 to vector<16x1xf32>
    %17 = arith.addf %13, %16 : vector<16x1xf32>
    %18 = math.rsqrt %17 : vector<16x1xf32>
    %19 = vector.broadcast %18 : vector<16x1xf32> to vector<16x32xf32>
    %20 = arith.mulf %15, %19 : vector<16x32xf32>
    %21 = vector.broadcast %1 : vector<1x32xf32> to vector<16x32xf32>
    %22 = arith.mulf %20, %21 : vector<16x32xf32>
    %23 = vector.broadcast %2 : vector<1x32xf32> to vector<16x32xf32>
    %24 = arith.addf %22, %23 : vector<16x32xf32>
    %c0_9 = arith.constant 0 : index
    %c0_10 = arith.constant 0 : index
    %25 = vector.load %arg3[%c0_9, %c0_10] : memref<32x64xf32, #tpu.memory_space<vmem>>, vector<32x64xf32>
    %26 = arith.truncf %24 : vector<16x32xf32> to vector<16x32xbf16>
    %27 = arith.truncf %25 : vector<32x64xf32> to vector<32x64xbf16>
    %cst_11 = arith.constant dense<0.000000e+00> : vector<16x64xf32>
    %28 = tpu.matmul %26, %27, %cst_11 {dimension_numbers = #tpu.dot_dimension_numbers<[1], [0], [0], [1], [0, 0, 1, 1], [], []>} : vector<16x32xbf16>, vector<32x64xbf16>, vector<16x64xf32> -> vector<16x64xf32>
    %c0_12 = arith.constant 0 : index
    %c0_13 = arith.constant 0 : index
    %29 = vector.load %arg4[%c0_12, %c0_13] : memref<1x64xf32, #tpu.memory_space<vmem>>, vector<1x64xf32>
    %30 = vector.broadcast %29 : vector<1x64xf32> to vector<16x64xf32>
    %31 = arith.addf %28, %30 : vector<16x64xf32>
    %cst_14 = arith.constant 0.000000e+00 : f32
    %32 = vector.broadcast %cst_14 : f32 to vector<16x64xf32>
    %33 = arith.maximumf %31, %32 : vector<16x64xf32>
    %c0_15 = arith.constant 0 : index
    %c0_16 = arith.constant 0 : index
    %34 = vector.load %arg5[%c0_15, %c0_16] : memref<64x32xf32, #tpu.memory_space<vmem>>, vector<64x32xf32>
    %35 = arith.truncf %33 : vector<16x64xf32> to vector<16x64xbf16>
    %36 = arith.truncf %34 : vector<64x32xf32> to vector<64x32xbf16>
    %cst_17 = arith.constant dense<0.000000e+00> : vector<16x32xf32>
    %37 = tpu.matmul %35, %36, %cst_17 {dimension_numbers = #tpu.dot_dimension_numbers<[1], [0], [0], [1], [0, 0, 1, 1], [], []>} : vector<16x64xbf16>, vector<64x32xbf16>, vector<16x32xf32> -> vector<16x32xf32>
    %c0_18 = arith.constant 0 : index
    %c0_19 = arith.constant 0 : index
    %38 = vector.load %arg6[%c0_18, %c0_19] : memref<1x32xf32, #tpu.memory_space<vmem>>, vector<1x32xf32>
    %39 = vector.broadcast %38 : vector<1x32xf32> to vector<16x32xf32>
    %40 = arith.addf %37, %39 : vector<16x32xf32>
    %41 = arith.addf %0, %40 : vector<16x32xf32>
    %c0_20 = arith.constant 0 : index
    %c0_21 = arith.constant 0 : index
    %42 = vector.load %arg7[%c0_20, %c0_21] : memref<16x32xf32, #tpu.memory_space<vmem>>, vector<16x32xf32>
    tpu.vector_store %arg7[%c0_20, %c0_21], %41 {strides = array<i32>} : memref<16x32xf32, #tpu.memory_space<vmem>>, vector<16x32xf32>,
    return
  }
}

module attributes {stable_mosaic.version = 11 : i64} {
  func.func @kernel(%arg0: memref<16x32xf32, #tpu.memory_space<vmem>>, %arg1: memref<32x64xf32, #tpu.memory_space<vmem>>, %arg2: memref<1x64xf32, #tpu.memory_space<vmem>>, %arg3: memref<16x64xf32, #tpu.memory_space<vmem>>) attributes {dimension_semantics = [], scalar_prefetch = 0 : i64, scratch_operands = 0 : i64, tpu.core_type = #tpu.core_type<tc>} {
    %c0 = arith.constant 0 : index
    %c0_0 = arith.constant 0 : index
    %0 = vector.load %arg0[%c0, %c0_0] : memref<16x32xf32, #tpu.memory_space<vmem>>, vector<16x32xf32>
    %c0_1 = arith.constant 0 : index
    %c0_2 = arith.constant 0 : index
    %1 = vector.load %arg1[%c0_1, %c0_2] : memref<32x64xf32, #tpu.memory_space<vmem>>, vector<32x64xf32>
    %2 = arith.truncf %0 : vector<16x32xf32> to vector<16x32xbf16>
    %3 = arith.truncf %1 : vector<32x64xf32> to vector<32x64xbf16>
    %cst = arith.constant dense<0.000000e+00> : vector<16x64xf32>
    %4 = tpu.matmul %2, %3, %cst {dimension_numbers = #tpu.dot_dimension_numbers<[1], [0], [0], [1], [0, 0, 1, 1], [], []>} : vector<16x32xbf16>, vector<32x64xbf16>, vector<16x64xf32> -> vector<16x64xf32>
    %c0_3 = arith.constant 0 : index
    %c0_4 = arith.constant 0 : index
    %5 = vector.load %arg2[%c0_3, %c0_4] : memref<1x64xf32, #tpu.memory_space<vmem>>, vector<1x64xf32>
    %6 = vector.broadcast %5 : vector<1x64xf32> to vector<16x64xf32>
    %7 = arith.addf %4, %6 : vector<16x64xf32>
    %c0_5 = arith.constant 0 : index
    %c0_6 = arith.constant 0 : index
    %8 = vector.load %arg3[%c0_5, %c0_6] : memref<16x64xf32, #tpu.memory_space<vmem>>, vector<16x64xf32>
    tpu.vector_store %arg3[%c0_5, %c0_6], %7 {strides = array<i32>} : memref<16x64xf32, #tpu.memory_space<vmem>>, vector<16x64xf32>,
    return
  }
}

module attributes {stable_mosaic.version = 11 : i64} {
  func.func @kernel(%arg0: memref<12x32xf32, #tpu.memory_space<vmem>>, %arg1: memref<1x32xf32, #tpu.memory_space<vmem>>, %arg2: memref<1x32xf32, #tpu.memory_space<vmem>>, %arg3: memref<32x96xf32, #tpu.memory_space<vmem>>, %arg4: memref<1x96xf32, #tpu.memory_space<vmem>>, %arg5: memref<12x96xf32, #tpu.memory_space<vmem>>) attributes {dimension_semantics = [], scalar_prefetch = 0 : i64, scratch_operands = 0 : i64, tpu.core_type = #tpu.core_type<tc>} {
    %c0 = arith.constant 0 : index
    %c0_0 = arith.constant 0 : index
    %0 = vector.load %arg0[%c0, %c0_0] : memref<12x32xf32, #tpu.memory_space<vmem>>, vector<12x32xf32>
    %c0_1 = arith.constant 0 : index
    %c0_2 = arith.constant 0 : index
    %1 = vector.load %arg1[%c0_1, %c0_2] : memref<1x32xf32, #tpu.memory_space<vmem>>, vector<1x32xf32>
    %c0_3 = arith.constant 0 : index
    %c0_4 = arith.constant 0 : index
    %2 = vector.load %arg2[%c0_3, %c0_4] : memref<1x32xf32, #tpu.memory_space<vmem>>, vector<1x32xf32>
    %cst = arith.constant dense<0.000000e+00> : vector<12xf32>
    %3 = vector.multi_reduction <add>, %0, %cst [1] : vector<12x32xf32> to vector<12xf32>
    %4 = vector.shape_cast %3 : vector<12xf32> to vector<12x1xf32>
    %cst_5 = arith.constant 3.200000e+01 : f32
    %5 = vector.broadcast %cst_5 : f32 to vector<12x1xf32>
    %6 = arith.divf %4, %5 : vector<12x1xf32>
    %7 = vector.broadcast %6 : vector<12x1xf32> to vector<12x32xf32>
    %8 = arith.subf %0, %7 : vector<12x32xf32>
    %9 = arith.mulf %8, %8 : vector<12x32xf32>
    %cst_6 = arith.constant dense<0.000000e+00> : vector<12xf32>
    %10 = vector.multi_reduction <add>, %9, %cst_6 [1] : vector<12x32xf32> to vector<12xf32>
    %11 = vector.shape_cast %10 : vector<12xf32> to vector<12x1xf32>
    %cst_7 = arith.constant 3.200000e+01 : f32
    %12 = vector.broadcast %cst_7 : f32 to vector<12x1xf32>
    %13 = arith.divf %11, %12 : vector<12x1xf32>
    %14 = vector.broadcast %6 : vector<12x1xf32> to vector<12x32xf32>
    %15 = arith.subf %0, %14 : vector<12x32xf32>
    %cst_8 = arith.constant 9.99999974E-6 : f32
    %16 = vector.broadcast %cst_8 : f32 to vector<12x1xf32>
    %17 = arith.addf %13, %16 : vector<12x1xf32>
    %18 = math.rsqrt %17 : vector<12x1xf32>
    %19 = vector.broadcast %18 : vector<12x1xf32> to vector<12x32xf32>
    %20 = arith.mulf %15, %19 : vector<12x32xf32>
    %21 = vector.broadcast %1 : vector<1x32xf32> to vector<12x32xf32>
    %22 = arith.mulf %20, %21 : vector<12x32xf32>
    %23 = vector.broadcast %2 : vector<1x32xf32> to vector<12x32xf32>
    %24 = arith.addf %22, %23 : vector<12x32xf32>
    %c0_9 = arith.constant 0 : index
    %c0_10 = arith.constant 0 : index
    %25 = vector.load %arg3[%c0_9, %c0_10] : memref<32x96xf32, #tpu.memory_space<vmem>>, vector<32x96xf32>
    %26 = arith.truncf %24 : vector<12x32xf32> to vector<12x32xbf16>
    %27 = arith.truncf %25 : vector<32x96xf32> to vector<32x96xbf16>
    %cst_11 = arith.constant dense<0.000000e+00> : vector<12x96xf32>
    %28 = tpu.matmul %26, %27, %cst_11 {dimension_numbers = #tpu.dot_dimension_numbers<[1], [0], [0], [1], [0, 0, 1, 1], [], []>} : vector<12x32xbf16>, vector<32x96xbf16>, vector<12x96xf32> -> vector<12x96xf32>
    %c0_12 = arith.constant 0 : index
    %c0_13 = arith.constant 0 : index
    %29 = vector.load %arg4[%c0_12, %c0_13] : memref<1x96xf32, #tpu.memory_space<vmem>>, vector<1x96xf32>
    %30 = vector.broadcast %29 : vector<1x96xf32> to vector<12x96xf32>
    %31 = arith.addf %28, %30 : vector<12x96xf32>
    %c0_14 = arith.constant 0 : index
    %c0_15 = arith.constant 0 : index
    %32 = vector.load %arg5[%c0_14, %c0_15] : memref<12x96xf32, #tpu.memory_space<vmem>>, vector<12x96xf32>
    tpu.vector_store %arg5[%c0_14, %c0_15], %31 {strides = array<i32>} : memref<12x96xf32, #tpu.memory_space<vmem>>, vector<12x96xf32>,
    return
  }
}

module attributes {stable_mosaic.version = 11 : i64} {
  func.func @_linear_residual_kernel(%arg0: memref<12x32xf32, #tpu.memory_space<vmem>>, %arg1: memref<32x32xf32, #tpu.memory_space<vmem>>, %arg2: memref<1x32xf32, #tpu.memory_space<vmem>>, %arg3: memref<12x32xf32, #tpu.memory_space<vmem>>, %arg4: memref<12x32xf32, #tpu.memory_space<vmem>>) attributes {dimension_semantics = [], scalar_prefetch = 0 : i64, scratch_operands = 0 : i64, tpu.core_type = #tpu.core_type<tc>} {
    %c0 = arith.constant 0 : index
    %c0_0 = arith.constant 0 : index
    %0 = vector.load %arg0[%c0, %c0_0] : memref<12x32xf32, #tpu.memory_space<vmem>>, vector<12x32xf32>
    %c0_1 = arith.constant 0 : index
    %c0_2 = arith.constant 0 : index
    %1 = vector.load %arg1[%c0_1, %c0_2] : memref<32x32xf32, #tpu.memory_space<vmem>>, vector<32x32xf32>
    %2 = arith.truncf %0 : vector<12x32xf32> to vector<12x32xbf16>
    %3 = arith.truncf %1 : vector<32x32xf32> to vector<32x32xbf16>
    %cst = arith.constant dense<0.000000e+00> : vector<12x32xf32>
    %4 = tpu.matmul %2, %3, %cst {dimension_numbers = #tpu.dot_dimension_numbers<[1], [0], [0], [1], [0, 0, 1, 1], [], []>} : vector<12x32xbf16>, vector<32x32xbf16>, vector<12x32xf32> -> vector<12x32xf32>
    %c0_3 = arith.constant 0 : index
    %c0_4 = arith.constant 0 : index
    %5 = vector.load %arg2[%c0_3, %c0_4] : memref<1x32xf32, #tpu.memory_space<vmem>>, vector<1x32xf32>
    %6 = vector.broadcast %5 : vector<1x32xf32> to vector<12x32xf32>
    %7 = arith.addf %4, %6 : vector<12x32xf32>
    %c0_5 = arith.constant 0 : index
    %c0_6 = arith.constant 0 : index
    %8 = vector.load %arg3[%c0_5, %c0_6] : memref<12x32xf32, #tpu.memory_space<vmem>>, vector<12x32xf32>
    %9 = arith.addf %7, %8 : vector<12x32xf32>
    %c0_7 = arith.constant 0 : index
    %c0_8 = arith.constant 0 : index
    %10 = vector.load %arg4[%c0_7, %c0_8] : memref<12x32xf32, #tpu.memory_space<vmem>>, vector<12x32xf32>
    tpu.vector_store %arg4[%c0_7, %c0_8], %9 {strides = array<i32>} : memref<12x32xf32, #tpu.memory_space<vmem>>, vector<12x32xf32>,
    return
  }
}

module attributes {stable_mosaic.version = 11 : i64} {
  func.func @kernel(%arg0: memref<8x6x8xf32, #tpu.memory_space<vmem>>, %arg1: memref<8x6x8xf32, #tpu.memory_space<vmem>>, %arg2: memref<8x6x8xf32, #tpu.memory_space<vmem>>, %arg3: memref<8x6x8xf32, #tpu.memory_space<vmem>>) attributes {dimension_semantics = [], scalar_prefetch = 0 : i64, scratch_operands = 0 : i64, tpu.core_type = #tpu.core_type<tc>} {
    %c0 = arith.constant 0 : index
    %c0_0 = arith.constant 0 : index
    %c0_1 = arith.constant 0 : index
    %0 = vector.load %arg0[%c0, %c0_0, %c0_1] : memref<8x6x8xf32, #tpu.memory_space<vmem>>, vector<8x6x8xf32>
    %c0_2 = arith.constant 0 : index
    %c0_3 = arith.constant 0 : index
    %c0_4 = arith.constant 0 : index
    %1 = vector.load %arg1[%c0_2, %c0_3, %c0_4] : memref<8x6x8xf32, #tpu.memory_space<vmem>>, vector<8x6x8xf32>
    %c0_5 = arith.constant 0 : index
    %c0_6 = arith.constant 0 : index
    %c0_7 = arith.constant 0 : index
    %2 = vector.load %arg2[%c0_5, %c0_6, %c0_7] : memref<8x6x8xf32, #tpu.memory_space<vmem>>, vector<8x6x8xf32>
    %3 = arith.truncf %0 : vector<8x6x8xf32> to vector<8x6x8xbf16>
    %4 = arith.truncf %1 : vector<8x6x8xf32> to vector<8x6x8xbf16>
    "tpu.trace_start"() <{level = 10 : i32, message = "bqd,bkd->bqk"}> : () -> ()
    %cst = arith.constant dense<0.000000e+00> : vector<8x6x6xf32>
    %5 = tpu.matmul %3, %4, %cst {dimension_numbers = #tpu.dot_dimension_numbers<[2], [2], [1], [1], [0, 0, 0, 1, 1, 1], [0], [0]>} : vector<8x6x8xbf16>, vector<8x6x8xbf16>, vector<8x6x6xf32> -> vector<8x6x6xf32>
    "tpu.trace_stop"() : () -> ()
    %cst_8 = arith.constant 0.353553385 : f32
    %6 = vector.broadcast %cst_8 : f32 to vector<8x6x6xf32>
    %7 = arith.mulf %5, %6 : vector<8x6x6xf32>
    %8 = tpu.iota {dimensions = array<i32: 1>} : vector<8x6x6xi32>
    %9 = tpu.iota {dimensions = array<i32: 2>} : vector<8x6x6xi32>
    %10 = arith.cmpi sle, %9, %8 : vector<8x6x6xi32>
    %cst_9 = arith.constant -1.000000e+09 : f32
    %11 = vector.broadcast %cst_9 : f32 to vector<8x6x6xf32>
    %12 = arith.select %10, %7, %11 : vector<8x6x6xi1>, vector<8x6x6xf32>
    %cst_10 = arith.constant dense<0xFF800000> : vector<8x6xf32>
    %13 = vector.multi_reduction <maximumf>, %12, %cst_10 [2] : vector<8x6x6xf32> to vector<8x6xf32>
    %14 = vector.shape_cast %13 : vector<8x6xf32> to vector<8x6x1xf32>
    %15 = vector.broadcast %14 : vector<8x6x1xf32> to vector<8x6x6xf32>
    %16 = arith.subf %12, %15 : vector<8x6x6xf32>
    %17 = math.exp %16 : vector<8x6x6xf32>
    %cst_11 = arith.constant dense<0.000000e+00> : vector<8x6xf32>
    %18 = vector.multi_reduction <add>, %17, %cst_11 [2] : vector<8x6x6xf32> to vector<8x6xf32>
    %19 = vector.shape_cast %18 : vector<8x6xf32> to vector<8x6x1xf32>
    %20 = tpu.reciprocal %19 {approx = true} : vector<8x6x1xf32> -> vector<8x6x1xf32>
    %21 = vector.broadcast %20 : vector<8x6x1xf32> to vector<8x6x6xf32>
    %22 = arith.mulf %17, %21 : vector<8x6x6xf32>
    %23 = arith.truncf %22 : vector<8x6x6xf32> to vector<8x6x6xbf16>
    %24 = arith.truncf %2 : vector<8x6x8xf32> to vector<8x6x8xbf16>
    "tpu.trace_start"() <{level = 10 : i32, message = "bqk,bkd->bqd"}> : () -> ()
    %cst_12 = arith.constant dense<0.000000e+00> : vector<8x6x8xf32>
    %25 = tpu.matmul %23, %24, %cst_12 {dimension_numbers = #tpu.dot_dimension_numbers<[2], [1], [1], [2], [0, 0, 0, 1, 1, 2], [0], [0]>} : vector<8x6x6xbf16>, vector<8x6x8xbf16>, vector<8x6x8xf32> -> vector<8x6x8xf32>
    "tpu.trace_stop"() : () -> ()
    %c0_13 = arith.constant 0 : index
    %c0_14 = arith.constant 0 : index
    %c0_15 = arith.constant 0 : index
    %26 = vector.load %arg3[%c0_13, %c0_14, %c0_15] : memref<8x6x8xf32, #tpu.memory_space<vmem>>, vector<8x6x8xf32>
    tpu.vector_store %arg3[%c0_13, %c0_14, %c0_15], %25 {strides = array<i32>} : memref<8x6x8xf32, #tpu.memory_space<vmem>>, vector<8x6x8xf32>,
    return
  }
}

module attributes {stable_mosaic.version = 11 : i64} {
  func.func @kernel(%arg0: memref<12x32xf32, #tpu.memory_space<vmem>>, %arg1: memref<1x32xf32, #tpu.memory_space<vmem>>, %arg2: memref<1x32xf32, #tpu.memory_space<vmem>>, %arg3: memref<32x32xf32, #tpu.memory_space<vmem>>, %arg4: memref<1x32xf32, #tpu.memory_space<vmem>>, %arg5: memref<12x32xf32, #tpu.memory_space<vmem>>) attributes {dimension_semantics = [], scalar_prefetch = 0 : i64, scratch_operands = 0 : i64, tpu.core_type = #tpu.core_type<tc>} {
    %c0 = arith.constant 0 : index
    %c0_0 = arith.constant 0 : index
    %0 = vector.load %arg0[%c0, %c0_0] : memref<12x32xf32, #tpu.memory_space<vmem>>, vector<12x32xf32>
    %c0_1 = arith.constant 0 : index
    %c0_2 = arith.constant 0 : index
    %1 = vector.load %arg1[%c0_1, %c0_2] : memref<1x32xf32, #tpu.memory_space<vmem>>, vector<1x32xf32>
    %c0_3 = arith.constant 0 : index
    %c0_4 = arith.constant 0 : index
    %2 = vector.load %arg2[%c0_3, %c0_4] : memref<1x32xf32, #tpu.memory_space<vmem>>, vector<1x32xf32>
    %cst = arith.constant dense<0.000000e+00> : vector<12xf32>
    %3 = vector.multi_reduction <add>, %0, %cst [1] : vector<12x32xf32> to vector<12xf32>
    %4 = vector.shape_cast %3 : vector<12xf32> to vector<12x1xf32>
    %cst_5 = arith.constant 3.200000e+01 : f32
    %5 = vector.broadcast %cst_5 : f32 to vector<12x1xf32>
    %6 = arith.divf %4, %5 : vector<12x1xf32>
    %7 = vector.broadcast %6 : vector<12x1xf32> to vector<12x32xf32>
    %8 = arith.subf %0, %7 : vector<12x32xf32>
    %9 = arith.mulf %8, %8 : vector<12x32xf32>
    %cst_6 = arith.constant dense<0.000000e+00> : vector<12xf32>
    %10 = vector.multi_reduction <add>, %9, %cst_6 [1] : vector<12x32xf32> to vector<12xf32>
    %11 = vector.shape_cast %10 : vector<12xf32> to vector<12x1xf32>
    %cst_7 = arith.constant 3.200000e+01 : f32
    %12 = vector.broadcast %cst_7 : f32 to vector<12x1xf32>
    %13 = arith.divf %11, %12 : vector<12x1xf32>
    %14 = vector.broadcast %6 : vector<12x1xf32> to vector<12x32xf32>
    %15 = arith.subf %0, %14 : vector<12x32xf32>
    %cst_8 = arith.constant 9.99999974E-6 : f32
    %16 = vector.broadcast %cst_8 : f32 to vector<12x1xf32>
    %17 = arith.addf %13, %16 : vector<12x1xf32>
    %18 = math.rsqrt %17 : vector<12x1xf32>
    %19 = vector.broadcast %18 : vector<12x1xf32> to vector<12x32xf32>
    %20 = arith.mulf %15, %19 : vector<12x32xf32>
    %21 = vector.broadcast %1 : vector<1x32xf32> to vector<12x32xf32>
    %22 = arith.mulf %20, %21 : vector<12x32xf32>
    %23 = vector.broadcast %2 : vector<1x32xf32> to vector<12x32xf32>
    %24 = arith.addf %22, %23 : vector<12x32xf32>
    %c0_9 = arith.constant 0 : index
    %c0_10 = arith.constant 0 : index
    %25 = vector.load %arg3[%c0_9, %c0_10] : memref<32x32xf32, #tpu.memory_space<vmem>>, vector<32x32xf32>
    %26 = arith.truncf %24 : vector<12x32xf32> to vector<12x32xbf16>
    %27 = arith.truncf %25 : vector<32x32xf32> to vector<32x32xbf16>
    %cst_11 = arith.constant dense<0.000000e+00> : vector<12x32xf32>
    %28 = tpu.matmul %26, %27, %cst_11 {dimension_numbers = #tpu.dot_dimension_numbers<[1], [0], [0], [1], [0, 0, 1, 1], [], []>} : vector<12x32xbf16>, vector<32x32xbf16>, vector<12x32xf32> -> vector<12x32xf32>
    %c0_12 = arith.constant 0 : index
    %c0_13 = arith.constant 0 : index
    %29 = vector.load %arg4[%c0_12, %c0_13] : memref<1x32xf32, #tpu.memory_space<vmem>>, vector<1x32xf32>
    %30 = vector.broadcast %29 : vector<1x32xf32> to vector<12x32xf32>
    %31 = arith.addf %28, %30 : vector<12x32xf32>
    %c0_14 = arith.constant 0 : index
    %c0_15 = arith.constant 0 : index
    %32 = vector.load %arg5[%c0_14, %c0_15] : memref<12x32xf32, #tpu.memory_space<vmem>>, vector<12x32xf32>
    tpu.vector_store %arg5[%c0_14, %c0_15], %31 {strides = array<i32>} : memref<12x32xf32, #tpu.memory_space<vmem>>, vector<12x32xf32>,
    return
  }
}

module attributes {stable_mosaic.version = 11 : i64} {
  func.func @kernel(%arg0: memref<8x6x8xf32, #tpu.memory_space<vmem>>, %arg1: memref<8x8x8xf32, #tpu.memory_space<vmem>>, %arg2: memref<8x8x8xf32, #tpu.memory_space<vmem>>, %arg3: memref<8x6x8xf32, #tpu.memory_space<vmem>>) attributes {dimension_semantics = [], scalar_prefetch = 0 : i64, scratch_operands = 0 : i64, tpu.core_type = #tpu.core_type<tc>} {
    %c0 = arith.constant 0 : index
    %c0_0 = arith.constant 0 : index
    %c0_1 = arith.constant 0 : index
    %0 = vector.load %arg0[%c0, %c0_0, %c0_1] : memref<8x6x8xf32, #tpu.memory_space<vmem>>, vector<8x6x8xf32>
    %c0_2 = arith.constant 0 : index
    %c0_3 = arith.constant 0 : index
    %c0_4 = arith.constant 0 : index
    %1 = vector.load %arg1[%c0_2, %c0_3, %c0_4] : memref<8x8x8xf32, #tpu.memory_space<vmem>>, vector<8x8x8xf32>
    %c0_5 = arith.constant 0 : index
    %c0_6 = arith.constant 0 : index
    %c0_7 = arith.constant 0 : index
    %2 = vector.load %arg2[%c0_5, %c0_6, %c0_7] : memref<8x8x8xf32, #tpu.memory_space<vmem>>, vector<8x8x8xf32>
    %3 = arith.truncf %0 : vector<8x6x8xf32> to vector<8x6x8xbf16>
    %4 = arith.truncf %1 : vector<8x8x8xf32> to vector<8x8x8xbf16>
    "tpu.trace_start"() <{level = 10 : i32, message = "bqd,bkd->bqk"}> : () -> ()
    %cst = arith.constant dense<0.000000e+00> : vector<8x6x8xf32>
    %5 = tpu.matmul %3, %4, %cst {dimension_numbers = #tpu.dot_dimension_numbers<[2], [2], [1], [1], [0, 0, 0, 1, 1, 1], [0], [0]>} : vector<8x6x8xbf16>, vector<8x8x8xbf16>, vector<8x6x8xf32> -> vector<8x6x8xf32>
    "tpu.trace_stop"() : () -> ()
    %cst_8 = arith.constant 0.353553385 : f32
    %6 = vector.broadcast %cst_8 : f32 to vector<8x6x8xf32>
    %7 = arith.mulf %5, %6 : vector<8x6x8xf32>
    %cst_9 = arith.constant dense<0xFF800000> : vector<8x6xf32>
    %8 = vector.multi_reduction <maximumf>, %7, %cst_9 [2] : vector<8x6x8xf32> to vector<8x6xf32>
    %9 = vector.shape_cast %8 : vector<8x6xf32> to vector<8x6x1xf32>
    %10 = vector.broadcast %9 : vector<8x6x1xf32> to vector<8x6x8xf32>
    %11 = arith.subf %7, %10 : vector<8x6x8xf32>
    %12 = math.exp %11 : vector<8x6x8xf32>
    %cst_10 = arith.constant dense<0.000000e+00> : vector<8x6xf32>
    %13 = vector.multi_reduction <add>, %12, %cst_10 [2] : vector<8x6x8xf32> to vector<8x6xf32>
    %14 = vector.shape_cast %13 : vector<8x6xf32> to vector<8x6x1xf32>
    %15 = tpu.reciprocal %14 {approx = true} : vector<8x6x1xf32> -> vector<8x6x1xf32>
    %16 = vector.broadcast %15 : vector<8x6x1xf32> to vector<8x6x8xf32>
    %17 = arith.mulf %12, %16 : vector<8x6x8xf32>
    %18 = arith.truncf %17 : vector<8x6x8xf32> to vector<8x6x8xbf16>
    %19 = arith.truncf %2 : vector<8x8x8xf32> to vector<8x8x8xbf16>
    "tpu.trace_start"() <{level = 10 : i32, message = "bqk,bkd->bqd"}> : () -> ()
    %cst_11 = arith.constant dense<0.000000e+00> : vector<8x6x8xf32>
    %20 = tpu.matmul %18, %19, %cst_11 {dimension_numbers = #tpu.dot_dimension_numbers<[2], [1], [1], [2], [0, 0, 0, 1, 1, 2], [0], [0]>} : vector<8x6x8xbf16>, vector<8x8x8xbf16>, vector<8x6x8xf32> -> vector<8x6x8xf32>
    "tpu.trace_stop"() : () -> ()
    %c0_12 = arith.constant 0 : index
    %c0_13 = arith.constant 0 : index
    %c0_14 = arith.constant 0 : index
    %21 = vector.load %arg3[%c0_12, %c0_13, %c0_14] : memref<8x6x8xf32, #tpu.memory_space<vmem>>, vector<8x6x8xf32>
    tpu.vector_store %arg3[%c0_12, %c0_13, %c0_14], %20 {strides = array<i32>} : memref<8x6x8xf32, #tpu.memory_space<vmem>>, vector<8x6x8xf32>,
    return
  }
}

module attributes {stable_mosaic.version = 11 : i64} {
  func.func @_ln_ffn_kernel(%arg0: memref<12x32xf32, #tpu.memory_space<vmem>>, %arg1: memref<1x32xf32, #tpu.memory_space<vmem>>, %arg2: memref<1x32xf32, #tpu.memory_space<vmem>>, %arg3: memref<32x64xf32, #tpu.memory_space<vmem>>, %arg4: memref<1x64xf32, #tpu.memory_space<vmem>>, %arg5: memref<64x32xf32, #tpu.memory_space<vmem>>, %arg6: memref<1x32xf32, #tpu.memory_space<vmem>>, %arg7: memref<12x32xf32, #tpu.memory_space<vmem>>) attributes {dimension_semantics = [], scalar_prefetch = 0 : i64, scratch_operands = 0 : i64, tpu.core_type = #tpu.core_type<tc>} {
    %c0 = arith.constant 0 : index
    %c0_0 = arith.constant 0 : index
    %0 = vector.load %arg0[%c0, %c0_0] : memref<12x32xf32, #tpu.memory_space<vmem>>, vector<12x32xf32>
    %c0_1 = arith.constant 0 : index
    %c0_2 = arith.constant 0 : index
    %1 = vector.load %arg1[%c0_1, %c0_2] : memref<1x32xf32, #tpu.memory_space<vmem>>, vector<1x32xf32>
    %c0_3 = arith.constant 0 : index
    %c0_4 = arith.constant 0 : index
    %2 = vector.load %arg2[%c0_3, %c0_4] : memref<1x32xf32, #tpu.memory_space<vmem>>, vector<1x32xf32>
    %cst = arith.constant dense<0.000000e+00> : vector<12xf32>
    %3 = vector.multi_reduction <add>, %0, %cst [1] : vector<12x32xf32> to vector<12xf32>
    %4 = vector.shape_cast %3 : vector<12xf32> to vector<12x1xf32>
    %cst_5 = arith.constant 3.200000e+01 : f32
    %5 = vector.broadcast %cst_5 : f32 to vector<12x1xf32>
    %6 = arith.divf %4, %5 : vector<12x1xf32>
    %7 = vector.broadcast %6 : vector<12x1xf32> to vector<12x32xf32>
    %8 = arith.subf %0, %7 : vector<12x32xf32>
    %9 = arith.mulf %8, %8 : vector<12x32xf32>
    %cst_6 = arith.constant dense<0.000000e+00> : vector<12xf32>
    %10 = vector.multi_reduction <add>, %9, %cst_6 [1] : vector<12x32xf32> to vector<12xf32>
    %11 = vector.shape_cast %10 : vector<12xf32> to vector<12x1xf32>
    %cst_7 = arith.constant 3.200000e+01 : f32
    %12 = vector.broadcast %cst_7 : f32 to vector<12x1xf32>
    %13 = arith.divf %11, %12 : vector<12x1xf32>
    %14 = vector.broadcast %6 : vector<12x1xf32> to vector<12x32xf32>
    %15 = arith.subf %0, %14 : vector<12x32xf32>
    %cst_8 = arith.constant 9.99999974E-6 : f32
    %16 = vector.broadcast %cst_8 : f32 to vector<12x1xf32>
    %17 = arith.addf %13, %16 : vector<12x1xf32>
    %18 = math.rsqrt %17 : vector<12x1xf32>
    %19 = vector.broadcast %18 : vector<12x1xf32> to vector<12x32xf32>
    %20 = arith.mulf %15, %19 : vector<12x32xf32>
    %21 = vector.broadcast %1 : vector<1x32xf32> to vector<12x32xf32>
    %22 = arith.mulf %20, %21 : vector<12x32xf32>
    %23 = vector.broadcast %2 : vector<1x32xf32> to vector<12x32xf32>
    %24 = arith.addf %22, %23 : vector<12x32xf32>
    %c0_9 = arith.constant 0 : index
    %c0_10 = arith.constant 0 : index
    %25 = vector.load %arg3[%c0_9, %c0_10] : memref<32x64xf32, #tpu.memory_space<vmem>>, vector<32x64xf32>
    %26 = arith.truncf %24 : vector<12x32xf32> to vector<12x32xbf16>
    %27 = arith.truncf %25 : vector<32x64xf32> to vector<32x64xbf16>
    %cst_11 = arith.constant dense<0.000000e+00> : vector<12x64xf32>
    %28 = tpu.matmul %26, %27, %cst_11 {dimension_numbers = #tpu.dot_dimension_numbers<[1], [0], [0], [1], [0, 0, 1, 1], [], []>} : vector<12x32xbf16>, vector<32x64xbf16>, vector<12x64xf32> -> vector<12x64xf32>
    %c0_12 = arith.constant 0 : index
    %c0_13 = arith.constant 0 : index
    %29 = vector.load %arg4[%c0_12, %c0_13] : memref<1x64xf32, #tpu.memory_space<vmem>>, vector<1x64xf32>
    %30 = vector.broadcast %29 : vector<1x64xf32> to vector<12x64xf32>
    %31 = arith.addf %28, %30 : vector<12x64xf32>
    %cst_14 = arith.constant 0.000000e+00 : f32
    %32 = vector.broadcast %cst_14 : f32 to vector<12x64xf32>
    %33 = arith.maximumf %31, %32 : vector<12x64xf32>
    %c0_15 = arith.constant 0 : index
    %c0_16 = arith.constant 0 : index
    %34 = vector.load %arg5[%c0_15, %c0_16] : memref<64x32xf32, #tpu.memory_space<vmem>>, vector<64x32xf32>
    %35 = arith.truncf %33 : vector<12x64xf32> to vector<12x64xbf16>
    %36 = arith.truncf %34 : vector<64x32xf32> to vector<64x32xbf16>
    %cst_17 = arith.constant dense<0.000000e+00> : vector<12x32xf32>
    %37 = tpu.matmul %35, %36, %cst_17 {dimension_numbers = #tpu.dot_dimension_numbers<[1], [0], [0], [1], [0, 0, 1, 1], [], []>} : vector<12x64xbf16>, vector<64x32xbf16>, vector<12x32xf32> -> vector<12x32xf32>
    %c0_18 = arith.constant 0 : index
    %c0_19 = arith.constant 0 : index
    %38 = vector.load %arg6[%c0_18, %c0_19] : memref<1x32xf32, #tpu.memory_space<vmem>>, vector<1x32xf32>
    %39 = vector.broadcast %38 : vector<1x32xf32> to vector<12x32xf32>
    %40 = arith.addf %37, %39 : vector<12x32xf32>
    %41 = arith.addf %0, %40 : vector<12x32xf32>
    %c0_20 = arith.constant 0 : index
    %c0_21 = arith.constant 0 : index
    %42 = vector.load %arg7[%c0_20, %c0_21] : memref<12x32xf32, #tpu.memory_space<vmem>>, vector<12x32xf32>
    tpu.vector_store %arg7[%c0_20, %c0_21], %41 {strides = array<i32>} : memref<12x32xf32, #tpu.memory_space<vmem>>, vector<12x32xf32>,
    return
  }
}

module attributes {stable_mosaic.version = 11 : i64} {
  func.func @kernel(%arg0: memref<2x32xf32, #tpu.memory_space<vmem>>, %arg1: memref<1x32xf32, #tpu.memory_space<vmem>>, %arg2: memref<1x32xf32, #tpu.memory_space<vmem>>, %arg3: memref<32x64xf32, #tpu.memory_space<vmem>>, %arg4: memref<1x64xf32, #tpu.memory_space<vmem>>, %arg5: memref<2x64xf32, #tpu.memory_space<vmem>>) attributes {dimension_semantics = [], scalar_prefetch = 0 : i64, scratch_operands = 0 : i64, tpu.core_type = #tpu.core_type<tc>} {
    %c0 = arith.constant 0 : index
    %c0_0 = arith.constant 0 : index
    %0 = vector.load %arg0[%c0, %c0_0] : memref<2x32xf32, #tpu.memory_space<vmem>>, vector<2x32xf32>
    %c0_1 = arith.constant 0 : index
    %c0_2 = arith.constant 0 : index
    %1 = vector.load %arg1[%c0_1, %c0_2] : memref<1x32xf32, #tpu.memory_space<vmem>>, vector<1x32xf32>
    %c0_3 = arith.constant 0 : index
    %c0_4 = arith.constant 0 : index
    %2 = vector.load %arg2[%c0_3, %c0_4] : memref<1x32xf32, #tpu.memory_space<vmem>>, vector<1x32xf32>
    %cst = arith.constant dense<0.000000e+00> : vector<2xf32>
    %3 = vector.multi_reduction <add>, %0, %cst [1] : vector<2x32xf32> to vector<2xf32>
    %4 = vector.shape_cast %3 : vector<2xf32> to vector<2x1xf32>
    %cst_5 = arith.constant 3.200000e+01 : f32
    %5 = vector.broadcast %cst_5 : f32 to vector<2x1xf32>
    %6 = arith.divf %4, %5 : vector<2x1xf32>
    %7 = vector.broadcast %6 : vector<2x1xf32> to vector<2x32xf32>
    %8 = arith.subf %0, %7 : vector<2x32xf32>
    %9 = arith.mulf %8, %8 : vector<2x32xf32>
    %cst_6 = arith.constant dense<0.000000e+00> : vector<2xf32>
    %10 = vector.multi_reduction <add>, %9, %cst_6 [1] : vector<2x32xf32> to vector<2xf32>
    %11 = vector.shape_cast %10 : vector<2xf32> to vector<2x1xf32>
    %cst_7 = arith.constant 3.200000e+01 : f32
    %12 = vector.broadcast %cst_7 : f32 to vector<2x1xf32>
    %13 = arith.divf %11, %12 : vector<2x1xf32>
    %14 = vector.broadcast %6 : vector<2x1xf32> to vector<2x32xf32>
    %15 = arith.subf %0, %14 : vector<2x32xf32>
    %cst_8 = arith.constant 9.99999974E-6 : f32
    %16 = vector.broadcast %cst_8 : f32 to vector<2x1xf32>
    %17 = arith.addf %13, %16 : vector<2x1xf32>
    %18 = math.rsqrt %17 : vector<2x1xf32>
    %19 = vector.broadcast %18 : vector<2x1xf32> to vector<2x32xf32>
    %20 = arith.mulf %15, %19 : vector<2x32xf32>
    %21 = vector.broadcast %1 : vector<1x32xf32> to vector<2x32xf32>
    %22 = arith.mulf %20, %21 : vector<2x32xf32>
    %23 = vector.broadcast %2 : vector<1x32xf32> to vector<2x32xf32>
    %24 = arith.addf %22, %23 : vector<2x32xf32>
    %c0_9 = arith.constant 0 : index
    %c0_10 = arith.constant 0 : index
    %25 = vector.load %arg3[%c0_9, %c0_10] : memref<32x64xf32, #tpu.memory_space<vmem>>, vector<32x64xf32>
    %26 = arith.truncf %24 : vector<2x32xf32> to vector<2x32xbf16>
    %27 = arith.truncf %25 : vector<32x64xf32> to vector<32x64xbf16>
    %cst_11 = arith.constant dense<0.000000e+00> : vector<2x64xf32>
    %28 = tpu.matmul %26, %27, %cst_11 {dimension_numbers = #tpu.dot_dimension_numbers<[1], [0], [0], [1], [0, 0, 1, 1], [], []>} : vector<2x32xbf16>, vector<32x64xbf16>, vector<2x64xf32> -> vector<2x64xf32>
    %c0_12 = arith.constant 0 : index
    %c0_13 = arith.constant 0 : index
    %29 = vector.load %arg4[%c0_12, %c0_13] : memref<1x64xf32, #tpu.memory_space<vmem>>, vector<1x64xf32>
    %30 = vector.broadcast %29 : vector<1x64xf32> to vector<2x64xf32>
    %31 = arith.addf %28, %30 : vector<2x64xf32>
    %c0_14 = arith.constant 0 : index
    %c0_15 = arith.constant 0 : index
    %32 = vector.load %arg5[%c0_14, %c0_15] : memref<2x64xf32, #tpu.memory_space<vmem>>, vector<2x64xf32>
    tpu.vector_store %arg5[%c0_14, %c0_15], %31 {strides = array<i32>} : memref<2x64xf32, #tpu.memory_space<vmem>>, vector<2x64xf32>,
    return
  }
}

</mosaic_0001>

<bundles_post_ra>
// kernel: speech2text_forward.14
= control target key start
LH: loop header
LB: loop body
LE: loop exit
PB: predicated region body
PF: predicated region fallthrough
CT: control target
= control target key end

     0   :  { %vm43_vm0 = vcmask 523264   ;;  %vm117_vm1 = vcmask 130048   ;;  %s266_s1 = inlined_call_operand.vmem [shape: f32[64,16], index: 1, kind: input, shape index: {}]   ;;  %s267_s2 = inlined_call_operand.vmem [shape: f32[1,16], index: 2, kind: input, shape index: {}]   ;;  %s268_s0 = inlined_call_operand.vmem [shape: f32[64,64], index: 0, kind: input, shape index: {}]   ;;  %s269_s3 = inlined_call_operand.vmem [shape: f32[64,16], index: 3, kind: output, shape index: {}]  }
   0x1   :  { %v29_v0 = vld [vmem:[%s266_s1 + $0x30] sm:$0xff]  ;;  %v30_v1 = vld [vmem:[%s266_s1 + $0x38] sm:$0xff]  ;;  %v27_v2 = vld [vmem:[%s266_s1 + $0x20] sm:$0xff] }
   0x2   :  { %v38_v3 = vpack.c.bf16 %v30_v1, %v29_v0  ;;  %v28_v4 = vld [vmem:[%s266_s1 + $0x28] sm:$0xff]  ;;  %v25_v6 = vld [vmem:[%s266_s1 + $0x10] sm:$0xff]  ;;  %v26_v7 = vld [vmem:[%s266_s1 + $0x18] sm:$0xff] }
   0x3   :  { %v37_v5 = vpack.c.bf16 %v28_v4, %v27_v2  ;;  %v36_v8 = vpack.c.bf16 %v26_v7, %v25_v6  ;;  %v23_v9 = vld [vmem:[%s266_s1] sm:$0xff]  ;;  %v24_v10 = vld [vmem:[%s266_s1 + $0x8] sm:$0xff]  ;;  %v17_v14 = vld [vmem:[%s268_s0 + $0x10] sm:$0xff] }
   0x4   :  { %60 = vmatpush.bf16.msra.mxu0 %v38_v3  ;;  %134 = vmatpush.bf16.msra.mxu1 %v38_v3  ;;  %v15_v11 = vld [vmem:[%s268_s0] sm:$0xff]  ;;  %v16_v12 = vld [vmem:[%s268_s0 + $0x8] sm:$0xff]  ;;  %v35_v13 = vpack.c.bf16 %v24_v10, %v23_v9  ;;  %v18_v15 = vld [vmem:[%s268_s0 + $0x18] sm:$0xff] }
   0x5   :  { %135 = vmatpush.bf16.msra.mxu2 %v38_v3  ;;  %136 = vmatpush.bf16.msra.mxu3 %v38_v3  ;;  %v19_v16 = vld [vmem:[%s268_s0 + $0x20] sm:$0xff]  ;;  %v20_v17 = vld [vmem:[%s268_s0 + $0x28] sm:$0xff]  ;;  %v21_v18 = vld [vmem:[%s268_s0 + $0x30] sm:$0xff]  ;;  %v31_v20 = vpack.c.bf16 %v16_v12, %v15_v11  ;;  %v32_v21 = vpack.c.bf16 %v18_v15, %v17_v14 }
   0x6   :  { %v22_v19 = vld [vmem:[%s268_s0 + $0x38] sm:$0xff]  ;;  %v33_v22 = vpack.c.bf16 %v20_v17, %v19_v16  ;;  %v146_v24 = vld [vmem:[%s267_s2] ss:$0 sm:$0xff] }
   0x7   :  { %v34_v23 = vpack.c.bf16 %v22_v19, %v21_v18 }
   0x8   :  { %61 = vmatpush.bf16.msra.mxu0 %v37_v5  ;;  %137 = vmatpush.bf16.msra.mxu1 %v37_v5 }
   0x9   :  { %138 = vmatpush.bf16.msra.mxu2 %v37_v5  ;;  %139 = vmatpush.bf16.msra.mxu3 %v37_v5 }
   0xc   :  { %62 = vmatpush.bf16.msra.mxu0 %v36_v8  ;;  %140 = vmatpush.bf16.msra.mxu1 %v36_v8 }
   0xd   :  { %141 = vmatpush.bf16.msra.mxu2 %v36_v8  ;;  %142 = vmatpush.bf16.msra.mxu3 %v36_v8 }
  0x10   :  { %63 = vmatpush.bf16.msra.mxu0 %v35_v13  ;;  %143 = vmatpush.bf16.msra.mxu1 %v35_v13 }
  0x11   :  { %144 = vmatpush.bf16.msra.mxu2 %v35_v13  ;;  %145 = vmatpush.bf16.msra.mxu3 %v35_v13 }
  0x13   :  { %130 = vmatmul.msk.bf16.vlgmr.msra.gmra.mxu0 %vm43_vm0, %v31_v20  ;;  %131 = vmatmul.msk.bf16.vlgmr.msra.gmra.mxu1 %vm43_vm0, %v32_v21 }
  0x14   :  { %132 = vmatmul.msk.bf16.vlgmr.msra.gmra.mxu2 %vm43_vm0, %v33_v22  ;;  %133 = vmatmul.msk.bf16.vlgmr.msra.gmra.mxu3 %vm43_vm0, %v34_v23 }
  0x90   :  { %v65_v25 = vpop.f32.mrf.mxu0  ;;  %v70_v26 = vpop.f32.mrf.mxu1 }
  0x91   :  { %v66_v27 = vadd.f32 %v146_v24, %v65_v25  ;;  %v71_v28 = vadd.f32 %v146_v24, %v70_v26 }
  0x93   :  { %v85_v29 = vmul.f32 %v66_v27, %v66_v27  ;;  %v87_v30 = vmul.f32 %v71_v28, %v71_v28 }
  0x95   :  { %v93_v31 = vadd.f32 1e-06, %v85_v29  ;;  %v95_v32 = vadd.f32 1e-06, %v87_v30 }
  0x97   :  { %147 = vlog2.f32 %v93_v31  ;;  %v75_v33 = vpop.f32.mrf.mxu2  ;;  %v80_v34 = vpop.f32.mrf.mxu3 }
  0x98   :  { %149 = vlog2.f32 %v95_v32  ;;  %v76_v35 = vadd.f32 %v146_v24, %v75_v33  ;;  %v81_v36 = vadd.f32 %v146_v24, %v80_v34  ;;  %v67_v37 = vpop.f32.mrf.mxu0  ;;  %v72_v38 = vpop.f32.mrf.mxu1 }
  0x99   :  { %v68_v39 = vadd.f32 %v146_v24, %v67_v37  ;;  %v73_v40 = vadd.f32 %v146_v24, %v72_v38 }
  0x9a   :  { %v89_v41 = vmul.f32 %v76_v35, %v76_v35  ;;  %v91_v42 = vmul.f32 %v81_v36, %v81_v36 }
  0x9b   :  { %v86_v43 = vmul.f32 %v68_v39, %v68_v39  ;;  %v88_v44 = vmul.f32 %v73_v40, %v73_v40 }
  0x9c   :  { %v97_v45 = vadd.f32 1e-06, %v89_v41  ;;  %v99_v46 = vadd.f32 1e-06, %v91_v42 }
  0x9d   :  { %v148_v47 = vpop.eup %147  ;;  %v94_v48 = vadd.f32 1e-06, %v86_v43  ;;  %v96_v49 = vadd.f32 1e-06, %v88_v44 }
  0x9e   :  { %v150_v50 = vpop.eup %149  ;;  %v102_v51 = vmul.f32 0.6931472, %v148_v47  ;;  %151 = vlog2.f32 %v97_v45 }
  0x9f   :  { %v106_v52 = vmul.f32 0.6931472, %v150_v50  ;;  %153 = vlog2.f32 %v99_v46  ;;  %v77_v53 = vpop.f32.mrf.mxu2  ;;  %v82_v54 = vpop.f32.mrf.mxu3 }
  0xa0   :  { %118 = vst.msk [vmem:[%s269_s3] sm:$0xff] %vm117_vm1, %v102_v51  ;;  %155 = vlog2.f32 %v94_v48  ;;  %v78_v55 = vadd.f32 %v146_v24, %v77_v53  ;;  %v83_v56 = vadd.f32 %v146_v24, %v82_v54 }
  0xa1   :  { %120 = vst.msk [vmem:[%s269_s3 + $0x10] sm:$0xff] %vm117_vm1, %v106_v52  ;;  %157 = vlog2.f32 %v96_v49 }
  0xa2   :  { %v90_v57 = vmul.f32 %v78_v55, %v78_v55  ;;  %v92_v58 = vmul.f32 %v83_v56, %v83_v56 }
  0xa4   :  { %v152_v59 = vpop.eup %151  ;;  %v98_v60 = vadd.f32 1e-06, %v90_v57  ;;  %v100_v61 = vadd.f32 1e-06, %v92_v58 }
  0xa5   :  { %v154_v62 = vpop.eup %153  ;;  %v110_v63 = vmul.f32 0.6931472, %v152_v59 }
  0xa6   :  { %v156_v0 = vpop.eup %155  ;;  %v114_v1 = vmul.f32 0.6931472, %v154_v62  ;;  %159 = vlog2.f32 %v98_v60 }
  0xa7   :  { %v158_v2 = vpop.eup %157  ;;  %122 = vst.msk [vmem:[%s269_s3 + $0x20] sm:$0xff] %vm117_vm1, %v110_v63  ;;  %v104_v3 = vmul.f32 0.6931472, %v156_v0  ;;  %161 = vlog2.f32 %v100_v61 }
  0xa8   :  { %124 = vst.msk [vmem:[%s269_s3 + $0x30] sm:$0xff] %vm117_vm1, %v114_v1  ;;  %v108_v4 = vmul.f32 0.6931472, %v158_v2 }
  0xa9   :  { %119 = vst.msk [vmem:[%s269_s3 + $0x8] sm:$0xff] %vm117_vm1, %v104_v3 }
  0xaa   :  { %121 = vst.msk [vmem:[%s269_s3 + $0x18] sm:$0xff] %vm117_vm1, %v108_v4 }
  0xac   :  { %v160_v5 = vpop.eup %159 }
  0xad   :  { %v162_v6 = vpop.eup %161  ;;  %v112_v7 = vmul.f32 0.6931472, %v160_v5 }
  0xae   :  { %v116_v8 = vmul.f32 0.6931472, %v162_v6 }
  0xaf   :  { %123 = vst.msk [vmem:[%s269_s3 + $0x28] sm:$0xff] %vm117_vm1, %v112_v7 }
  0xb0   :  { %125 = vst.msk [vmem:[%s269_s3 + $0x38] sm:$0xff] %vm117_vm1, %v116_v8 }

// kernel: speech2text_forward.15
= control target key start
LH: loop header
LB: loop body
LE: loop exit
PB: predicated region body
PF: predicated region fallthrough
CT: control target
= control target key end

     0   :  { %vm34_vm0 = vcmask 392192   ;;  %s274_s1 = inlined_call_operand.vmem [shape: f32[48,64], index: 1, kind: input, shape index: {}]   ;;  %s275_s2 = inlined_call_operand.vmem [shape: f32[1,64], index: 2, kind: input, shape index: {}]   ;;  %s276_s0 = inlined_call_operand.vmem [shape: f32[32,48], index: 0, kind: input, shape index: {}]   ;;  %s277_s3 = inlined_call_operand.vmem [shape: f32[32,32], index: 3, kind: output, shape index: {}]  }
   0x1   :  { %v23_v0 = vld [vmem:[%s274_s1 + $0x20] sm:$0xff]  ;;  %v24_v1 = vld [vmem:[%s274_s1 + $0x28] sm:$0xff]  ;;  %v21_v2 = vld [vmem:[%s274_s1 + $0x10] sm:$0xff] }
   0x2   :  { %v29_v3 = vpack.c.bf16 %v24_v1, %v23_v0  ;;  %v22_v4 = vld [vmem:[%s274_s1 + $0x18] sm:$0xff]  ;;  %v19_v6 = vld [vmem:[%s274_s1] sm:$0xff]  ;;  %v20_v7 = vld [vmem:[%s274_s1 + $0x8] sm:$0xff] }
   0x3   :  { %v28_v5 = vpack.c.bf16 %v22_v4, %v21_v2  ;;  %v15_v8 = vld [vmem:[%s276_s0] sm:$0xff]  ;;  %v27_v9 = vpack.c.bf16 %v20_v7, %v19_v6  ;;  %v16_v10 = vld [vmem:[%s276_s0 + $0x8] sm:$0xff]  ;;  %v17_v11 = vld [vmem:[%s276_s0 + $0x10] sm:$0xff] }
   0x4   :  { %46 = vmatpush.bf16.msra.mxu0 %v29_v3  ;;  %171 = vmatpush.bf16.msra.mxu1 %v29_v3  ;;  %v18_v12 = vld [vmem:[%s276_s0 + $0x18] sm:$0xff]  ;;  %v25_v13 = vpack.c.bf16 %v16_v10, %v15_v8  ;;  %v175_v15 = vld [vmem:[%s275_s2] ss:$0 sm:$0xff]  ;;  %s192_s0 = smov 96  }
   0x5   :  { %v26_v14 = vpack.c.bf16 %v18_v12, %v17_v11 }
   0x8   :  { %47 = vmatpush.bf16.msra.mxu0 %v28_v5  ;;  %172 = vmatpush.bf16.msra.mxu1 %v28_v5 }
   0xc   :  { %48 = vmatpush.bf16.msra.mxu0 %v27_v9  ;;  %173 = vmatpush.bf16.msra.mxu1 %v27_v9 }
   0xf   :  { %165 = vmatmul.msk.bf16.vlgmr.msra.gmra.mxu0 %vm34_vm0, %v25_v13  ;;  %166 = vmatmul.msk.bf16.vlgmr.msra.gmra.mxu1 %vm34_vm0, %v26_v14 }
  0x8c   :  { %v50_v16 = vpop.f32.mrf.mxu0  ;;  %v55_v17 = vpop.f32.mrf.mxu1 }
  0x8d   :  { %v246_v18 = vadd.f32 %v175_v15, %v50_v16  ;;  %v248_v19 = vadd.f32 %v175_v15, %v55_v17 }
  0x8f   :  { %v167_v20 = vmul.f32 -1.442695, %v246_v18  ;;  %v169_v21 = vmul.f32 -1.442695, %v248_v19 }
  0x91   :  { %176 = vpow2.f32 %v167_v20 }
  0x92   :  { %178 = vpow2.f32 %v169_v21 }
  0x94   :  { %v52_v22 = vpop.f32.mrf.mxu0  ;;  %v57_v23 = vpop.f32.mrf.mxu1 }
  0x95   :  { %v252_v24 = vadd.f32 %v175_v15, %v52_v22  ;;  %v254_v25 = vadd.f32 %v175_v15, %v57_v23 }
  0x97   :  { %v177_v26 = vpop.eup %176  ;;  %v168_v27 = vmul.f32 -1.442695, %v252_v24  ;;  %v170_v30 = vmul.f32 -1.442695, %v254_v25 }
  0x98   :  { %v179_v28 = vpop.eup %178  ;;  %v72_v29 = vadd.f32 1.0, %v177_v26 }
  0x99   :  { %v74_v31 = vadd.f32 1.0, %v179_v28  ;;  %180 = vpow2.f32 %v168_v27 }
  0x9a   :  { %182 = vrcp.f32 %v72_v29  ;;  %v85_v42 = vand.u32 2147483647, %v72_v29  ;;  %v87_v43 = vand.u32 2147483648, %v72_v29  ;;  %vm81_vm3 = vweird.f32 %v72_v29 }
  0x9b   :  { %184 = vrcp.f32 %v74_v31  ;;  %v117_v44 = vand.u32 2147483648, %v74_v31  ;;  %v115_v47 = vand.u32 2147483647, %v74_v31  ;;  %vm111_vm4 = vweird.f32 %v74_v31 }
  0x9c   :  { %186 = vpow2.f32 %v170_v30  ;;  %v88_v51 = vor.u32 1.1754944e-38, %v87_v43  ;;  %vm86_vm7 = vcmp.eq.f32.partialorder %v85_v42, 8.507059e+37 }
  0x9d   :  { %v118_v52 = vor.u32 1.1754944e-38, %v117_v44  ;;  %vm116_vm8 = vcmp.eq.f32.partialorder %v115_v47, 8.507059e+37 }
  0x9f   :  { %v181_v32 = vpop.eup %180 }
  0xa0   :  { %v183_v33 = vpop.eup %182  ;;  %v73_v34 = vadd.f32 1.0, %v181_v32 }
  0xa1   :  { %v185_v35 = vpop.eup %184  ;;  %v77_v36 = vmul.f32 %v183_v33, %v72_v29  ;;  %vm82_vm1 = vweird.f32 %v183_v33 }
  0xa2   :  { %v187_v37 = vpop.eup %186  ;;  %188 = vrcp.f32 %v73_v34  ;;  %v107_v38 = vmul.f32 %v185_v35, %v74_v31  ;;  %vm112_vm2 = vweird.f32 %v185_v35  ;;  %vm83_vm5 = vmor %vm81_vm3, %vm82_vm1  ;;  %v102_v61 = vand.u32 2147483648, %v73_v34 }
  0xa3   :  { %v75_v39 = vadd.f32 1.0, %v187_v37  ;;  %v78_v40 = vsub.f32 1.0, %v77_v36  ;;  %vm113_vm6 = vmor %vm111_vm4, %vm112_vm2  ;;  %v100_v63 = vand.u32 2147483647, %v73_v34  ;;  %vm96_vm10 = vweird.f32 %v73_v34 }
  0xa4   :  { %v108_v41 = vsub.f32 1.0, %v107_v38  ;;  %v103_v5 = vor.u32 1.1754944e-38, %v102_v61  ;;  %vm156_vm1 = vcmask 261120  }
  0xa5   :  { %190 = vrcp.f32 %v75_v39  ;;  %v79_v45 = vmul.f32 %v183_v33, %v78_v40  ;;  %v132_v1 = vand.u32 2147483648, %v75_v39  ;;  %v130_v4 = vand.u32 2147483647, %v75_v39 }
  0xa6   :  { %v109_v46 = vmul.f32 %v185_v35, %v108_v41  ;;  %vm101_vm13 = vcmp.eq.f32.partialorder %v100_v63, 8.507059e+37  ;;  %vm126_vm14 = vweird.f32 %v75_v39 }
  0xa7   :  { %v80_v48 = vadd.f32 %v183_v33, %v79_v45  ;;  %v133_v9 = vor.u32 1.1754944e-38, %v132_v1  ;;  %vm131_vm0 = vcmp.eq.f32.partialorder %v130_v4, 8.507059e+37 }
  0xa8   :  { %v189_v49 = vpop.eup %188  ;;  %v110_v50 = vadd.f32 %v185_v35, %v109_v46 }
  0xa9   :  { %v84_v53 = vsel %vm83_vm5, %v183_v33, %v80_v48  ;;  %v92_v54 = vmul.f32 %v189_v49, %v73_v34  ;;  %vm97_vm9 = vweird.f32 %v189_v49 }
  0xaa   :  { %v114_v55 = vsel %vm113_vm6, %v185_v35, %v110_v50  ;;  %v89_v56 = vsel %vm86_vm7, %v88_v51, %v84_v53  ;;  %vm98_vm12 = vmor %vm96_vm10, %vm97_vm9 }
  0xab   :  { %v191_v57 = vpop.eup %190  ;;  %v119_v58 = vsel %vm116_vm8, %v118_v52, %v114_v55  ;;  %140 = vrot.lane.b32.xlu0 %v89_v56, %s192_s0  ;;  %v93_v59 = vsub.f32 1.0, %v92_v54 }
  0xac   :  { %144 = vrot.lane.b32.xlu1 %v119_v58, %s192_s0  ;;  %v122_v60 = vmul.f32 %v191_v57, %v75_v39  ;;  %vm127_vm11 = vweird.f32 %v191_v57 }
  0xad   :  { %v94_v62 = vmul.f32 %v189_v49, %v93_v59  ;;  %vm128_vm15 = vmor %vm126_vm14, %vm127_vm11 }
  0xae   :  { %v123_v0 = vsub.f32 1.0, %v122_v60 }
  0xaf   :  { %v95_v2 = vadd.f32 %v189_v49, %v94_v62 }
  0xb0   :  { %v124_v3 = vmul.f32 %v191_v57, %v123_v0 }
  0xb1   :  { %v99_v6 = vsel %vm98_vm12, %v189_v49, %v95_v2 }
  0xb2   :  { %v125_v7 = vadd.f32 %v191_v57, %v124_v3  ;;  %v104_v8 = vsel %vm101_vm13, %v103_v5, %v99_v6 }
  0xb3   :  { %142 = vrot.lane.b32.xlu0 %v104_v8, %s192_s0 }
  0xb4   :  { %v129_v10 = vsel %vm128_vm15, %v191_v57, %v125_v7 }
  0xb5   :  { %v134_v11 = vsel %vm131_vm0, %v133_v9, %v129_v10 }
  0xb6   :  { %146 = vrot.lane.b32.xlu1 %v134_v11, %s192_s0 }
 0x11d   :  { %v141_v12 = vpop.permute.xlu0 %140 }
 0x11e   :  { %v145_v13 = vpop.permute.xlu1 %144  ;;  %v152_v14 = vmul.f32 %v141_v12, %v246_v18 }
 0x11f   :  { %v154_v15 = vmul.f32 %v145_v13, %v248_v19 }
 0x120   :  { %157 = vst.msk [vmem:[%s277_s3] sm:$0xff] %vm156_vm1, %v152_v14 }
 0x121   :  { %159 = vst.msk [vmem:[%s277_s3 + $0x10] sm:$0xff] %vm156_vm1, %v154_v15 }
 0x125   :  { %v143_v16 = vpop.permute.xlu0 %142 }
 0x126   :  { %v153_v17 = vmul.f32 %v143_v16, %v252_v24 }
 0x128   :  { %v147_v20 = vpop.permute.xlu1 %146  ;;  %158 = vst.msk [vmem:[%s277_s3 + $0x8] sm:$0xff] %vm156_vm1, %v153_v17 }
 0x129   :  { %v155_v18 = vmul.f32 %v147_v20, %v254_v25 }
 0x12b   :  { %160 = vst.msk [vmem:[%s277_s3 + $0x18] sm:$0xff] %vm156_vm1, %v155_v18 }

// kernel: speech2text_forward.17
= control target key start
LH: loop header
LB: loop body
LE: loop exit
PB: predicated region body
PF: predicated region fallthrough
CT: control target
= control target key end

     0   :  { %vm25_vm0 = vcmask 261120   ;;  %v133_v4 = vmov 32.0   ;;  %vm115_vm8 = vcmask 785408   ;;  %s202_s0 = inlined_call_operand.vmem [shape: f32[16,32], index: 0, kind: input, shape index: {}]   ;;  %s203_s1 = inlined_call_operand.vmem [shape: f32[1,32], index: 1, kind: input, shape index: {}]   ;;  %s204_s2 = inlined_call_operand.vmem [shape: f32[1,32], index: 2, kind: input, shape index: {}]   ;;  %s205_s4 = inlined_call_operand.vmem [shape: f32[1,96], index: 4, kind: input, shape index: {}]   ;;  %s206_s3 = inlined_call_operand.vmem [shape: f32[32,96], index: 3, kind: input, shape index: {}]   ;;  %s207_s5 = inlined_call_operand.vmem [shape: f32[16,96], index: 5, kind: output, shape index: {}]  }
   0x1   :  { %v21_v0 = vld [vmem:[%s202_s0] sm:$0xff]  ;;  %v22_v2 = vld [vmem:[%s202_s0 + $0x8] sm:$0xff]  ;;  %127 = vrcp.f32 %v133_v4  ;;  %v89_v21 = vld [vmem:[%s206_s3 + $0x10] sm:$0xff] }
   0x2   :  { %v26_v1 = vsel %vm25_vm0, %v21_v0, 0.0  ;;  %v29_v3 = vsel %vm25_vm0, %v22_v2, 0.0  ;;  %v90_v22 = vld [vmem:[%s206_s3 + $0x18] sm:$0xff]  ;;  %v87_v24 = vld [vmem:[%s206_s3] sm:$0xff]  ;;  %v88_v25 = vld [vmem:[%s206_s3 + $0x8] sm:$0xff] }
   0x3   :  { %27 = vadd.xlane.f32.xlu0 %v26_v1  ;;  %v93_v23 = vpack.c.bf16 %v90_v22, %v89_v21  ;;  %v92_v27 = vpack.c.bf16 %v88_v25, %v87_v24  ;;  %v124_v46 = vld [vmem:[%s203_s1] ss:$0 sm:$0xff] }
   0x4   :  { %v125_v51 = vld [vmem:[%s204_s2] ss:$0 sm:$0xff] }
   0x5   :  { %107 = vmatpush.bf16.msra.mxu0 %v93_v23  ;;  %v126_v56 = vld [vmem:[%s205_s4] ss:$0 sm:$0xff] }
   0x7   :  { %v128_v5 = vpop.eup %127 }
   0x8   :  { %v33_v6 = vmul.f32 32.0, %v128_v5  ;;  %vm37_vm1 = vweird.f32 %v128_v5 }
   0x9   :  { %108 = vmatpush.bf16.msra.mxu0 %v92_v27 }
   0xa   :  { %v34_v7 = vsub.f32 1.0, %v33_v6 }
   0xb   :  { %30 = vadd.xlane.f32.xlu0 %v29_v3 }
   0xc   :  { %v35_v8 = vmul.f32 %v128_v5, %v34_v7 }
   0xe   :  { %v36_v9 = vadd.f32 %v128_v5, %v35_v8 }
  0x10   :  { %v38_v10 = vsel %vm37_vm1, %v128_v5, %v36_v9 }
  0x76   :  { %v28_v11 = vpop.xlane.xlu0 %27 }
  0x77   :  { %v39_v12 = vmul.f32 %v38_v10, %v28_v11 }
  0x79   :  { %v41_v13 = vsub.f32 %v21_v0, %v39_v12 }
  0x7b   :  { %v43_v14 = vmul.f32 %v41_v13, %v41_v13 }
  0x7d   :  { %v45_v15 = vsel %vm25_vm0, %v43_v14, 0.0 }
  0x7e   :  { %46 = vadd.xlane.f32.xlu1 %v45_v15  ;;  %v31_v16 = vpop.xlane.xlu0 %30 }
  0x7f   :  { %v40_v17 = vmul.f32 %v38_v10, %v31_v16 }
  0x81   :  { %v42_v18 = vsub.f32 %v22_v2, %v40_v17 }
  0x83   :  { %v44_v19 = vmul.f32 %v42_v18, %v42_v18 }
  0x85   :  { %v48_v20 = vsel %vm25_vm0, %v44_v19, 0.0 }
  0x86   :  { %49 = vadd.xlane.f32.xlu1 %v48_v20 }
  0xf1   :  { %v47_v26 = vpop.xlane.xlu1 %46 }
  0xf2   :  { %v51_v28 = vmul.f32 %v47_v26, %v38_v10 }
  0xf4   :  { %v53_v29 = vadd.f32 1e-05, %v51_v28 }
  0xf6   :  { %129 = vrsqrt.f32 %v53_v29  ;;  %vm61_vm3 = vweird.f32 %v53_v29 }
  0xf9   :  { %v50_v30 = vpop.xlane.xlu1 %49 }
  0xfa   :  { %v52_v31 = vmul.f32 %v50_v30, %v38_v10 }
  0xfc   :  { %v130_v32 = vpop.eup %129  ;;  %v54_v33 = vadd.f32 1e-05, %v52_v31 }
  0xfd   :  { %v56_v34 = vmul.f32 %v130_v32, %v53_v29  ;;  %vm62_vm2 = vweird.f32 %v130_v32 }
  0xfe   :  { %131 = vrsqrt.f32 %v54_v33  ;;  %vm63_vm4 = vmor %vm61_vm3, %vm62_vm2  ;;  %vm71_vm6 = vweird.f32 %v54_v33 }
  0xff   :  { %v57_v35 = vmul.f32 %v130_v32, %v56_v34 }
 0x101   :  { %v58_v36 = vmul.f32 0.5, %v57_v35 }
 0x103   :  { %v59_v37 = vsub.f32 1.5, %v58_v36 }
 0x104   :  { %v132_v38 = vpop.eup %131 }
 0x105   :  { %v60_v39 = vmul.f32 %v130_v32, %v59_v37  ;;  %v66_v40 = vmul.f32 %v132_v38, %v54_v33  ;;  %vm72_vm5 = vweird.f32 %v132_v38 }
 0x106   :  { %vm73_vm7 = vmor %vm71_vm6, %vm72_vm5 }
 0x107   :  { %v67_v41 = vmul.f32 %v132_v38, %v66_v40  ;;  %v64_v42 = vsel %vm63_vm4, %v130_v32, %v60_v39 }
 0x108   :  { %v75_v45 = vmul.f32 %v64_v42, %v41_v13 }
 0x109   :  { %v68_v43 = vmul.f32 0.5, %v67_v41 }
 0x10a   :  { %v80_v50 = vmul.f32 %v124_v46, %v75_v45 }
 0x10b   :  { %v69_v44 = vsub.f32 1.5, %v68_v43 }
 0x10c   :  { %v85_v53 = vadd.f32 %v125_v51, %v80_v50 }
 0x10d   :  { %v70_v47 = vmul.f32 %v132_v38, %v69_v44 }
 0x10f   :  { %v74_v48 = vsel %vm73_vm7, %v132_v38, %v70_v47 }
 0x110   :  { %v76_v49 = vmul.f32 %v74_v48, %v42_v18 }
 0x112   :  { %v81_v52 = vmul.f32 %v124_v46, %v76_v49 }
 0x114   :  { %v86_v54 = vadd.f32 %v125_v51, %v81_v52 }
 0x116   :  { %v91_v55 = vpack.c.bf16 %v86_v54, %v85_v53 }
 0x118   :  { %122 = vmatmul.msk.bf16.vlgmr.msra.gmra.mxu0 %vm25_vm0, %v91_v55 }
 0x195   :  { %v110_v57 = vpop.f32.mrf.mxu0 }
 0x196   :  { %v111_v58 = vadd.f32 %v126_v56, %v110_v57 }
 0x198   :  { %116 = vst.msk [vmem:[%s207_s5] sm:$0xff] %vm115_vm8, %v111_v58 }
 0x19d   :  { %v112_v59 = vpop.f32.mrf.mxu0 }
 0x19e   :  { %v113_v60 = vadd.f32 %v126_v56, %v112_v59 }
 0x1a0   :  { %117 = vst.msk [vmem:[%s207_s5 + $0x8] sm:$0xff] %vm115_vm8, %v113_v60 }

// kernel: speech2text_forward.16
= control target key start
LH: loop header
LB: loop body
LE: loop exit
PB: predicated region body
PF: predicated region fallthrough
CT: control target
= control target key end

     0   :  { %vm40_vm0 = vcmask 785408   ;;  %vm106_vm9 = vcmask 261120   ;;  %s198_s1 = inlined_call_operand.vmem [shape: f32[96,64], index: 1, kind: input, shape index: {}]   ;;  %s199_s2 = inlined_call_operand.vmem [shape: f32[1,64], index: 2, kind: input, shape index: {}]   ;;  %s200_s0 = inlined_call_operand.vmem [shape: f32[16,96], index: 0, kind: input, shape index: {}]   ;;  %s201_s3 = inlined_call_operand.vmem [shape: f32[16,32], index: 3, kind: output, shape index: {}]  }
   0x1   :  { %v27_v0 = vld [vmem:[%s198_s1 + $0x50] sm:$0xff]  ;;  %v28_v1 = vld [vmem:[%s198_s1 + $0x58] sm:$0xff]  ;;  %v25_v2 = vld [vmem:[%s198_s1 + $0x40] sm:$0xff] }
   0x2   :  { %v35_v3 = vpack.c.bf16 %v28_v1, %v27_v0  ;;  %v26_v4 = vld [vmem:[%s198_s1 + $0x48] sm:$0xff]  ;;  %v23_v6 = vld [vmem:[%s198_s1 + $0x30] sm:$0xff]  ;;  %v24_v7 = vld [vmem:[%s198_s1 + $0x38] sm:$0xff] }
   0x3   :  { %v34_v5 = vpack.c.bf16 %v26_v4, %v25_v2  ;;  %v33_v8 = vpack.c.bf16 %v24_v7, %v23_v6  ;;  %v21_v9 = vld [vmem:[%s198_s1 + $0x20] sm:$0xff]  ;;  %v22_v10 = vld [vmem:[%s198_s1 + $0x28] sm:$0xff]  ;;  %v19_v12 = vld [vmem:[%s198_s1 + $0x10] sm:$0xff] }
   0x4   :  { %46 = vmatpush.bf16.msra.mxu0 %v35_v3  ;;  %v32_v11 = vpack.c.bf16 %v22_v10, %v21_v9  ;;  %v20_v13 = vld [vmem:[%s198_s1 + $0x18] sm:$0xff]  ;;  %v17_v15 = vld [vmem:[%s198_s1] sm:$0xff]  ;;  %v18_v16 = vld [vmem:[%s198_s1 + $0x8] sm:$0xff] }
   0x5   :  { %v31_v14 = vpack.c.bf16 %v20_v13, %v19_v12  ;;  %v30_v17 = vpack.c.bf16 %v18_v16, %v17_v15  ;;  %v15_v18 = vld [vmem:[%s200_s0] sm:$0xff]  ;;  %v16_v19 = vld [vmem:[%s200_s0 + $0x8] sm:$0xff]  ;;  %s126_s0 = smov 96  }
   0x6   :  { %v29_v20 = vpack.c.bf16 %v16_v19, %v15_v18  ;;  %v117_v21 = vld [vmem:[%s199_s2] ss:$0 sm:$0xff] }
   0x8   :  { %47 = vmatpush.bf16.msra.mxu0 %v34_v5 }
   0xc   :  { %48 = vmatpush.bf16.msra.mxu0 %v33_v8 }
  0x10   :  { %49 = vmatpush.bf16.msra.mxu0 %v32_v11 }
  0x14   :  { %50 = vmatpush.bf16.msra.mxu0 %v31_v14 }
  0x18   :  { %51 = vmatpush.bf16.msra.mxu0 %v30_v17 }
  0x1b   :  { %113 = vmatmul.msk.bf16.vlgmr.msra.gmra.mxu0 %vm40_vm0, %v29_v20 }
  0x98   :  { %v53_v22 = vpop.f32.mrf.mxu0 }
  0x99   :  { %v54_v23 = vadd.f32 %v117_v21, %v53_v22 }
  0x9b   :  { %v114_v24 = vmul.f32 -1.442695, %v54_v23 }
  0x9d   :  { %118 = vpow2.f32 %v114_v24 }
  0xa0   :  { %v55_v25 = vpop.f32.mrf.mxu0 }
  0xa1   :  { %v56_v26 = vadd.f32 %v117_v21, %v55_v25 }
  0xa3   :  { %v119_v27 = vpop.eup %118  ;;  %v115_v28 = vmul.f32 -1.442695, %v56_v26 }
  0xa4   :  { %v64_v29 = vadd.f32 1.0, %v119_v27 }
  0xa5   :  { %120 = vpow2.f32 %v115_v28 }
  0xa6   :  { %122 = vrcp.f32 %v64_v29  ;;  %v77_v35 = vand.u32 2147483648, %v64_v29  ;;  %v75_v37 = vand.u32 2147483647, %v64_v29  ;;  %vm71_vm2 = vweird.f32 %v64_v29 }
  0xa8   :  { %v78_v40 = vor.u32 1.1754944e-38, %v77_v35  ;;  %vm76_vm4 = vcmp.eq.f32.partialorder %v75_v37, 8.507059e+37 }
  0xab   :  { %v121_v30 = vpop.eup %120 }
  0xac   :  { %v123_v31 = vpop.eup %122  ;;  %v65_v32 = vadd.f32 1.0, %v121_v30 }
  0xad   :  { %v67_v33 = vmul.f32 %v123_v31, %v64_v29  ;;  %vm72_vm1 = vweird.f32 %v123_v31 }
  0xae   :  { %124 = vrcp.f32 %v65_v32  ;;  %vm73_vm3 = vmor %vm71_vm2, %vm72_vm1  ;;  %v92_v45 = vand.u32 2147483648, %v65_v32  ;;  %v90_v47 = vand.u32 2147483647, %v65_v32  ;;  %vm86_vm6 = vweird.f32 %v65_v32 }
  0xaf   :  { %v68_v34 = vsub.f32 1.0, %v67_v33 }
  0xb0   :  { %v93_v49 = vor.u32 1.1754944e-38, %v92_v45  ;;  %vm91_vm8 = vcmp.eq.f32.partialorder %v90_v47, 8.507059e+37 }
  0xb1   :  { %v69_v36 = vmul.f32 %v123_v31, %v68_v34 }
  0xb3   :  { %v70_v38 = vadd.f32 %v123_v31, %v69_v36 }
  0xb4   :  { %v125_v39 = vpop.eup %124 }
  0xb5   :  { %v74_v41 = vsel %vm73_vm3, %v123_v31, %v70_v38  ;;  %v82_v42 = vmul.f32 %v125_v39, %v65_v32  ;;  %vm87_vm5 = vweird.f32 %v125_v39 }
  0xb6   :  { %v79_v43 = vsel %vm76_vm4, %v78_v40, %v74_v41  ;;  %vm88_vm7 = vmor %vm86_vm6, %vm87_vm5 }
  0xb7   :  { %98 = vrot.lane.b32.xlu0 %v79_v43, %s126_s0  ;;  %v83_v44 = vsub.f32 1.0, %v82_v42 }
  0xb9   :  { %v84_v46 = vmul.f32 %v125_v39, %v83_v44 }
  0xbb   :  { %v85_v48 = vadd.f32 %v125_v39, %v84_v46 }
  0xbd   :  { %v89_v50 = vsel %vm88_vm7, %v125_v39, %v85_v48 }
  0xbe   :  { %v94_v51 = vsel %vm91_vm8, %v93_v49, %v89_v50 }
  0xbf   :  { %100 = vrot.lane.b32.xlu0 %v94_v51, %s126_s0 }
 0x129   :  { %v99_v52 = vpop.permute.xlu0 %98 }
 0x12a   :  { %v104_v53 = vmul.f32 %v99_v52, %v54_v23 }
 0x12c   :  { %107 = vst.msk [vmem:[%s201_s3] sm:$0xff] %vm106_vm9, %v104_v53 }
 0x131   :  { %v101_v54 = vpop.permute.xlu0 %100 }
 0x132   :  { %v105_v55 = vmul.f32 %v101_v54, %v56_v26 }
 0x134   :  { %108 = vst.msk [vmem:[%s201_s3 + $0x8] sm:$0xff] %vm106_vm9, %v105_v55 }

// kernel: speech2text_forward.18
= control target key start
LH: loop header
LB: loop body
LE: loop exit
PB: predicated region body
PF: predicated region fallthrough
CT: control target
= control target key end

     0   :  { %vm55_vm0 = vcmask 64512   ;;  %vm323_vm1 = vcmask 1043456   ;;  %s737_s1 = inlined_call_operand.vmem [shape: f32[8,8,8], index: 1, kind: input, shape index: {}]   ;;  %s738_s0 = inlined_call_operand.vmem [shape: f32[8,8,8], index: 0, kind: input, shape index: {}]   ;;  %s739_s2 = inlined_call_operand.vmem [shape: f32[8,8,8], index: 2, kind: input, shape index: {}]   ;;  %s740_s3 = inlined_call_operand.vmem [shape: f32[8,8,8], index: 3, kind: output, shape index: {}]  }
   0x1   :  { %v23_v0 = vld [vmem:[%s737_s1] sm:$0xff]  ;;  %v24_v1 = vld [vmem:[%s737_s1 + $0x8] sm:$0xff]  ;;  %v25_v2 = vld [vmem:[%s737_s1 + $0x10] sm:$0xff] }
   0x2   :  { %v47_v3 = vpack.c.bf16 %v23_v0, %v23_v0  ;;  %v48_v4 = vpack.c.bf16 %v24_v1, %v24_v1  ;;  %v49_v5 = vpack.c.bf16 %v25_v2, %v25_v2  ;;  %v26_v6 = vld [vmem:[%s737_s1 + $0x18] sm:$0xff]  ;;  %v29_v8 = vld [vmem:[%s737_s1 + $0x30] sm:$0xff]  ;;  %v28_v13 = vld [vmem:[%s737_s1 + $0x28] sm:$0xff] }
   0x3   :  { %v50_v7 = vpack.c.bf16 %v26_v6, %v26_v6  ;;  %v30_v12 = vld [vmem:[%s737_s1 + $0x38] sm:$0xff]  ;;  %v27_v14 = vld [vmem:[%s737_s1 + $0x20] sm:$0xff]  ;;  %v16_v17 = vld [vmem:[%s738_s0 + $0x8] sm:$0xff]  ;;  %v53_v18 = vpack.c.bf16 %v29_v8, %v29_v8  ;;  %v52_v22 = vpack.c.bf16 %v28_v13, %v28_v13 }
   0x4   :  { %v60_v9 = vsel %vm55_vm0, %v47_v3, 0  ;;  %v79_v10 = vsel %vm55_vm0, %v48_v4, 0  ;;  %v98_v11 = vsel %vm55_vm0, %v49_v5, 0  ;;  %v15_v16 = vld [vmem:[%s738_s0] sm:$0xff]  ;;  %v54_v19 = vpack.c.bf16 %v30_v12, %v30_v12  ;;  %v17_v20 = vld [vmem:[%s738_s0 + $0x10] sm:$0xff]  ;;  %v18_v21 = vld [vmem:[%s738_s0 + $0x18] sm:$0xff] }
   0x5   :  { %69 = vmatpush.bf16.xpose.msra.mxu0 %v60_v9  ;;  %88 = vmatpush.bf16.xpose.msra.mxu1 %v79_v10  ;;  %v117_v15 = vsel %vm55_vm0, %v50_v7, 0  ;;  %v51_v23 = vpack.c.bf16 %v27_v14, %v27_v14  ;;  %v174_v24 = vsel %vm55_vm0, %v53_v18, 0  ;;  %v39_v26 = vpack.c.bf16 %v15_v16, %v15_v16  ;;  %v20_v32 = vld [vmem:[%s738_s0 + $0x28] sm:$0xff]  ;;  %v19_v33 = vld [vmem:[%s738_s0 + $0x20] sm:$0xff]  ;;  %v21_v34 = vld [vmem:[%s738_s0 + $0x30] sm:$0xff] }
   0x6   :  { %107 = vmatpush.bf16.xpose.msra.mxu2 %v98_v11  ;;  %126 = vmatpush.bf16.xpose.msra.mxu3 %v117_v15  ;;  %v193_v25 = vsel %vm55_vm0, %v54_v19, 0  ;;  %v40_v27 = vpack.c.bf16 %v16_v17, %v16_v17  ;;  %v155_v28 = vsel %vm55_vm0, %v52_v22, 0  ;;  %v41_v30 = vpack.c.bf16 %v17_v20, %v17_v20  ;;  %v22_v35 = vld [vmem:[%s738_s0 + $0x38] sm:$0xff] }
   0x7   :  { %v136_v29 = vsel %vm55_vm0, %v51_v23, 0  ;;  %v42_v31 = vpack.c.bf16 %v18_v21, %v18_v21  ;;  %v44_v36 = vpack.c.bf16 %v20_v32, %v20_v32  ;;  %v43_v37 = vpack.c.bf16 %v19_v33, %v19_v33 }
   0x8   :  { %v45_v38 = vpack.c.bf16 %v21_v34, %v21_v34  ;;  %v46_v39 = vpack.c.bf16 %v22_v35, %v22_v35 }
   0xc   :  { %485 = vmatmul.msk.bf16.vlgmr.msra.gmra.mxu0 %vm55_vm0, %v39_v26  ;;  %486 = vmatmul.msk.bf16.vlgmr.msra.gmra.mxu1 %vm55_vm0, %v40_v27 }
   0xd   :  { %164 = vmatpush.bf16.xpose.msrb.mxu1 %v155_v28  ;;  %145 = vmatpush.bf16.xpose.msrb.mxu0 %v136_v29 }
   0xe   :  { %183 = vmatpush.bf16.xpose.msrb.mxu2 %v174_v24  ;;  %202 = vmatpush.bf16.xpose.msrb.mxu3 %v193_v25 }
   0xf   :  { %487 = vmatmul.msk.bf16.vlgmr.msra.gmra.mxu2 %vm55_vm0, %v41_v30  ;;  %488 = vmatmul.msk.bf16.vlgmr.msra.gmra.mxu3 %vm55_vm0, %v42_v31 }
  0x1c   :  { %490 = vmatmul.msk.bf16.vlgmr.msrb.gmra.mxu1 %vm55_vm0, %v44_v36  ;;  %489 = vmatmul.msk.bf16.vlgmr.msrb.gmra.mxu0 %vm55_vm0, %v43_v37 }
  0x1f   :  { %491 = vmatmul.msk.bf16.vlgmr.msrb.gmra.mxu2 %vm55_vm0, %v45_v38  ;;  %492 = vmatmul.msk.bf16.vlgmr.msrb.gmra.mxu3 %vm55_vm0, %v46_v39 }
  0x89   :  { %v71_v40 = vpop.f32.mrf.mxu0  ;;  %v90_v41 = vpop.f32.mrf.mxu1 }
  0x8a   :  { %v208_v42 = vmul.f32 0.35355338, %v71_v40  ;;  %v209_v44 = vmul.f32 0.35355338, %v90_v41 }
  0x8c   :  { %v216_v43 = vsel %vm55_vm0, %v208_v42, -inf  ;;  %v219_v50 = vsel %vm55_vm0, %v209_v44, -inf }
  0x8d   :  { %217 = vmax.xlane.f32.xlu1 %v216_v43 }
  0x91   :  { %v92_v48 = vpop.f32.mrf.mxu1  ;;  %v73_v49 = vpop.f32.mrf.mxu0 }
  0x92   :  { %v109_v45 = vpop.f32.mrf.mxu2  ;;  %v128_v46 = vpop.f32.mrf.mxu3  ;;  %v31_v48 = vld [vmem:[%s739_s2] sm:$0xff] }
  0x93   :  { %v210_v47 = vmul.f32 0.35355338, %v109_v45  ;;  %v211_v52 = vmul.f32 0.35355338, %v128_v46  ;;  %v312_v49 = vpack.c.bf16 %v31_v48, %v31_v48 }
  0x95   :  { %v222_v51 = vsel %vm55_vm0, %v210_v47, -inf  ;;  %220 = vmax.xlane.f32.xlu1 %v219_v50  ;;  %v225_v56 = vsel %vm55_vm0, %v211_v52, -inf  ;;  %v325_v50 = vsel %vm323_vm1, %v312_v49, 0 }
  0x96   :  { %223 = vmax.xlane.f32.xlu0 %v222_v51  ;;  %334 = vmatpush.bf16.msra.mxu0 %v325_v50  ;;  %v33_v51 = vld [vmem:[%s739_s2 + $0x10] sm:$0xff] }
  0x99   :  { %v166_v55 = vpop.f32.mrf.mxu1  ;;  %v147_v57 = vpop.f32.mrf.mxu0 }
  0x9a   :  { %v111_v53 = vpop.f32.mrf.mxu2  ;;  %v130_v54 = vpop.f32.mrf.mxu3  ;;  %v213_v58 = vmul.f32 0.35355338, %v166_v55  ;;  %v212_v60 = vmul.f32 0.35355338, %v147_v57  ;;  %v32_v57 = vld [vmem:[%s739_s2 + $0x8] sm:$0xff] }
  0x9b   :  { %v34_v54 = vld [vmem:[%s739_s2 + $0x18] sm:$0xff] }
  0x9c   :  { %v231_v59 = vsel %vm55_vm0, %v213_v58, -inf  ;;  %v228_v0 = vsel %vm55_vm0, %v212_v60, -inf  ;;  %v315_v55 = vpack.c.bf16 %v34_v54, %v34_v54 }
  0x9d   :  { %232 = vmax.xlane.f32.xlu1 %v231_v59 }
  0x9e   :  { %226 = vmax.xlane.f32.xlu0 %v225_v56  ;;  %v382_v56 = vsel %vm323_vm1, %v315_v55, 0 }
  0x9f   :  { %391 = vmatpush.bf16.msra.mxu3 %v382_v56 }
  0xa1   :  { %v149_v1 = vpop.f32.mrf.mxu0  ;;  %v168_v2 = vpop.f32.mrf.mxu1 }
  0xa2   :  { %v185_v61 = vpop.f32.mrf.mxu2  ;;  %v204_v62 = vpop.f32.mrf.mxu3 }
  0xa3   :  { %v214_v63 = vmul.f32 0.35355338, %v185_v61  ;;  %v215_v4 = vmul.f32 0.35355338, %v204_v62  ;;  %v35_v61 = vld [vmem:[%s739_s2 + $0x20] sm:$0xff] }
  0xa5   :  { %v234_v3 = vsel %vm55_vm0, %v214_v63, -inf  ;;  %v237_v7 = vsel %vm55_vm0, %v215_v4, -inf }
  0xa6   :  { %235 = vmax.xlane.f32.xlu2 %v234_v3  ;;  %229 = vmax.xlane.f32.xlu0 %v228_v0  ;;  %v38_v3 = vld [vmem:[%s739_s2 + $0x38] sm:$0xff] }
  0xaa   :  { %v187_v5 = vpop.f32.mrf.mxu2  ;;  %v206_v6 = vpop.f32.mrf.mxu3 }
  0xab   :  { %v36_v6 = vld [vmem:[%s739_s2 + $0x28] sm:$0xff] }
  0xae   :  { %238 = vmax.xlane.f32.xlu2 %v237_v7  ;;  %v317_v7 = vpack.c.bf16 %v36_v6, %v36_v6 }
 0x100   :  { %v218_v8 = vpop.xlane.xlu1 %217 }
 0x101   :  { %v240_v9 = vsub.f32 %v208_v42, %v218_v8 }
 0x103   :  { %v248_v10 = vmul.f32 1.442695, %v240_v9 }
 0x105   :  { %501 = vpow2.f32 %v248_v10 }
 0x108   :  { %v221_v13 = vpop.xlane.xlu1 %220 }
 0x109   :  { %v224_v11 = vpop.xlane.xlu0 %223  ;;  %v241_v15 = vsub.f32 %v209_v44, %v221_v13 }
 0x10a   :  { %v242_v12 = vsub.f32 %v210_v47, %v224_v11  ;;  %v420_v11 = vsel %vm323_vm1, %v317_v7, 0 }
 0x10b   :  { %v625_v16 = vpop.eup %501  ;;  %v250_v18 = vmul.f32 1.442695, %v241_v15 }
 0x10c   :  { %v252_v14 = vmul.f32 1.442695, %v242_v12  ;;  %v264_v17 = vsel %vm55_vm0, %v625_v16, 0.0 }
 0x10d   :  { %265 = vadd.xlane.f32.xlu1 %v264_v17 }
 0x10e   :  { %503 = vpow2.f32 %v252_v14 }
 0x10f   :  { %505 = vpow2.f32 %v250_v18 }
 0x110   :  { %v233_v24 = vpop.xlane.xlu1 %232 }
 0x111   :  { %v227_v19 = vpop.xlane.xlu0 %226  ;;  %v245_v31 = vsub.f32 %v213_v58, %v233_v24  ;;  %v313_v58 = vpack.c.bf16 %v32_v57, %v32_v57 }
 0x112   :  { %v243_v20 = vsub.f32 %v211_v52, %v227_v19  ;;  %v314_v52 = vpack.c.bf16 %v33_v51, %v33_v51 }
 0x113   :  { %v258_v36 = vmul.f32 1.442695, %v245_v31  ;;  %v344_v59 = vsel %vm323_vm1, %v313_v58, 0 }
 0x114   :  { %v629_v21 = vpop.eup %503  ;;  %v254_v22 = vmul.f32 1.442695, %v243_v20  ;;  %v363_v53 = vsel %vm323_vm1, %v314_v52, 0  ;;  %353 = vmatpush.bf16.msra.mxu1 %v344_v59 }
 0x115   :  { %v270_v23 = vsel %vm55_vm0, %v629_v21, 0.0  ;;  %v633_v27 = vpop.eup %505  ;;  %372 = vmatpush.bf16.msra.mxu2 %v363_v53 }
 0x116   :  { %507 = vpow2.f32 %v254_v22  ;;  %271 = vadd.xlane.f32.xlu2 %v270_v23  ;;  %v267_v34 = vsel %vm55_vm0, %v633_v27, 0.0 }
 0x118   :  { %429 = vmatpush.bf16.msrb.mxu1 %v420_v11 }
 0x119   :  { %v236_v25 = vpop.xlane.xlu2 %235  ;;  %v230_v26 = vpop.xlane.xlu0 %229 }
 0x11a   :  { %v246_v28 = vsub.f32 %v214_v63, %v236_v25  ;;  %v244_v29 = vsub.f32 %v212_v60, %v230_v26  ;;  %v37_v60 = vld [vmem:[%s739_s2 + $0x30] sm:$0xff]  ;;  %v316_v63 = vpack.c.bf16 %v35_v61, %v35_v61 }
 0x11b   :  { %v318_v62 = vpack.c.bf16 %v37_v60, %v37_v60 }
 0x11c   :  { %v635_v30 = vpop.eup %507  ;;  %v260_v32 = vmul.f32 1.442695, %v246_v28  ;;  %v256_v33 = vmul.f32 1.442695, %v244_v29  ;;  %v401_v2 = vsel %vm323_vm1, %v316_v63, 0 }
 0x11d   :  { %v273_v35 = vsel %vm55_vm0, %v635_v30, 0.0  ;;  %v439_v1 = vsel %vm323_vm1, %v318_v62, 0  ;;  %410 = vmatpush.bf16.msrb.mxu0 %v401_v2 }
 0x11e   :  { %509 = vpow2.f32 %v260_v32  ;;  %268 = vadd.xlane.f32.xlu2 %v267_v34  ;;  %274 = vadd.xlane.f32.xlu0 %v273_v35 }
 0x11f   :  { %511 = vpow2.f32 %v256_v33  ;;  %448 = vmatpush.bf16.msrb.mxu2 %v439_v1 }
 0x120   :  { %513 = vpow2.f32 %v258_v36 }
 0x121   :  { %v239_v37 = vpop.xlane.xlu2 %238 }
 0x122   :  { %v247_v38 = vsub.f32 %v215_v4, %v239_v37  ;;  %v319_v4 = vpack.c.bf16 %v38_v3, %v38_v3 }
 0x124   :  { %v641_v39 = vpop.eup %509  ;;  %v262_v40 = vmul.f32 1.442695, %v247_v38  ;;  %v458_v5 = vsel %vm323_vm1, %v319_v4, 0 }
 0x125   :  { %v643_v41 = vpop.eup %511  ;;  %v282_v42 = vsel %vm55_vm0, %v641_v39, 0.0  ;;  %467 = vmatpush.bf16.msrb.mxu3 %v458_v5 }
 0x126   :  { %515 = vpow2.f32 %v262_v40  ;;  %283 = vadd.xlane.f32.xlu0 %v282_v42  ;;  %v276_v43 = vsel %vm55_vm0, %v643_v41, 0.0  ;;  %v649_v44 = vpop.eup %513 }
 0x127   :  { %277 = vadd.xlane.f32.xlu2 %v276_v43  ;;  %v279_v47 = vsel %vm55_vm0, %v649_v44, 0.0 }
 0x12c   :  { %v651_v45 = vpop.eup %515 }
 0x12d   :  { %v285_v46 = vsel %vm55_vm0, %v651_v45, 0.0 }
 0x12e   :  { %286 = vadd.xlane.f32.xlu1 %v285_v46  ;;  %280 = vadd.xlane.f32.xlu0 %v279_v47 }
 0x180   :  { %v266_v0 = vpop.xlane.xlu1 %265 }
 0x181   :  { %517 = vrcp.f32 %v266_v0 }
 0x187   :  { %v518_v8 = vpop.eup %517 }
 0x188   :  { %v296_v10 = vmul.f32 %v518_v8, %v625_v16 }
 0x189   :  { %v272_v9 = vpop.xlane.xlu2 %271 }
 0x18a   :  { %519 = vrcp.f32 %v272_v9  ;;  %v304_v12 = vpack.c.bf16 %v296_v10, %v296_v10 }
 0x18c   :  { %493 = vmatmul.msk.bf16.vlgmr.msra.gmra.mxu0 %vm55_vm0, %v304_v12 }
 0x190   :  { %v520_v13 = vpop.eup %519 }
 0x191   :  { %v298_v14 = vmul.f32 %v520_v13, %v629_v21  ;;  %v269_v15 = vpop.xlane.xlu2 %268  ;;  %v275_v17 = vpop.xlane.xlu0 %274 }
 0x192   :  { %521 = vrcp.f32 %v269_v15 }
 0x193   :  { %v306_v18 = vpack.c.bf16 %v298_v14, %v298_v14  ;;  %523 = vrcp.f32 %v275_v17 }
 0x195   :  { %495 = vmatmul.msk.bf16.vlgmr.msra.gmra.mxu2 %vm55_vm0, %v306_v18 }
 0x198   :  { %v522_v19 = vpop.eup %521 }
 0x199   :  { %v524_v20 = vpop.eup %523  ;;  %v297_v16 = vmul.f32 %v522_v19, %v633_v27  ;;  %v284_v22 = vpop.xlane.xlu0 %283 }
 0x19a   :  { %v299_v23 = vmul.f32 %v524_v20, %v635_v30  ;;  %v278_v24 = vpop.xlane.xlu2 %277  ;;  %525 = vrcp.f32 %v284_v22 }
 0x19b   :  { %v305_v25 = vpack.c.bf16 %v297_v16, %v297_v16  ;;  %527 = vrcp.f32 %v278_v24 }
 0x19c   :  { %v307_v26 = vpack.c.bf16 %v299_v23, %v299_v23 }
 0x19d   :  { %494 = vmatmul.msk.bf16.vlgmr.msra.gmra.mxu1 %vm55_vm0, %v305_v25 }
 0x19e   :  { %496 = vmatmul.msk.bf16.vlgmr.msra.gmra.mxu3 %vm55_vm0, %v307_v26 }
 0x1a0   :  { %v526_v21 = vpop.eup %525 }
 0x1a1   :  { %v528_v28 = vpop.eup %527  ;;  %v302_v29 = vmul.f32 %v526_v21, %v641_v39  ;;  %v287_v31 = vpop.xlane.xlu1 %286 }
 0x1a2   :  { %v281_v32 = vpop.xlane.xlu0 %280  ;;  %v300_v27 = vmul.f32 %v528_v28, %v643_v41  ;;  %529 = vrcp.f32 %v287_v31 }
 0x1a3   :  { %v310_v33 = vpack.c.bf16 %v302_v29, %v302_v29  ;;  %531 = vrcp.f32 %v281_v32 }
 0x1a4   :  { %v308_v30 = vpack.c.bf16 %v300_v27, %v300_v27 }
 0x1a5   :  { %499 = vmatmul.msk.bf16.vlgmr.msrb.gmra.mxu2 %vm55_vm0, %v310_v33 }
 0x1a6   :  { %497 = vmatmul.msk.bf16.vlgmr.msrb.gmra.mxu0 %vm55_vm0, %v308_v30 }
 0x1a8   :  { %v530_v34 = vpop.eup %529 }
 0x1a9   :  { %v532_v35 = vpop.eup %531  ;;  %v303_v36 = vmul.f32 %v530_v34, %v651_v45 }
 0x1aa   :  { %v301_v37 = vmul.f32 %v532_v35, %v649_v44 }
 0x1ab   :  { %v311_v38 = vpack.c.bf16 %v303_v36, %v303_v36 }
 0x1ac   :  { %v309_v39 = vpack.c.bf16 %v301_v37, %v301_v37 }
 0x1ae   :  { %498 = vmatmul.msk.bf16.vlgmr.msrb.gmra.mxu1 %vm55_vm0, %v309_v39  ;;  %500 = vmatmul.msk.bf16.vlgmr.msrb.gmra.mxu3 %vm55_vm0, %v311_v38 }
 0x209   :  { %v336_v40 = vpop.f32.mrf.mxu0 }
 0x20a   :  { %473 = vst.msk [vmem:[%s740_s3] sm:$0xff] %vm55_vm0, %v336_v40 }
 0x211   :  { %v338_v41 = vpop.f32.mrf.mxu0 }
 0x218   :  { %v374_v42 = vpop.f32.mrf.mxu2 }
 0x219   :  { %475 = vst.msk [vmem:[%s740_s3 + $0x10] sm:$0xff] %vm55_vm0, %v374_v42 }
 0x21a   :  { %v355_v43 = vpop.f32.mrf.mxu1 }
 0x21b   :  { %474 = vst.msk [vmem:[%s740_s3 + $0x8] sm:$0xff] %vm55_vm0, %v355_v43 }
 0x220   :  { %v376_v44 = vpop.f32.mrf.mxu2 }
 0x221   :  { %v393_v45 = vpop.f32.mrf.mxu3 }
 0x222   :  { %476 = vst.msk [vmem:[%s740_s3 + $0x18] sm:$0xff] %vm55_vm0, %v393_v45  ;;  %v357_v46 = vpop.f32.mrf.mxu1 }
 0x223   :  { %v412_v47 = vpop.f32.mrf.mxu0 }
 0x224   :  { %477 = vst.msk [vmem:[%s740_s3 + $0x20] sm:$0xff] %vm55_vm0, %v412_v47 }
 0x228   :  { %v450_v48 = vpop.f32.mrf.mxu2 }
 0x229   :  { %v395_v49 = vpop.f32.mrf.mxu3  ;;  %479 = vst.msk [vmem:[%s740_s3 + $0x30] sm:$0xff] %vm55_vm0, %v450_v48 }
 0x22b   :  { %v414_v50 = vpop.f32.mrf.mxu0  ;;  %v431_v51 = vpop.f32.mrf.mxu1 }
 0x22c   :  { %478 = vst.msk [vmem:[%s740_s3 + $0x28] sm:$0xff] %vm55_vm0, %v431_v51 }
 0x230   :  { %v452_v52 = vpop.f32.mrf.mxu2 }
 0x231   :  { %v469_v53 = vpop.f32.mrf.mxu3 }
 0x232   :  { %480 = vst.msk [vmem:[%s740_s3 + $0x38] sm:$0xff] %vm55_vm0, %v469_v53 }
 0x233   :  { %v433_v54 = vpop.f32.mrf.mxu1 }
 0x239   :  { %v471_v55 = vpop.f32.mrf.mxu3 }

// kernel: speech2text_forward.19
= control target key start
LH: loop header
LB: loop body
LE: loop exit
PB: predicated region body
PF: predicated region fallthrough
CT: control target
= control target key end

     0   :  { %vm31_vm0 = vcmask 261120   ;;  %s119_s1 = inlined_call_operand.vmem [shape: f32[32,32], index: 1, kind: input, shape index: {}]   ;;  %s120_s0 = inlined_call_operand.vmem [shape: f32[16,32], index: 0, kind: input, shape index: {}]   ;;  %s121_s2 = inlined_call_operand.vmem [shape: f32[1,32], index: 2, kind: input, shape index: {}]   ;;  %s122_s3 = inlined_call_operand.vmem [shape: f32[16,32], index: 3, kind: input, shape index: {}]   ;;  %s123_s4 = inlined_call_operand.vmem [shape: f32[16,32], index: 4, kind: output, shape index: {}]  }
   0x1   :  { %v22_v0 = vld [vmem:[%s119_s1 + $0x10] sm:$0xff]  ;;  %v23_v1 = vld [vmem:[%s119_s1 + $0x18] sm:$0xff]  ;;  %v20_v2 = vld [vmem:[%s119_s1] sm:$0xff] }
   0x2   :  { %v26_v3 = vpack.c.bf16 %v23_v1, %v22_v0  ;;  %v21_v4 = vld [vmem:[%s119_s1 + $0x8] sm:$0xff]  ;;  %v18_v6 = vld [vmem:[%s120_s0] sm:$0xff] }
   0x3   :  { %v25_v5 = vpack.c.bf16 %v21_v4, %v20_v2  ;;  %v19_v7 = vld [vmem:[%s120_s0 + $0x8] sm:$0xff]  ;;  %v60_v9 = vld [vmem:[%s121_s2] ss:$0 sm:$0xff] }
   0x4   :  { %41 = vmatpush.bf16.msra.mxu0 %v26_v3  ;;  %v24_v8 = vpack.c.bf16 %v19_v7, %v18_v6  ;;  %v49_v11 = vld [vmem:[%s122_s3] sm:$0xff]  ;;  %v50_v15 = vld [vmem:[%s122_s3 + $0x8] sm:$0xff] }
   0x8   :  { %42 = vmatpush.bf16.msra.mxu0 %v25_v5 }
   0xb   :  { %59 = vmatmul.msk.bf16.vlgmr.msra.gmra.mxu0 %vm31_vm0, %v24_v8 }
  0x88   :  { %v44_v10 = vpop.f32.mrf.mxu0 }
  0x89   :  { %v45_v12 = vadd.f32 %v60_v9, %v44_v10 }
  0x8b   :  { %v51_v13 = vadd.f32 %v49_v11, %v45_v12 }
  0x8d   :  { %53 = vst.msk [vmem:[%s123_s4] sm:$0xff] %vm31_vm0, %v51_v13 }
  0x90   :  { %v46_v14 = vpop.f32.mrf.mxu0 }
  0x91   :  { %v47_v16 = vadd.f32 %v60_v9, %v46_v14 }
  0x93   :  { %v52_v17 = vadd.f32 %v50_v15, %v47_v16 }
  0x95   :  { %54 = vst.msk [vmem:[%s123_s4 + $0x8] sm:$0xff] %vm31_vm0, %v52_v17 }

// kernel: speech2text_forward.25
= control target key start
LH: loop header
LB: loop body
LE: loop exit
PB: predicated region body
PF: predicated region fallthrough
CT: control target
= control target key end

     0   :  { %vm18_vm0 = vcmask 261120   ;;  %v95_v4 = vmov 32.0   ;;  %s140_s0 = inlined_call_operand.vmem [shape: f32[16,32], index: 0, kind: input, shape index: {}]   ;;  %s141_s1 = inlined_call_operand.vmem [shape: f32[1,32], index: 1, kind: input, shape index: {}]   ;;  %s142_s2 = inlined_call_operand.vmem [shape: f32[1,32], index: 2, kind: input, shape index: {}]   ;;  %s143_s3 = inlined_call_operand.vmem [shape: f32[16,32], index: 3, kind: output, shape index: {}]  }
   0x1   :  { %v14_v0 = vld [vmem:[%s140_s0] sm:$0xff]  ;;  %v15_v2 = vld [vmem:[%s140_s0 + $0x8] sm:$0xff]  ;;  %89 = vrcp.f32 %v95_v4 }
   0x2   :  { %v19_v1 = vsel %vm18_vm0, %v14_v0, 0.0  ;;  %v22_v3 = vsel %vm18_vm0, %v15_v2, 0.0  ;;  %v87_v35 = vld [vmem:[%s141_s1] ss:$0 sm:$0xff] }
   0x3   :  { %20 = vadd.xlane.f32.xlu0 %v19_v1  ;;  %v88_v38 = vld [vmem:[%s142_s2] ss:$0 sm:$0xff] }
   0x7   :  { %v90_v5 = vpop.eup %89 }
   0x8   :  { %v26_v6 = vmul.f32 32.0, %v90_v5  ;;  %vm30_vm1 = vweird.f32 %v90_v5 }
   0xa   :  { %v27_v7 = vsub.f32 1.0, %v26_v6 }
   0xb   :  { %23 = vadd.xlane.f32.xlu0 %v22_v3 }
   0xc   :  { %v28_v8 = vmul.f32 %v90_v5, %v27_v7 }
   0xe   :  { %v29_v9 = vadd.f32 %v90_v5, %v28_v8 }
  0x10   :  { %v31_v10 = vsel %vm30_vm1, %v90_v5, %v29_v9 }
  0x76   :  { %v21_v11 = vpop.xlane.xlu0 %20 }
  0x77   :  { %v32_v12 = vmul.f32 %v31_v10, %v21_v11 }
  0x79   :  { %v34_v13 = vsub.f32 %v14_v0, %v32_v12 }
  0x7b   :  { %v36_v14 = vmul.f32 %v34_v13, %v34_v13 }
  0x7d   :  { %v38_v15 = vsel %vm18_vm0, %v36_v14, 0.0 }
  0x7e   :  { %39 = vadd.xlane.f32.xlu1 %v38_v15  ;;  %v24_v16 = vpop.xlane.xlu0 %23 }
  0x7f   :  { %v33_v17 = vmul.f32 %v31_v10, %v24_v16 }
  0x81   :  { %v35_v18 = vsub.f32 %v15_v2, %v33_v17 }
  0x83   :  { %v37_v19 = vmul.f32 %v35_v18, %v35_v18 }
  0x85   :  { %v41_v20 = vsel %vm18_vm0, %v37_v19, 0.0 }
  0x86   :  { %42 = vadd.xlane.f32.xlu1 %v41_v20 }
  0xf1   :  { %v40_v21 = vpop.xlane.xlu1 %39 }
  0xf2   :  { %v44_v22 = vmul.f32 %v40_v21, %v31_v10 }
  0xf4   :  { %v46_v23 = vadd.f32 1e-05, %v44_v22 }
  0xf6   :  { %91 = vrsqrt.f32 %v46_v23  ;;  %vm54_vm3 = vweird.f32 %v46_v23 }
  0xf9   :  { %v43_v24 = vpop.xlane.xlu1 %42 }
  0xfa   :  { %v45_v25 = vmul.f32 %v43_v24, %v31_v10 }
  0xfc   :  { %v92_v26 = vpop.eup %91  ;;  %v47_v27 = vadd.f32 1e-05, %v45_v25 }
  0xfd   :  { %v49_v28 = vmul.f32 %v92_v26, %v46_v23  ;;  %vm55_vm2 = vweird.f32 %v92_v26 }
  0xfe   :  { %93 = vrsqrt.f32 %v47_v27  ;;  %vm56_vm4 = vmor %vm54_vm3, %vm55_vm2  ;;  %vm64_vm6 = vweird.f32 %v47_v27 }
  0xff   :  { %v50_v29 = vmul.f32 %v92_v26, %v49_v28 }
 0x101   :  { %v51_v30 = vmul.f32 0.5, %v50_v29 }
 0x103   :  { %v52_v31 = vsub.f32 1.5, %v51_v30 }
 0x104   :  { %v94_v32 = vpop.eup %93 }
 0x105   :  { %v53_v33 = vmul.f32 %v92_v26, %v52_v31  ;;  %v59_v34 = vmul.f32 %v94_v32, %v47_v27  ;;  %vm65_vm5 = vweird.f32 %v94_v32 }
 0x106   :  { %vm66_vm7 = vmor %vm64_vm6, %vm65_vm5 }
 0x107   :  { %v57_v36 = vsel %vm56_vm4, %v92_v26, %v53_v33  ;;  %v60_v37 = vmul.f32 %v94_v32, %v59_v34 }
 0x108   :  { %v68_v39 = vmul.f32 %v57_v36, %v34_v13 }
 0x109   :  { %v61_v40 = vmul.f32 0.5, %v60_v37 }
 0x10a   :  { %v73_v41 = vmul.f32 %v87_v35, %v68_v39 }
 0x10b   :  { %v62_v42 = vsub.f32 1.5, %v61_v40 }
 0x10c   :  { %v78_v43 = vadd.f32 %v88_v38, %v73_v41 }
 0x10d   :  { %v63_v44 = vmul.f32 %v94_v32, %v62_v42 }
 0x10e   :  { %80 = vst.msk [vmem:[%s143_s3] sm:$0xff] %vm18_vm0, %v78_v43 }
 0x10f   :  { %v67_v45 = vsel %vm66_vm7, %v94_v32, %v63_v44 }
 0x110   :  { %v69_v46 = vmul.f32 %v67_v45, %v35_v18 }
 0x112   :  { %v74_v47 = vmul.f32 %v87_v35, %v69_v46 }
 0x114   :  { %v79_v48 = vadd.f32 %v88_v38, %v74_v47 }
 0x116   :  { %81 = vst.msk [vmem:[%s143_s3 + $0x8] sm:$0xff] %vm18_vm0, %v79_v48 }

// kernel: speech2text_forward.20
= control target key start
LH: loop header
LB: loop body
LE: loop exit
PB: predicated region body
PF: predicated region fallthrough
CT: control target
= control target key end

     0   :  { %vm31_vm0 = vcmask 261120   ;;  %v179_v4 = vmov 32.0   ;;  %vm140_vm8 = vcmask 523264   ;;  %s297_s0 = inlined_call_operand.vmem [shape: f32[16,32], index: 0, kind: input, shape index: {}]   ;;  %s298_s1 = inlined_call_operand.vmem [shape: f32[1,32], index: 1, kind: input, shape index: {}]   ;;  %s299_s2 = inlined_call_operand.vmem [shape: f32[1,32], index: 2, kind: input, shape index: {}]   ;;  %s300_s4 = inlined_call_operand.vmem [shape: f32[1,64], index: 4, kind: input, shape index: {}]   ;;  %s301_s3 = inlined_call_operand.vmem [shape: f32[32,64], index: 3, kind: input, shape index: {}]   ;;  %s302_s6 = inlined_call_operand.vmem [shape: f32[1,32], index: 6, kind: input, shape index: {}]   ;;  %s303_s5 = inlined_call_operand.vmem [shape: f32[64,32], index: 5, kind: input, shape index: {}]   ;;  %s304_s7 = inlined_call_operand.vmem [shape: f32[16,32], index: 7, kind: output, shape index: {}]  }
   0x1   :  { %v223_v0 = vld [vmem:[%s297_s0] sm:$0xff]  ;;  %v230_v2 = vld [vmem:[%s297_s0 + $0x8] sm:$0xff]  ;;  %173 = vrcp.f32 %v179_v4  ;;  %v95_v21 = vld [vmem:[%s301_s3 + $0x10] sm:$0xff] }
   0x2   :  { %v32_v1 = vsel %vm31_vm0, %v223_v0, 0.0  ;;  %v35_v3 = vsel %vm31_vm0, %v230_v2, 0.0  ;;  %v96_v22 = vld [vmem:[%s301_s3 + $0x18] sm:$0xff]  ;;  %v93_v24 = vld [vmem:[%s301_s3] sm:$0xff]  ;;  %v94_v25 = vld [vmem:[%s301_s3 + $0x8] sm:$0xff] }
   0x3   :  { %33 = vadd.xlane.f32.xlu0 %v32_v1  ;;  %v99_v23 = vpack.c.bf16 %v96_v22, %v95_v21  ;;  %v98_v27 = vpack.c.bf16 %v94_v25, %v93_v24  ;;  %v169_v46 = vld [vmem:[%s298_s1] ss:$0 sm:$0xff]  ;;  %v129_v56 = vld [vmem:[%s303_s5 + $0x30] sm:$0xff]  ;;  %v130_v57 = vld [vmem:[%s303_s5 + $0x38] sm:$0xff] }
   0x4   :  { %v170_v51 = vld [vmem:[%s299_s2] ss:$0 sm:$0xff]  ;;  %v135_v58 = vpack.c.bf16 %v130_v57, %v129_v56  ;;  %v128_v60 = vld [vmem:[%s303_s5 + $0x28] sm:$0xff]  ;;  %v125_v62 = vld [vmem:[%s303_s5 + $0x10] sm:$0xff] }
   0x5   :  { %113 = vmatpush.bf16.msra.mxu0 %v99_v23  ;;  %v127_v59 = vld [vmem:[%s303_s5 + $0x20] sm:$0xff]  ;;  %v126_v63 = vld [vmem:[%s303_s5 + $0x18] sm:$0xff]  ;;  %v124_v4 = vld [vmem:[%s303_s5 + $0x8] sm:$0xff] }
   0x6   :  { %148 = vmatpush.bf16.msra.mxu1 %v135_v58  ;;  %v134_v61 = vpack.c.bf16 %v128_v60, %v127_v59  ;;  %v133_v1 = vpack.c.bf16 %v126_v63, %v125_v62 }
   0x7   :  { %v174_v5 = vpop.eup %173 }
   0x8   :  { %v39_v6 = vmul.f32 32.0, %v174_v5  ;;  %vm43_vm1 = vweird.f32 %v174_v5 }
   0x9   :  { %114 = vmatpush.bf16.msra.mxu0 %v98_v27 }
   0xa   :  { %v40_v7 = vsub.f32 1.0, %v39_v6  ;;  %149 = vmatpush.bf16.msra.mxu1 %v134_v61 }
   0xb   :  { %36 = vadd.xlane.f32.xlu0 %v35_v3  ;;  %v123_v3 = vld [vmem:[%s303_s5] sm:$0xff] }
   0xc   :  { %v41_v8 = vmul.f32 %v174_v5, %v40_v7  ;;  %v171_v7 = vld [vmem:[%s300_s4] ss:$0 sm:$0xff] }
   0xe   :  { %v42_v9 = vadd.f32 %v174_v5, %v41_v8  ;;  %150 = vmatpush.bf16.msra.mxu1 %v133_v1 }
  0x10   :  { %v44_v10 = vsel %vm43_vm1, %v174_v5, %v42_v9  ;;  %v132_v5 = vpack.c.bf16 %v124_v4, %v123_v3 }
  0x12   :  { %151 = vmatpush.bf16.msra.mxu1 %v132_v5 }
  0x76   :  { %v34_v11 = vpop.xlane.xlu0 %33 }
  0x77   :  { %v45_v12 = vmul.f32 %v44_v10, %v34_v11 }
  0x79   :  { %v47_v13 = vsub.f32 %v223_v0, %v45_v12 }
  0x7b   :  { %v49_v14 = vmul.f32 %v47_v13, %v47_v13 }
  0x7d   :  { %v51_v15 = vsel %vm31_vm0, %v49_v14, 0.0  ;;  %v172_v14 = vld [vmem:[%s302_s6] ss:$0 sm:$0xff] }
  0x7e   :  { %52 = vadd.xlane.f32.xlu1 %v51_v15  ;;  %v37_v16 = vpop.xlane.xlu0 %36 }
  0x7f   :  { %v46_v17 = vmul.f32 %v44_v10, %v37_v16 }
  0x81   :  { %v48_v18 = vsub.f32 %v230_v2, %v46_v17 }
  0x83   :  { %v50_v19 = vmul.f32 %v48_v18, %v48_v18 }
  0x85   :  { %v54_v20 = vsel %vm31_vm0, %v50_v19, 0.0 }
  0x86   :  { %55 = vadd.xlane.f32.xlu1 %v54_v20 }
  0xf1   :  { %v53_v26 = vpop.xlane.xlu1 %52 }
  0xf2   :  { %v57_v28 = vmul.f32 %v53_v26, %v44_v10 }
  0xf4   :  { %v59_v29 = vadd.f32 1e-05, %v57_v28 }
  0xf6   :  { %175 = vrsqrt.f32 %v59_v29  ;;  %vm67_vm3 = vweird.f32 %v59_v29 }
  0xf9   :  { %v56_v30 = vpop.xlane.xlu1 %55 }
  0xfa   :  { %v58_v31 = vmul.f32 %v56_v30, %v44_v10 }
  0xfc   :  { %v176_v32 = vpop.eup %175  ;;  %v60_v33 = vadd.f32 1e-05, %v58_v31 }
  0xfd   :  { %v62_v34 = vmul.f32 %v176_v32, %v59_v29  ;;  %vm68_vm2 = vweird.f32 %v176_v32 }
  0xfe   :  { %177 = vrsqrt.f32 %v60_v33  ;;  %vm69_vm4 = vmor %vm67_vm3, %vm68_vm2  ;;  %vm77_vm6 = vweird.f32 %v60_v33 }
  0xff   :  { %v63_v35 = vmul.f32 %v176_v32, %v62_v34 }
 0x101   :  { %v64_v36 = vmul.f32 0.5, %v63_v35 }
 0x103   :  { %v65_v37 = vsub.f32 1.5, %v64_v36 }
 0x104   :  { %v178_v38 = vpop.eup %177 }
 0x105   :  { %v66_v39 = vmul.f32 %v176_v32, %v65_v37  ;;  %v72_v40 = vmul.f32 %v178_v38, %v60_v33  ;;  %vm78_vm5 = vweird.f32 %v178_v38 }
 0x106   :  { %vm79_vm7 = vmor %vm77_vm6, %vm78_vm5 }
 0x107   :  { %v73_v41 = vmul.f32 %v178_v38, %v72_v40  ;;  %v70_v42 = vsel %vm69_vm4, %v176_v32, %v66_v39 }
 0x108   :  { %v81_v45 = vmul.f32 %v70_v42, %v47_v13 }
 0x109   :  { %v74_v43 = vmul.f32 0.5, %v73_v41 }
 0x10a   :  { %v86_v50 = vmul.f32 %v169_v46, %v81_v45 }
 0x10b   :  { %v75_v44 = vsub.f32 1.5, %v74_v43 }
 0x10c   :  { %v91_v53 = vadd.f32 %v170_v51, %v86_v50 }
 0x10d   :  { %v76_v47 = vmul.f32 %v178_v38, %v75_v44 }
 0x10f   :  { %v80_v48 = vsel %vm79_vm7, %v178_v38, %v76_v47 }
 0x110   :  { %v82_v49 = vmul.f32 %v80_v48, %v48_v18 }
 0x112   :  { %v87_v52 = vmul.f32 %v169_v46, %v82_v49 }
 0x114   :  { %v92_v54 = vadd.f32 %v170_v51, %v87_v52 }
 0x116   :  { %v97_v55 = vpack.c.bf16 %v92_v54, %v91_v53 }
 0x118   :  { %166 = vmatmul.msk.bf16.vlgmr.msra.gmra.mxu0 %vm31_vm0, %v97_v55 }
 0x195   :  { %v116_v6 = vpop.f32.mrf.mxu0 }
 0x196   :  { %v117_v8 = vadd.f32 %v171_v7, %v116_v6 }
 0x198   :  { %v121_v11 = vmax.f32 %v117_v8, 0.0 }
 0x19d   :  { %v118_v9 = vpop.f32.mrf.mxu0 }
 0x19e   :  { %v119_v10 = vadd.f32 %v171_v7, %v118_v9 }
 0x1a0   :  { %v122_v12 = vmax.f32 %v119_v10, 0.0 }
 0x1a2   :  { %v131_v13 = vpack.c.bf16 %v122_v12, %v121_v11 }
 0x1a4   :  { %167 = vmatmul.msk.bf16.vlgmr.msra.gmra.mxu1 %vm140_vm8, %v131_v13 }
 0x221   :  { %v153_v15 = vpop.f32.mrf.mxu1 }
 0x222   :  { %v154_v16 = vadd.f32 %v172_v14, %v153_v15 }
 0x224   :  { %v158_v17 = vadd.f32 %v154_v16, %v223_v0 }
 0x226   :  { %160 = vst.msk [vmem:[%s304_s7] sm:$0xff] %vm31_vm0, %v158_v17 }
 0x229   :  { %v155_v18 = vpop.f32.mrf.mxu1 }
 0x22a   :  { %v156_v19 = vadd.f32 %v172_v14, %v155_v18 }
 0x22c   :  { %v159_v20 = vadd.f32 %v156_v19, %v230_v2 }
 0x22e   :  { %161 = vst.msk [vmem:[%s304_s7 + $0x8] sm:$0xff] %vm31_vm0, %v159_v20 }

// kernel: speech2text_forward.27
= control target key start
LH: loop header
LB: loop body
LE: loop exit
PB: predicated region body
PF: predicated region fallthrough
CT: control target
= control target key end

     0   :  { %vm28_vm0 = vcmask 261120   ;;  %vm46_vm1 = vcmask 523264   ;;  %s102_s1 = inlined_call_operand.vmem [shape: f32[32,64], index: 1, kind: input, shape index: {}]   ;;  %s103_s0 = inlined_call_operand.vmem [shape: f32[16,32], index: 0, kind: input, shape index: {}]   ;;  %s104_s2 = inlined_call_operand.vmem [shape: f32[1,64], index: 2, kind: input, shape index: {}]   ;;  %s105_s3 = inlined_call_operand.vmem [shape: f32[16,64], index: 3, kind: output, shape index: {}]  }
   0x1   :  { %v19_v0 = vld [vmem:[%s102_s1 + $0x10] sm:$0xff]  ;;  %v20_v1 = vld [vmem:[%s102_s1 + $0x18] sm:$0xff]  ;;  %v17_v2 = vld [vmem:[%s102_s1] sm:$0xff] }
   0x2   :  { %v23_v3 = vpack.c.bf16 %v20_v1, %v19_v0  ;;  %v18_v4 = vld [vmem:[%s102_s1 + $0x8] sm:$0xff]  ;;  %v15_v6 = vld [vmem:[%s103_s0] sm:$0xff] }
   0x3   :  { %v22_v5 = vpack.c.bf16 %v18_v4, %v17_v2  ;;  %v16_v7 = vld [vmem:[%s103_s0 + $0x8] sm:$0xff]  ;;  %v54_v9 = vld [vmem:[%s104_s2] ss:$0 sm:$0xff] }
   0x4   :  { %38 = vmatpush.bf16.msra.mxu0 %v23_v3  ;;  %v21_v8 = vpack.c.bf16 %v16_v7, %v15_v6 }
   0x8   :  { %39 = vmatpush.bf16.msra.mxu0 %v22_v5 }
   0xb   :  { %53 = vmatmul.msk.bf16.vlgmr.msra.gmra.mxu0 %vm28_vm0, %v21_v8 }
  0x88   :  { %v41_v10 = vpop.f32.mrf.mxu0 }
  0x89   :  { %v42_v11 = vadd.f32 %v54_v9, %v41_v10 }
  0x8b   :  { %47 = vst.msk [vmem:[%s105_s3] sm:$0xff] %vm46_vm1, %v42_v11 }
  0x90   :  { %v43_v12 = vpop.f32.mrf.mxu0 }
  0x91   :  { %v44_v13 = vadd.f32 %v54_v9, %v43_v12 }
  0x93   :  { %48 = vst.msk [vmem:[%s105_s3 + $0x8] sm:$0xff] %vm46_vm1, %v44_v13 }

// kernel: closed_call.243
= control target key start
LH: loop header
LB: loop body
LE: loop exit
PB: predicated region body
PF: predicated region fallthrough
CT: control target
= control target key end

     0   :  { %vm25_vm0 = vcmask 261120   ;;  %vm29_vm1 = vcmask 257024   ;;  %v135_v4 = vmov 32.0   ;;  %vm116_vm9 = vcmask 785408   ;;  %s204_s0 = inlined_call_operand.vmem [shape: f32[12,32], index: 0, kind: input, shape index: {}]   ;;  %s205_s1 = inlined_call_operand.vmem [shape: f32[1,32], index: 1, kind: input, shape index: {}]   ;;  %s206_s2 = inlined_call_operand.vmem [shape: f32[1,32], index: 2, kind: input, shape index: {}]   ;;  %s207_s4 = inlined_call_operand.vmem [shape: f32[1,96], index: 4, kind: input, shape index: {}]   ;;  %s208_s3 = inlined_call_operand.vmem [shape: f32[32,96], index: 3, kind: input, shape index: {}]   ;;  %s209_s5 = inlined_call_operand.vmem [shape: f32[12,96], index: 5, kind: output, shape index: {}]  }
   0x1   :  { %v21_v0 = vld [vmem:[%s204_s0] sm:$0xff]  ;;  %v22_v2 = vld [vmem:[%s204_s0 + $0x8] sm:$0xf]  ;;  %129 = vrcp.f32 %v135_v4  ;;  %v90_v21 = vld [vmem:[%s208_s3 + $0x10] sm:$0xff]  ;;  %vm118_vm10 = vcmask 781312  }
   0x2   :  { %v26_v1 = vsel %vm25_vm0, %v21_v0, 0.0  ;;  %v30_v3 = vsel %vm29_vm1, %v22_v2, 0.0  ;;  %v91_v22 = vld [vmem:[%s208_s3 + $0x18] sm:$0xff]  ;;  %v88_v24 = vld [vmem:[%s208_s3] sm:$0xff]  ;;  %v89_v25 = vld [vmem:[%s208_s3 + $0x8] sm:$0xff] }
   0x3   :  { %27 = vadd.xlane.f32.xlu0 %v26_v1  ;;  %v94_v23 = vpack.c.bf16 %v91_v22, %v90_v21  ;;  %v93_v27 = vpack.c.bf16 %v89_v25, %v88_v24  ;;  %v126_v46 = vld [vmem:[%s205_s1] ss:$0 sm:$0xff] }
   0x4   :  { %v127_v51 = vld [vmem:[%s206_s2] ss:$0 sm:$0xff] }
   0x5   :  { %108 = vmatpush.bf16.msra.mxu0 %v94_v23  ;;  %v128_v56 = vld [vmem:[%s207_s4] ss:$0 sm:$0xff] }
   0x7   :  { %v130_v5 = vpop.eup %129 }
   0x8   :  { %v34_v6 = vmul.f32 32.0, %v130_v5  ;;  %vm38_vm2 = vweird.f32 %v130_v5 }
   0x9   :  { %109 = vmatpush.bf16.msra.mxu0 %v93_v27 }
   0xa   :  { %v35_v7 = vsub.f32 1.0, %v34_v6 }
   0xb   :  { %31 = vadd.xlane.f32.xlu0 %v30_v3 }
   0xc   :  { %v36_v8 = vmul.f32 %v130_v5, %v35_v7 }
   0xe   :  { %v37_v9 = vadd.f32 %v130_v5, %v36_v8 }
  0x10   :  { %v39_v10 = vsel %vm38_vm2, %v130_v5, %v37_v9 }
  0x76   :  { %v28_v11 = vpop.xlane.xlu0 %27 }
  0x77   :  { %v40_v12 = vmul.f32 %v39_v10, %v28_v11 }
  0x79   :  { %v42_v13 = vsub.f32 %v21_v0, %v40_v12 }
  0x7b   :  { %v44_v14 = vmul.f32 %v42_v13, %v42_v13 }
  0x7d   :  { %v46_v15 = vsel %vm25_vm0, %v44_v14, 0.0 }
  0x7e   :  { %47 = vadd.xlane.f32.xlu1 %v46_v15  ;;  %v32_v16 = vpop.xlane.xlu0 %31 }
  0x7f   :  { %v41_v17 = vmul.f32 %v39_v10, %v32_v16 }
  0x81   :  { %v43_v18 = vsub.f32 %v22_v2, %v41_v17 }
  0x83   :  { %v45_v19 = vmul.f32 %v43_v18, %v43_v18 }
  0x85   :  { %v49_v20 = vsel %vm29_vm1, %v45_v19, 0.0 }
  0x86   :  { %50 = vadd.xlane.f32.xlu1 %v49_v20 }
  0xf1   :  { %v48_v26 = vpop.xlane.xlu1 %47 }
  0xf2   :  { %v52_v28 = vmul.f32 %v48_v26, %v39_v10 }
  0xf4   :  { %v54_v29 = vadd.f32 1e-05, %v52_v28 }
  0xf6   :  { %131 = vrsqrt.f32 %v54_v29  ;;  %vm62_vm4 = vweird.f32 %v54_v29 }
  0xf9   :  { %v51_v30 = vpop.xlane.xlu1 %50 }
  0xfa   :  { %v53_v31 = vmul.f32 %v51_v30, %v39_v10 }
  0xfc   :  { %v132_v32 = vpop.eup %131  ;;  %v55_v33 = vadd.f32 1e-05, %v53_v31 }
  0xfd   :  { %v57_v34 = vmul.f32 %v132_v32, %v54_v29  ;;  %vm63_vm3 = vweird.f32 %v132_v32 }
  0xfe   :  { %133 = vrsqrt.f32 %v55_v33  ;;  %vm64_vm5 = vmor %vm62_vm4, %vm63_vm3  ;;  %vm72_vm7 = vweird.f32 %v55_v33 }
  0xff   :  { %v58_v35 = vmul.f32 %v132_v32, %v57_v34 }
 0x101   :  { %v59_v36 = vmul.f32 0.5, %v58_v35 }
 0x103   :  { %v60_v37 = vsub.f32 1.5, %v59_v36 }
 0x104   :  { %v134_v38 = vpop.eup %133 }
 0x105   :  { %v61_v39 = vmul.f32 %v132_v32, %v60_v37  ;;  %v67_v40 = vmul.f32 %v134_v38, %v55_v33  ;;  %vm73_vm6 = vweird.f32 %v134_v38 }
 0x106   :  { %vm74_vm8 = vmor %vm72_vm7, %vm73_vm6 }
 0x107   :  { %v68_v41 = vmul.f32 %v134_v38, %v67_v40  ;;  %v65_v42 = vsel %vm64_vm5, %v132_v32, %v61_v39 }
 0x108   :  { %v76_v45 = vmul.f32 %v65_v42, %v42_v13 }
 0x109   :  { %v69_v43 = vmul.f32 0.5, %v68_v41 }
 0x10a   :  { %v81_v50 = vmul.f32 %v126_v46, %v76_v45 }
 0x10b   :  { %v70_v44 = vsub.f32 1.5, %v69_v43 }
 0x10c   :  { %v86_v53 = vadd.f32 %v127_v51, %v81_v50 }
 0x10d   :  { %v71_v47 = vmul.f32 %v134_v38, %v70_v44 }
 0x10f   :  { %v75_v48 = vsel %vm74_vm8, %v134_v38, %v71_v47 }
 0x110   :  { %v77_v49 = vmul.f32 %v75_v48, %v43_v18 }
 0x112   :  { %v82_v52 = vmul.f32 %v126_v46, %v77_v49 }
 0x114   :  { %v87_v54 = vadd.f32 %v127_v51, %v82_v52 }
 0x116   :  { %v92_v55 = vpack.c.bf16 %v87_v54, %v86_v53 }
 0x118   :  { %124 = vmatmul.msk.bf16.vlgmr.msra.gmra.mxu0 %vm25_vm0, %v92_v55 }
 0x195   :  { %v111_v57 = vpop.f32.mrf.mxu0 }
 0x196   :  { %v112_v58 = vadd.f32 %v128_v56, %v111_v57 }
 0x198   :  { %117 = vst.msk [vmem:[%s209_s5] sm:$0xff] %vm116_vm9, %v112_v58 }
 0x19d   :  { %v113_v59 = vpop.f32.mrf.mxu0 }
 0x19e   :  { %v114_v60 = vadd.f32 %v128_v56, %v113_v59 }
 0x1a0   :  { %119 = vst.msk [vmem:[%s209_s5 + $0x8] sm:$0xf] %vm118_vm10, %v114_v60 }

// kernel: closed_call.245
= control target key start
LH: loop header
LB: loop body
LE: loop exit
PB: predicated region body
PF: predicated region fallthrough
CT: control target
= control target key end

     0   :  { %vm31_vm0 = vcmask 261120   ;;  %vm54_vm1 = vcmask 257024   ;;  %s120_s1 = inlined_call_operand.vmem [shape: f32[32,32], index: 1, kind: input, shape index: {}]   ;;  %s121_s0 = inlined_call_operand.vmem [shape: f32[12,32], index: 0, kind: input, shape index: {}]   ;;  %s122_s2 = inlined_call_operand.vmem [shape: f32[1,32], index: 2, kind: input, shape index: {}]   ;;  %s123_s3 = inlined_call_operand.vmem [shape: f32[12,32], index: 3, kind: input, shape index: {}]   ;;  %s124_s4 = inlined_call_operand.vmem [shape: f32[12,32], index: 4, kind: output, shape index: {}]  }
   0x1   :  { %v22_v0 = vld [vmem:[%s120_s1 + $0x10] sm:$0xff]  ;;  %v23_v1 = vld [vmem:[%s120_s1 + $0x18] sm:$0xff]  ;;  %v20_v2 = vld [vmem:[%s120_s1] sm:$0xff] }
   0x2   :  { %v26_v3 = vpack.c.bf16 %v23_v1, %v22_v0  ;;  %v21_v4 = vld [vmem:[%s120_s1 + $0x8] sm:$0xff]  ;;  %v18_v6 = vld [vmem:[%s121_s0] sm:$0xff] }
   0x3   :  { %v25_v5 = vpack.c.bf16 %v21_v4, %v20_v2  ;;  %v19_v7 = vld [vmem:[%s121_s0 + $0x8] sm:$0xf]  ;;  %v61_v9 = vld [vmem:[%s122_s2] ss:$0 sm:$0xff] }
   0x4   :  { %41 = vmatpush.bf16.msra.mxu0 %v26_v3  ;;  %v24_v8 = vpack.c.bf16 %v19_v7, %v18_v6  ;;  %v49_v11 = vld [vmem:[%s123_s3] sm:$0xff]  ;;  %v50_v15 = vld [vmem:[%s123_s3 + $0x8] sm:$0xf] }
   0x8   :  { %42 = vmatpush.bf16.msra.mxu0 %v25_v5 }
   0xb   :  { %60 = vmatmul.msk.bf16.vlgmr.msra.gmra.mxu0 %vm31_vm0, %v24_v8 }
  0x88   :  { %v44_v10 = vpop.f32.mrf.mxu0 }
  0x89   :  { %v45_v12 = vadd.f32 %v61_v9, %v44_v10 }
  0x8b   :  { %v51_v13 = vadd.f32 %v49_v11, %v45_v12 }
  0x8d   :  { %53 = vst.msk [vmem:[%s124_s4] sm:$0xff] %vm31_vm0, %v51_v13 }
  0x90   :  { %v46_v14 = vpop.f32.mrf.mxu0 }
  0x91   :  { %v47_v16 = vadd.f32 %v61_v9, %v46_v14 }
  0x93   :  { %v52_v17 = vadd.f32 %v50_v15, %v47_v16 }
  0x95   :  { %55 = vst.msk [vmem:[%s124_s4 + $0x8] sm:$0xf] %vm54_vm1, %v52_v17 }

// kernel: closed_call.246
= control target key start
LH: loop header
LB: loop body
LE: loop exit
PB: predicated region body
PF: predicated region fallthrough
CT: control target
= control target key end

     0   :  { %vm25_vm0 = vcmask 261120   ;;  %vm29_vm1 = vcmask 257024   ;;  %v133_v4 = vmov 32.0   ;;  %s204_s0 = inlined_call_operand.vmem [shape: f32[12,32], index: 0, kind: input, shape index: {}]   ;;  %s205_s1 = inlined_call_operand.vmem [shape: f32[1,32], index: 1, kind: input, shape index: {}]   ;;  %s206_s2 = inlined_call_operand.vmem [shape: f32[1,32], index: 2, kind: input, shape index: {}]   ;;  %s207_s4 = inlined_call_operand.vmem [shape: f32[1,32], index: 4, kind: input, shape index: {}]   ;;  %s208_s3 = inlined_call_operand.vmem [shape: f32[32,32], index: 3, kind: input, shape index: {}]   ;;  %s209_s5 = inlined_call_operand.vmem [shape: f32[12,32], index: 5, kind: output, shape index: {}]  }
   0x1   :  { %v21_v0 = vld [vmem:[%s204_s0] sm:$0xff]  ;;  %v22_v2 = vld [vmem:[%s204_s0 + $0x8] sm:$0xf]  ;;  %127 = vrcp.f32 %v133_v4  ;;  %v90_v21 = vld [vmem:[%s208_s3 + $0x10] sm:$0xff] }
   0x2   :  { %v26_v1 = vsel %vm25_vm0, %v21_v0, 0.0  ;;  %v30_v3 = vsel %vm29_vm1, %v22_v2, 0.0  ;;  %v91_v22 = vld [vmem:[%s208_s3 + $0x18] sm:$0xff]  ;;  %v88_v24 = vld [vmem:[%s208_s3] sm:$0xff]  ;;  %v89_v25 = vld [vmem:[%s208_s3 + $0x8] sm:$0xff] }
   0x3   :  { %27 = vadd.xlane.f32.xlu0 %v26_v1  ;;  %v94_v23 = vpack.c.bf16 %v91_v22, %v90_v21  ;;  %v93_v27 = vpack.c.bf16 %v89_v25, %v88_v24  ;;  %v124_v46 = vld [vmem:[%s205_s1] ss:$0 sm:$0xff] }
   0x4   :  { %v125_v51 = vld [vmem:[%s206_s2] ss:$0 sm:$0xff] }
   0x5   :  { %108 = vmatpush.bf16.msra.mxu0 %v94_v23  ;;  %v126_v56 = vld [vmem:[%s207_s4] ss:$0 sm:$0xff] }
   0x7   :  { %v128_v5 = vpop.eup %127 }
   0x8   :  { %v34_v6 = vmul.f32 32.0, %v128_v5  ;;  %vm38_vm2 = vweird.f32 %v128_v5 }
   0x9   :  { %109 = vmatpush.bf16.msra.mxu0 %v93_v27 }
   0xa   :  { %v35_v7 = vsub.f32 1.0, %v34_v6 }
   0xb   :  { %31 = vadd.xlane.f32.xlu0 %v30_v3 }
   0xc   :  { %v36_v8 = vmul.f32 %v128_v5, %v35_v7 }
   0xe   :  { %v37_v9 = vadd.f32 %v128_v5, %v36_v8 }
  0x10   :  { %v39_v10 = vsel %vm38_vm2, %v128_v5, %v37_v9 }
  0x76   :  { %v28_v11 = vpop.xlane.xlu0 %27 }
  0x77   :  { %v40_v12 = vmul.f32 %v39_v10, %v28_v11 }
  0x79   :  { %v42_v13 = vsub.f32 %v21_v0, %v40_v12 }
  0x7b   :  { %v44_v14 = vmul.f32 %v42_v13, %v42_v13 }
  0x7d   :  { %v46_v15 = vsel %vm25_vm0, %v44_v14, 0.0 }
  0x7e   :  { %47 = vadd.xlane.f32.xlu1 %v46_v15  ;;  %v32_v16 = vpop.xlane.xlu0 %31 }
  0x7f   :  { %v41_v17 = vmul.f32 %v39_v10, %v32_v16 }
  0x81   :  { %v43_v18 = vsub.f32 %v22_v2, %v41_v17 }
  0x83   :  { %v45_v19 = vmul.f32 %v43_v18, %v43_v18 }
  0x85   :  { %v49_v20 = vsel %vm29_vm1, %v45_v19, 0.0 }
  0x86   :  { %50 = vadd.xlane.f32.xlu1 %v49_v20 }
  0xf1   :  { %v48_v26 = vpop.xlane.xlu1 %47 }
  0xf2   :  { %v52_v28 = vmul.f32 %v48_v26, %v39_v10 }
  0xf4   :  { %v54_v29 = vadd.f32 1e-05, %v52_v28 }
  0xf6   :  { %129 = vrsqrt.f32 %v54_v29  ;;  %vm62_vm4 = vweird.f32 %v54_v29 }
  0xf9   :  { %v51_v30 = vpop.xlane.xlu1 %50 }
  0xfa   :  { %v53_v31 = vmul.f32 %v51_v30, %v39_v10 }
  0xfc   :  { %v130_v32 = vpop.eup %129  ;;  %v55_v33 = vadd.f32 1e-05, %v53_v31 }
  0xfd   :  { %v57_v34 = vmul.f32 %v130_v32, %v54_v29  ;;  %vm63_vm3 = vweird.f32 %v130_v32 }
  0xfe   :  { %131 = vrsqrt.f32 %v55_v33  ;;  %vm64_vm5 = vmor %vm62_vm4, %vm63_vm3  ;;  %vm72_vm7 = vweird.f32 %v55_v33 }
  0xff   :  { %v58_v35 = vmul.f32 %v130_v32, %v57_v34 }
 0x101   :  { %v59_v36 = vmul.f32 0.5, %v58_v35 }
 0x103   :  { %v60_v37 = vsub.f32 1.5, %v59_v36 }
 0x104   :  { %v132_v38 = vpop.eup %131 }
 0x105   :  { %v61_v39 = vmul.f32 %v130_v32, %v60_v37  ;;  %v67_v40 = vmul.f32 %v132_v38, %v55_v33  ;;  %vm73_vm6 = vweird.f32 %v132_v38 }
 0x106   :  { %vm74_vm8 = vmor %vm72_vm7, %vm73_vm6 }
 0x107   :  { %v68_v41 = vmul.f32 %v132_v38, %v67_v40  ;;  %v65_v42 = vsel %vm64_vm5, %v130_v32, %v61_v39 }
 0x108   :  { %v76_v45 = vmul.f32 %v65_v42, %v42_v13 }
 0x109   :  { %v69_v43 = vmul.f32 0.5, %v68_v41 }
 0x10a   :  { %v81_v50 = vmul.f32 %v124_v46, %v76_v45 }
 0x10b   :  { %v70_v44 = vsub.f32 1.5, %v69_v43 }
 0x10c   :  { %v86_v53 = vadd.f32 %v125_v51, %v81_v50 }
 0x10d   :  { %v71_v47 = vmul.f32 %v132_v38, %v70_v44 }
 0x10f   :  { %v75_v48 = vsel %vm74_vm8, %v132_v38, %v71_v47 }
 0x110   :  { %v77_v49 = vmul.f32 %v75_v48, %v43_v18 }
 0x112   :  { %v82_v52 = vmul.f32 %v124_v46, %v77_v49 }
 0x114   :  { %v87_v54 = vadd.f32 %v125_v51, %v82_v52 }
 0x116   :  { %v92_v55 = vpack.c.bf16 %v87_v54, %v86_v53 }
 0x118   :  { %122 = vmatmul.msk.bf16.vlgmr.msra.gmra.mxu0 %vm25_vm0, %v92_v55 }
 0x195   :  { %v111_v57 = vpop.f32.mrf.mxu0 }
 0x196   :  { %v112_v58 = vadd.f32 %v126_v56, %v111_v57 }
 0x198   :  { %116 = vst.msk [vmem:[%s209_s5] sm:$0xff] %vm25_vm0, %v112_v58 }
 0x19d   :  { %v113_v59 = vpop.f32.mrf.mxu0 }
 0x19e   :  { %v114_v60 = vadd.f32 %v126_v56, %v113_v59 }
 0x1a0   :  { %117 = vst.msk [vmem:[%s209_s5 + $0x8] sm:$0xf] %vm29_vm1, %v114_v60 }

// kernel: closed_call.244
= control target key start
LH: loop header
LB: loop body
LE: loop exit
PB: predicated region body
PF: predicated region fallthrough
CT: control target
= control target key end

     0   :  { %vm55_vm0 = vcmask 64512   ;;  %v216_v40 = vlaneseq  ;;  %vm229_vm2 = vcmask 46080   ;;  %vm338_vm3 = vcmask 1042432   ;;  %s773_s1 = inlined_call_operand.vmem [shape: f32[8,6,8], index: 1, kind: input, shape index: {}]   ;;  %s774_s0 = inlined_call_operand.vmem [shape: f32[8,6,8], index: 0, kind: input, shape index: {}]   ;;  %s775_s2 = inlined_call_operand.vmem [shape: f32[8,6,8], index: 2, kind: input, shape index: {}]   ;;  %s776_s3 = inlined_call_operand.vmem [shape: f32[8,6,8], index: 3, kind: output, shape index: {}]  }
   0x1   :  { %v23_v0 = vld [vmem:[%s773_s1] sm:$0x3f]  ;;  %v24_v1 = vld [vmem:[%s773_s1 + $0x8] sm:$0x3f]  ;;  %v25_v2 = vld [vmem:[%s773_s1 + $0x10] sm:$0x3f] }
   0x2   :  { %v47_v3 = vpack.c.bf16 %v23_v0, %v23_v0  ;;  %v48_v4 = vpack.c.bf16 %v24_v1, %v24_v1  ;;  %v49_v5 = vpack.c.bf16 %v25_v2, %v25_v2  ;;  %v26_v6 = vld [vmem:[%s773_s1 + $0x18] sm:$0x3f]  ;;  %v15_v8 = vld [vmem:[%s774_s0] sm:$0x3f]  ;;  %v16_v9 = vld [vmem:[%s774_s0 + $0x8] sm:$0x3f] }
   0x3   :  { %v50_v7 = vpack.c.bf16 %v26_v6, %v26_v6  ;;  %v29_v10 = vld [vmem:[%s773_s1 + $0x30] sm:$0x3f]  ;;  %v30_v14 = vld [vmem:[%s773_s1 + $0x38] sm:$0x3f]  ;;  %v28_v18 = vld [vmem:[%s773_s1 + $0x28] sm:$0x3f]  ;;  %v39_v26 = vpack.c.bf16 %v15_v8, %v15_v8  ;;  %v40_v27 = vpack.c.bf16 %v16_v9, %v16_v9 }
   0x4   :  { %v60_v11 = vsel %vm55_vm0, %v47_v3, 0  ;;  %v79_v12 = vsel %vm55_vm0, %v48_v4, 0  ;;  %v98_v13 = vsel %vm55_vm0, %v49_v5, 0  ;;  %v53_v16 = vpack.c.bf16 %v29_v10, %v29_v10  ;;  %v27_v19 = vld [vmem:[%s773_s1 + $0x20] sm:$0x3f] }
   0x5   :  { %69 = vmatpush.bf16.xpose.msra.mxu0 %v60_v11  ;;  %88 = vmatpush.bf16.xpose.msra.mxu1 %v79_v12  ;;  %v117_v15 = vsel %vm55_vm0, %v50_v7, 0  ;;  %v54_v17 = vpack.c.bf16 %v30_v14, %v30_v14  ;;  %v17_v20 = vld [vmem:[%s774_s0 + $0x10] sm:$0x3f]  ;;  %v18_v21 = vld [vmem:[%s774_s0 + $0x18] sm:$0x3f]  ;;  %v52_v22 = vpack.c.bf16 %v28_v18, %v28_v18  ;;  %v51_v23 = vpack.c.bf16 %v27_v19, %v27_v19 }
   0x6   :  { %107 = vmatpush.bf16.xpose.msra.mxu2 %v98_v13  ;;  %126 = vmatpush.bf16.xpose.msra.mxu3 %v117_v15  ;;  %v174_v24 = vsel %vm55_vm0, %v53_v16, 0  ;;  %v41_v30 = vpack.c.bf16 %v17_v20, %v17_v20  ;;  %v42_v31 = vpack.c.bf16 %v18_v21, %v18_v21  ;;  %v20_v32 = vld [vmem:[%s774_s0 + $0x28] sm:$0x3f]  ;;  %v19_v33 = vld [vmem:[%s774_s0 + $0x20] sm:$0x3f]  ;;  %v217_v41 = vshrl.u32 %v216_v40, 7 }
   0x7   :  { %v193_v25 = vsel %vm55_vm0, %v54_v17, 0  ;;  %v155_v28 = vsel %vm55_vm0, %v52_v22, 0  ;;  %v136_v29 = vsel %vm55_vm0, %v51_v23, 0  ;;  %v21_v34 = vld [vmem:[%s774_s0 + $0x30] sm:$0x3f]  ;;  %v44_v36 = vpack.c.bf16 %v20_v32, %v20_v32 }
   0x8   :  { %v22_v35 = vld [vmem:[%s774_s0 + $0x38] sm:$0x3f]  ;;  %v43_v37 = vpack.c.bf16 %v19_v33, %v19_v33  ;;  %v45_v38 = vpack.c.bf16 %v21_v34, %v21_v34  ;;  %v219_v42 = vand.u32 127, %v216_v40  ;;  %vm334_vm4 = vcmask 48128  }
   0x9   :  { %v46_v39 = vpack.c.bf16 %v22_v35, %v22_v35  ;;  %vm488_vm5 = vcmask 62464  }
   0xa   :  { %vm633_vm1 = vcmp.le.s32.totalorder %v219_v42, %v217_v41 }
   0xc   :  { %501 = vmatmul.msk.bf16.vlgmr.msra.gmra.mxu0 %vm55_vm0, %v39_v26  ;;  %502 = vmatmul.msk.bf16.vlgmr.msra.gmra.mxu1 %vm55_vm0, %v40_v27 }
   0xd   :  { %164 = vmatpush.bf16.xpose.msrb.mxu1 %v155_v28  ;;  %145 = vmatpush.bf16.xpose.msrb.mxu0 %v136_v29 }
   0xe   :  { %183 = vmatpush.bf16.xpose.msrb.mxu2 %v174_v24  ;;  %202 = vmatpush.bf16.xpose.msrb.mxu3 %v193_v25 }
   0xf   :  { %503 = vmatmul.msk.bf16.vlgmr.msra.gmra.mxu2 %vm55_vm0, %v41_v30  ;;  %504 = vmatmul.msk.bf16.vlgmr.msra.gmra.mxu3 %vm55_vm0, %v42_v31 }
  0x1c   :  { %506 = vmatmul.msk.bf16.vlgmr.msrb.gmra.mxu1 %vm55_vm0, %v44_v36  ;;  %505 = vmatmul.msk.bf16.vlgmr.msrb.gmra.mxu0 %vm55_vm0, %v43_v37 }
  0x1f   :  { %507 = vmatmul.msk.bf16.vlgmr.msrb.gmra.mxu2 %vm55_vm0, %v45_v38  ;;  %508 = vmatmul.msk.bf16.vlgmr.msrb.gmra.mxu3 %vm55_vm0, %v46_v39 }
  0x89   :  { %v71_v43 = vpop.f32.mrf.mxu0  ;;  %v90_v44 = vpop.f32.mrf.mxu1 }
  0x8a   :  { %v208_v46 = vmul.f32 0.35355338, %v71_v43  ;;  %v209_v47 = vmul.f32 0.35355338, %v90_v44 }
  0x8c   :  { %v221_v48 = vsel %vm633_vm1, %v208_v46, -1e+09  ;;  %v222_v52 = vsel %vm633_vm1, %v209_v47, -1e+09 }
  0x8d   :  { %v230_v49 = vsel %vm229_vm2, %v221_v48, -inf  ;;  %v233_v58 = vsel %vm229_vm2, %v222_v52, -inf }
  0x8e   :  { %231 = vmax.xlane.f32.xlu1 %v230_v49 }
  0x91   :  { %v92_v54 = vpop.f32.mrf.mxu1  ;;  %v73_v55 = vpop.f32.mrf.mxu0 }
  0x92   :  { %v109_v50 = vpop.f32.mrf.mxu2  ;;  %v128_v51 = vpop.f32.mrf.mxu3 }
  0x93   :  { %v210_v53 = vmul.f32 0.35355338, %v109_v50  ;;  %v211_v56 = vmul.f32 0.35355338, %v128_v51 }
  0x95   :  { %v223_v57 = vsel %vm633_vm1, %v210_v53, -1e+09  ;;  %v224_v60 = vsel %vm633_vm1, %v211_v56, -1e+09 }
  0x96   :  { %v236_v59 = vsel %vm229_vm2, %v223_v57, -inf  ;;  %234 = vmax.xlane.f32.xlu1 %v233_v58  ;;  %v239_v2 = vsel %vm229_vm2, %v224_v60, -inf }
  0x97   :  { %237 = vmax.xlane.f32.xlu0 %v236_v59 }
  0x99   :  { %v166_v63 = vpop.f32.mrf.mxu1  ;;  %v147_v0 = vpop.f32.mrf.mxu0 }
  0x9a   :  { %v111_v61 = vpop.f32.mrf.mxu2  ;;  %v130_v62 = vpop.f32.mrf.mxu3  ;;  %v213_v1 = vmul.f32 0.35355338, %v166_v63  ;;  %v212_v3 = vmul.f32 0.35355338, %v147_v0  ;;  %v33_v63 = vld [vmem:[%s775_s2 + $0x10] sm:$0x3f] }
  0x9b   :  { %v328_v0 = vpack.c.bf16 %v33_v63, %v33_v63 }
  0x9c   :  { %v226_v4 = vsel %vm633_vm1, %v213_v1, -1e+09  ;;  %v225_v6 = vsel %vm633_vm1, %v212_v3, -1e+09 }
  0x9d   :  { %v245_v5 = vsel %vm229_vm2, %v226_v4, -inf  ;;  %v242_v12 = vsel %vm229_vm2, %v225_v6, -inf  ;;  %v378_v1 = vsel %vm338_vm3, %v328_v0, 0 }
  0x9e   :  { %246 = vmax.xlane.f32.xlu1 %v245_v5  ;;  %387 = vmatpush.bf16.msra.mxu2 %v378_v1  ;;  %v32_v5 = vld [vmem:[%s775_s2 + $0x8] sm:$0x3f] }
  0x9f   :  { %240 = vmax.xlane.f32.xlu0 %v239_v2  ;;  %v34_v2 = vld [vmem:[%s775_s2 + $0x18] sm:$0x3f] }
  0xa0   :  { %v329_v3 = vpack.c.bf16 %v34_v2, %v34_v2 }
  0xa1   :  { %v149_v10 = vpop.f32.mrf.mxu0  ;;  %v168_v11 = vpop.f32.mrf.mxu1 }
  0xa2   :  { %v185_v7 = vpop.f32.mrf.mxu2  ;;  %v204_v8 = vpop.f32.mrf.mxu3 }
  0xa3   :  { %v214_v9 = vmul.f32 0.35355338, %v185_v7  ;;  %v215_v13 = vmul.f32 0.35355338, %v204_v8  ;;  %v37_v8 = vld [vmem:[%s775_s2 + $0x30] sm:$0x3f] }
  0xa4   :  { %v332_v10 = vpack.c.bf16 %v37_v8, %v37_v8 }
  0xa5   :  { %v227_v14 = vsel %vm633_vm1, %v214_v9, -1e+09  ;;  %v228_v16 = vsel %vm633_vm1, %v215_v13, -1e+09  ;;  %v35_v9 = vld [vmem:[%s775_s2 + $0x20] sm:$0x3f] }
  0xa6   :  { %v248_v15 = vsel %vm229_vm2, %v227_v14, -inf  ;;  %v251_v19 = vsel %vm229_vm2, %v228_v16, -inf  ;;  %v330_v11 = vpack.c.bf16 %v35_v9, %v35_v9  ;;  %v454_v13 = vsel %vm338_vm3, %v332_v10, 0 }
  0xa7   :  { %249 = vmax.xlane.f32.xlu2 %v248_v15  ;;  %243 = vmax.xlane.f32.xlu0 %v242_v12  ;;  %v38_v15 = vld [vmem:[%s775_s2 + $0x38] sm:$0x3f] }
  0xa8   :  { %463 = vmatpush.bf16.msrb.mxu2 %v454_v13 }
  0xaa   :  { %v187_v17 = vpop.f32.mrf.mxu2  ;;  %v206_v18 = vpop.f32.mrf.mxu3 }
  0xab   :  { %v36_v18 = vld [vmem:[%s775_s2 + $0x28] sm:$0x3f] }
  0xaf   :  { %252 = vmax.xlane.f32.xlu2 %v251_v19  ;;  %v331_v19 = vpack.c.bf16 %v36_v18, %v36_v18 }
 0x101   :  { %v232_v20 = vpop.xlane.xlu1 %231 }
 0x102   :  { %v254_v21 = vsub.f32 %v221_v48, %v232_v20 }
 0x104   :  { %v262_v22 = vmul.f32 1.442695, %v254_v21 }
 0x106   :  { %517 = vpow2.f32 %v262_v22 }
 0x109   :  { %v235_v25 = vpop.xlane.xlu1 %234 }
 0x10a   :  { %v238_v23 = vpop.xlane.xlu0 %237  ;;  %v255_v27 = vsub.f32 %v222_v52, %v235_v25 }
 0x10b   :  { %v256_v24 = vsub.f32 %v223_v57, %v238_v23  ;;  %v435_v23 = vsel %vm338_vm3, %v331_v19, 0 }
 0x10c   :  { %v661_v28 = vpop.eup %517  ;;  %v264_v30 = vmul.f32 1.442695, %v255_v27 }
 0x10d   :  { %v266_v26 = vmul.f32 1.442695, %v256_v24  ;;  %v278_v29 = vsel %vm229_vm2, %v661_v28, 0.0 }
 0x10e   :  { %279 = vadd.xlane.f32.xlu1 %v278_v29 }
 0x10f   :  { %519 = vpow2.f32 %v266_v26 }
 0x110   :  { %521 = vpow2.f32 %v264_v30 }
 0x111   :  { %v247_v36 = vpop.xlane.xlu1 %246 }
 0x112   :  { %v241_v31 = vpop.xlane.xlu0 %240  ;;  %v259_v43 = vsub.f32 %v226_v4, %v247_v36  ;;  %v397_v4 = vsel %vm338_vm3, %v329_v3, 0 }
 0x113   :  { %v257_v32 = vsub.f32 %v224_v60, %v241_v31  ;;  %v31_v60 = vld [vmem:[%s775_s2] sm:$0x3f]  ;;  %406 = vmatpush.bf16.msra.mxu3 %v397_v4 }
 0x114   :  { %v272_v48 = vmul.f32 1.442695, %v259_v43  ;;  %v326_v61 = vpack.c.bf16 %v31_v60, %v31_v60 }
 0x115   :  { %v665_v33 = vpop.eup %519  ;;  %v268_v34 = vmul.f32 1.442695, %v257_v32 }
 0x116   :  { %v284_v35 = vsel %vm229_vm2, %v665_v33, 0.0  ;;  %v669_v39 = vpop.eup %521  ;;  %v340_v62 = vsel %vm338_vm3, %v326_v61, 0 }
 0x117   :  { %523 = vpow2.f32 %v268_v34  ;;  %285 = vadd.xlane.f32.xlu2 %v284_v35  ;;  %v281_v46 = vsel %vm229_vm2, %v669_v39, 0.0  ;;  %349 = vmatpush.bf16.msra.mxu0 %v340_v62 }
 0x11a   :  { %v250_v37 = vpop.xlane.xlu2 %249  ;;  %v244_v38 = vpop.xlane.xlu0 %243 }
 0x11b   :  { %v260_v40 = vsub.f32 %v227_v14, %v250_v37  ;;  %v258_v41 = vsub.f32 %v225_v6, %v244_v38  ;;  %v327_v6 = vpack.c.bf16 %v32_v5, %v32_v5  ;;  %v416_v14 = vsel %vm338_vm3, %v330_v11, 0 }
 0x11c   :  { %425 = vmatpush.bf16.msrb.mxu0 %v416_v14 }
 0x11d   :  { %v671_v42 = vpop.eup %523  ;;  %v274_v44 = vmul.f32 1.442695, %v260_v40  ;;  %v270_v45 = vmul.f32 1.442695, %v258_v41  ;;  %v359_v7 = vsel %vm338_vm3, %v327_v6, 0 }
 0x11e   :  { %v287_v47 = vsel %vm229_vm2, %v671_v42, 0.0  ;;  %368 = vmatpush.bf16.msra.mxu1 %v359_v7 }
 0x11f   :  { %525 = vpow2.f32 %v274_v44  ;;  %282 = vadd.xlane.f32.xlu2 %v281_v46  ;;  %288 = vadd.xlane.f32.xlu0 %v287_v47 }
 0x120   :  { %527 = vpow2.f32 %v270_v45 }
 0x121   :  { %529 = vpow2.f32 %v272_v48 }
 0x122   :  { %v253_v49 = vpop.xlane.xlu2 %252  ;;  %444 = vmatpush.bf16.msrb.mxu1 %v435_v23 }
 0x123   :  { %v261_v50 = vsub.f32 %v228_v16, %v253_v49  ;;  %v333_v16 = vpack.c.bf16 %v38_v15, %v38_v15 }
 0x125   :  { %v677_v51 = vpop.eup %525  ;;  %v276_v52 = vmul.f32 1.442695, %v261_v50  ;;  %v473_v17 = vsel %vm338_vm3, %v333_v16, 0 }
 0x126   :  { %v679_v53 = vpop.eup %527  ;;  %v296_v54 = vsel %vm229_vm2, %v677_v51, 0.0  ;;  %482 = vmatpush.bf16.msrb.mxu3 %v473_v17 }
 0x127   :  { %531 = vpow2.f32 %v276_v52  ;;  %297 = vadd.xlane.f32.xlu0 %v296_v54  ;;  %v290_v55 = vsel %vm229_vm2, %v679_v53, 0.0  ;;  %v685_v56 = vpop.eup %529 }
 0x128   :  { %291 = vadd.xlane.f32.xlu2 %v290_v55  ;;  %v293_v59 = vsel %vm229_vm2, %v685_v56, 0.0 }
 0x12d   :  { %v687_v57 = vpop.eup %531 }
 0x12e   :  { %v299_v58 = vsel %vm229_vm2, %v687_v57, 0.0 }
 0x12f   :  { %300 = vadd.xlane.f32.xlu1 %v299_v58  ;;  %294 = vadd.xlane.f32.xlu0 %v293_v59 }
 0x181   :  { %v280_v12 = vpop.xlane.xlu1 %279 }
 0x182   :  { %533 = vrcp.f32 %v280_v12 }
 0x188   :  { %v534_v20 = vpop.eup %533 }
 0x189   :  { %v310_v22 = vmul.f32 %v534_v20, %v661_v28 }
 0x18a   :  { %v286_v21 = vpop.xlane.xlu2 %285 }
 0x18b   :  { %535 = vrcp.f32 %v286_v21  ;;  %v318_v24 = vpack.c.bf16 %v310_v22, %v310_v22 }
 0x18d   :  { %509 = vmatmul.msk.bf16.vlgmr.msra.gmra.mxu0 %vm334_vm4, %v318_v24 }
 0x191   :  { %v536_v25 = vpop.eup %535 }
 0x192   :  { %v312_v26 = vmul.f32 %v536_v25, %v665_v33  ;;  %v283_v27 = vpop.xlane.xlu2 %282  ;;  %v289_v29 = vpop.xlane.xlu0 %288 }
 0x193   :  { %537 = vrcp.f32 %v283_v27 }
 0x194   :  { %v320_v30 = vpack.c.bf16 %v312_v26, %v312_v26  ;;  %539 = vrcp.f32 %v289_v29 }
 0x196   :  { %511 = vmatmul.msk.bf16.vlgmr.msra.gmra.mxu2 %vm334_vm4, %v320_v30 }
 0x199   :  { %v538_v31 = vpop.eup %537 }
 0x19a   :  { %v540_v28 = vpop.eup %539  ;;  %v311_v32 = vmul.f32 %v538_v31, %v669_v39  ;;  %v298_v34 = vpop.xlane.xlu0 %297 }
 0x19b   :  { %v313_v35 = vmul.f32 %v540_v28, %v671_v42  ;;  %v292_v36 = vpop.xlane.xlu2 %291  ;;  %541 = vrcp.f32 %v298_v34 }
 0x19c   :  { %v319_v37 = vpack.c.bf16 %v311_v32, %v311_v32  ;;  %543 = vrcp.f32 %v292_v36 }
 0x19d   :  { %v321_v38 = vpack.c.bf16 %v313_v35, %v313_v35 }
 0x19e   :  { %510 = vmatmul.msk.bf16.vlgmr.msra.gmra.mxu1 %vm334_vm4, %v319_v37 }
 0x19f   :  { %512 = vmatmul.msk.bf16.vlgmr.msra.gmra.mxu3 %vm334_vm4, %v321_v38 }
 0x1a1   :  { %v542_v33 = vpop.eup %541 }
 0x1a2   :  { %v544_v40 = vpop.eup %543  ;;  %v316_v41 = vmul.f32 %v542_v33, %v677_v51  ;;  %v301_v43 = vpop.xlane.xlu1 %300 }
 0x1a3   :  { %v295_v44 = vpop.xlane.xlu0 %294  ;;  %v314_v39 = vmul.f32 %v544_v40, %v679_v53  ;;  %545 = vrcp.f32 %v301_v43 }
 0x1a4   :  { %v324_v45 = vpack.c.bf16 %v316_v41, %v316_v41  ;;  %547 = vrcp.f32 %v295_v44 }
 0x1a5   :  { %v322_v42 = vpack.c.bf16 %v314_v39, %v314_v39 }
 0x1a6   :  { %515 = vmatmul.msk.bf16.vlgmr.msrb.gmra.mxu2 %vm334_vm4, %v324_v45 }
 0x1a7   :  { %513 = vmatmul.msk.bf16.vlgmr.msrb.gmra.mxu0 %vm334_vm4, %v322_v42 }
 0x1a9   :  { %v546_v46 = vpop.eup %545 }
 0x1aa   :  { %v548_v47 = vpop.eup %547  ;;  %v317_v48 = vmul.f32 %v546_v46, %v687_v57 }
 0x1ab   :  { %v315_v49 = vmul.f32 %v548_v47, %v685_v56 }
 0x1ac   :  { %v325_v50 = vpack.c.bf16 %v317_v48, %v317_v48 }
 0x1ad   :  { %v323_v51 = vpack.c.bf16 %v315_v49, %v315_v49 }
 0x1af   :  { %514 = vmatmul.msk.bf16.vlgmr.msrb.gmra.mxu1 %vm334_vm4, %v323_v51  ;;  %516 = vmatmul.msk.bf16.vlgmr.msrb.gmra.mxu3 %vm334_vm4, %v325_v50 }
 0x20a   :  { %v351_v52 = vpop.f32.mrf.mxu0 }
 0x20b   :  { %489 = vst.msk [vmem:[%s776_s3] sm:$0x3f] %vm488_vm5, %v351_v52 }
 0x212   :  { %v353_v53 = vpop.f32.mrf.mxu0 }
 0x219   :  { %v389_v54 = vpop.f32.mrf.mxu2 }
 0x21a   :  { %491 = vst.msk [vmem:[%s776_s3 + $0x10] sm:$0x3f] %vm488_vm5, %v389_v54 }
 0x21b   :  { %v370_v55 = vpop.f32.mrf.mxu1 }
 0x21c   :  { %490 = vst.msk [vmem:[%s776_s3 + $0x8] sm:$0x3f] %vm488_vm5, %v370_v55 }
 0x221   :  { %v391_v56 = vpop.f32.mrf.mxu2 }
 0x222   :  { %v408_v57 = vpop.f32.mrf.mxu3 }
 0x223   :  { %492 = vst.msk [vmem:[%s776_s3 + $0x18] sm:$0x3f] %vm488_vm5, %v408_v57  ;;  %v372_v58 = vpop.f32.mrf.mxu1 }
 0x224   :  { %v427_v59 = vpop.f32.mrf.mxu0 }
 0x225   :  { %493 = vst.msk [vmem:[%s776_s3 + $0x20] sm:$0x3f] %vm488_vm5, %v427_v59 }
 0x229   :  { %v465_v60 = vpop.f32.mrf.mxu2 }
 0x22a   :  { %v410_v61 = vpop.f32.mrf.mxu3  ;;  %495 = vst.msk [vmem:[%s776_s3 + $0x30] sm:$0x3f] %vm488_vm5, %v465_v60 }
 0x22c   :  { %v429_v62 = vpop.f32.mrf.mxu0  ;;  %v446_v63 = vpop.f32.mrf.mxu1 }
 0x22d   :  { %494 = vst.msk [vmem:[%s776_s3 + $0x28] sm:$0x3f] %vm488_vm5, %v446_v63 }
 0x231   :  { %v467_v0 = vpop.f32.mrf.mxu2 }
 0x232   :  { %v484_v1 = vpop.f32.mrf.mxu3 }
 0x233   :  { %496 = vst.msk [vmem:[%s776_s3 + $0x38] sm:$0x3f] %vm488_vm5, %v484_v1 }
 0x234   :  { %v448_v2 = vpop.f32.mrf.mxu1 }
 0x23a   :  { %v486_v3 = vpop.f32.mrf.mxu3 }

// kernel: closed_call.249
= control target key start
LH: loop header
LB: loop body
LE: loop exit
PB: predicated region body
PF: predicated region fallthrough
CT: control target
= control target key end

     0   :  { %vm31_vm0 = vcmask 261120   ;;  %vm35_vm1 = vcmask 257024   ;;  %v180_v4 = vmov 32.0   ;;  %vm141_vm9 = vcmask 523264   ;;  %s298_s0 = inlined_call_operand.vmem [shape: f32[12,32], index: 0, kind: input, shape index: {}]   ;;  %s299_s1 = inlined_call_operand.vmem [shape: f32[1,32], index: 1, kind: input, shape index: {}]   ;;  %s300_s2 = inlined_call_operand.vmem [shape: f32[1,32], index: 2, kind: input, shape index: {}]   ;;  %s301_s4 = inlined_call_operand.vmem [shape: f32[1,64], index: 4, kind: input, shape index: {}]   ;;  %s302_s3 = inlined_call_operand.vmem [shape: f32[32,64], index: 3, kind: input, shape index: {}]   ;;  %s303_s6 = inlined_call_operand.vmem [shape: f32[1,32], index: 6, kind: input, shape index: {}]   ;;  %s304_s5 = inlined_call_operand.vmem [shape: f32[64,32], index: 5, kind: input, shape index: {}]   ;;  %s305_s7 = inlined_call_operand.vmem [shape: f32[12,32], index: 7, kind: output, shape index: {}]  }
   0x1   :  { %v224_v0 = vld [vmem:[%s298_s0] sm:$0xff]  ;;  %v231_v2 = vld [vmem:[%s298_s0 + $0x8] sm:$0xf]  ;;  %174 = vrcp.f32 %v180_v4  ;;  %v96_v21 = vld [vmem:[%s302_s3 + $0x10] sm:$0xff] }
   0x2   :  { %v32_v1 = vsel %vm31_vm0, %v224_v0, 0.0  ;;  %v36_v3 = vsel %vm35_vm1, %v231_v2, 0.0  ;;  %v97_v22 = vld [vmem:[%s302_s3 + $0x18] sm:$0xff]  ;;  %v94_v24 = vld [vmem:[%s302_s3] sm:$0xff]  ;;  %v95_v25 = vld [vmem:[%s302_s3 + $0x8] sm:$0xff] }
   0x3   :  { %33 = vadd.xlane.f32.xlu0 %v32_v1  ;;  %v100_v23 = vpack.c.bf16 %v97_v22, %v96_v21  ;;  %v99_v27 = vpack.c.bf16 %v95_v25, %v94_v24  ;;  %v170_v46 = vld [vmem:[%s299_s1] ss:$0 sm:$0xff]  ;;  %v130_v56 = vld [vmem:[%s304_s5 + $0x30] sm:$0xff]  ;;  %v131_v57 = vld [vmem:[%s304_s5 + $0x38] sm:$0xff] }
   0x4   :  { %v171_v51 = vld [vmem:[%s300_s2] ss:$0 sm:$0xff]  ;;  %v136_v58 = vpack.c.bf16 %v131_v57, %v130_v56  ;;  %v129_v60 = vld [vmem:[%s304_s5 + $0x28] sm:$0xff]  ;;  %v126_v62 = vld [vmem:[%s304_s5 + $0x10] sm:$0xff] }
   0x5   :  { %114 = vmatpush.bf16.msra.mxu0 %v100_v23  ;;  %v128_v59 = vld [vmem:[%s304_s5 + $0x20] sm:$0xff]  ;;  %v127_v63 = vld [vmem:[%s304_s5 + $0x18] sm:$0xff]  ;;  %v125_v4 = vld [vmem:[%s304_s5 + $0x8] sm:$0xff] }
   0x6   :  { %149 = vmatpush.bf16.msra.mxu1 %v136_v58  ;;  %v135_v61 = vpack.c.bf16 %v129_v60, %v128_v59  ;;  %v134_v1 = vpack.c.bf16 %v127_v63, %v126_v62 }
   0x7   :  { %v175_v5 = vpop.eup %174 }
   0x8   :  { %v40_v6 = vmul.f32 32.0, %v175_v5  ;;  %vm44_vm2 = vweird.f32 %v175_v5 }
   0x9   :  { %115 = vmatpush.bf16.msra.mxu0 %v99_v27 }
   0xa   :  { %v41_v7 = vsub.f32 1.0, %v40_v6  ;;  %150 = vmatpush.bf16.msra.mxu1 %v135_v61 }
   0xb   :  { %37 = vadd.xlane.f32.xlu0 %v36_v3  ;;  %v124_v3 = vld [vmem:[%s304_s5] sm:$0xff] }
   0xc   :  { %v42_v8 = vmul.f32 %v175_v5, %v41_v7  ;;  %v172_v7 = vld [vmem:[%s301_s4] ss:$0 sm:$0xff] }
   0xe   :  { %v43_v9 = vadd.f32 %v175_v5, %v42_v8  ;;  %151 = vmatpush.bf16.msra.mxu1 %v134_v1 }
  0x10   :  { %v45_v10 = vsel %vm44_vm2, %v175_v5, %v43_v9  ;;  %v133_v5 = vpack.c.bf16 %v125_v4, %v124_v3 }
  0x12   :  { %152 = vmatpush.bf16.msra.mxu1 %v133_v5 }
  0x76   :  { %v34_v11 = vpop.xlane.xlu0 %33 }
  0x77   :  { %v46_v12 = vmul.f32 %v45_v10, %v34_v11 }
  0x79   :  { %v48_v13 = vsub.f32 %v224_v0, %v46_v12 }
  0x7b   :  { %v50_v14 = vmul.f32 %v48_v13, %v48_v13 }
  0x7d   :  { %v52_v15 = vsel %vm31_vm0, %v50_v14, 0.0  ;;  %v173_v14 = vld [vmem:[%s303_s6] ss:$0 sm:$0xff] }
  0x7e   :  { %53 = vadd.xlane.f32.xlu1 %v52_v15  ;;  %v38_v16 = vpop.xlane.xlu0 %37 }
  0x7f   :  { %v47_v17 = vmul.f32 %v45_v10, %v38_v16 }
  0x81   :  { %v49_v18 = vsub.f32 %v231_v2, %v47_v17 }
  0x83   :  { %v51_v19 = vmul.f32 %v49_v18, %v49_v18 }
  0x85   :  { %v55_v20 = vsel %vm35_vm1, %v51_v19, 0.0 }
  0x86   :  { %56 = vadd.xlane.f32.xlu1 %v55_v20 }
  0xf1   :  { %v54_v26 = vpop.xlane.xlu1 %53 }
  0xf2   :  { %v58_v28 = vmul.f32 %v54_v26, %v45_v10 }
  0xf4   :  { %v60_v29 = vadd.f32 1e-05, %v58_v28 }
  0xf6   :  { %176 = vrsqrt.f32 %v60_v29  ;;  %vm68_vm4 = vweird.f32 %v60_v29 }
  0xf9   :  { %v57_v30 = vpop.xlane.xlu1 %56 }
  0xfa   :  { %v59_v31 = vmul.f32 %v57_v30, %v45_v10 }
  0xfc   :  { %v177_v32 = vpop.eup %176  ;;  %v61_v33 = vadd.f32 1e-05, %v59_v31 }
  0xfd   :  { %v63_v34 = vmul.f32 %v177_v32, %v60_v29  ;;  %vm69_vm3 = vweird.f32 %v177_v32 }
  0xfe   :  { %178 = vrsqrt.f32 %v61_v33  ;;  %vm70_vm5 = vmor %vm68_vm4, %vm69_vm3  ;;  %vm78_vm7 = vweird.f32 %v61_v33 }
  0xff   :  { %v64_v35 = vmul.f32 %v177_v32, %v63_v34 }
 0x101   :  { %v65_v36 = vmul.f32 0.5, %v64_v35 }
 0x103   :  { %v66_v37 = vsub.f32 1.5, %v65_v36 }
 0x104   :  { %v179_v38 = vpop.eup %178 }
 0x105   :  { %v67_v39 = vmul.f32 %v177_v32, %v66_v37  ;;  %v73_v40 = vmul.f32 %v179_v38, %v61_v33  ;;  %vm79_vm6 = vweird.f32 %v179_v38 }
 0x106   :  { %vm80_vm8 = vmor %vm78_vm7, %vm79_vm6 }
 0x107   :  { %v74_v41 = vmul.f32 %v179_v38, %v73_v40  ;;  %v71_v42 = vsel %vm70_vm5, %v177_v32, %v67_v39 }
 0x108   :  { %v82_v45 = vmul.f32 %v71_v42, %v48_v13 }
 0x109   :  { %v75_v43 = vmul.f32 0.5, %v74_v41 }
 0x10a   :  { %v87_v50 = vmul.f32 %v170_v46, %v82_v45 }
 0x10b   :  { %v76_v44 = vsub.f32 1.5, %v75_v43 }
 0x10c   :  { %v92_v53 = vadd.f32 %v171_v51, %v87_v50 }
 0x10d   :  { %v77_v47 = vmul.f32 %v179_v38, %v76_v44 }
 0x10f   :  { %v81_v48 = vsel %vm80_vm8, %v179_v38, %v77_v47 }
 0x110   :  { %v83_v49 = vmul.f32 %v81_v48, %v49_v18 }
 0x112   :  { %v88_v52 = vmul.f32 %v170_v46, %v83_v49 }
 0x114   :  { %v93_v54 = vadd.f32 %v171_v51, %v88_v52 }
 0x116   :  { %v98_v55 = vpack.c.bf16 %v93_v54, %v92_v53 }
 0x118   :  { %167 = vmatmul.msk.bf16.vlgmr.msra.gmra.mxu0 %vm31_vm0, %v98_v55 }
 0x195   :  { %v117_v6 = vpop.f32.mrf.mxu0 }
 0x196   :  { %v118_v8 = vadd.f32 %v172_v7, %v117_v6 }
 0x198   :  { %v122_v11 = vmax.f32 %v118_v8, 0.0 }
 0x19d   :  { %v119_v9 = vpop.f32.mrf.mxu0 }
 0x19e   :  { %v120_v10 = vadd.f32 %v172_v7, %v119_v9 }
 0x1a0   :  { %v123_v12 = vmax.f32 %v120_v10, 0.0 }
 0x1a2   :  { %v132_v13 = vpack.c.bf16 %v123_v12, %v122_v11 }
 0x1a4   :  { %168 = vmatmul.msk.bf16.vlgmr.msra.gmra.mxu1 %vm141_vm9, %v132_v13 }
 0x221   :  { %v154_v15 = vpop.f32.mrf.mxu1 }
 0x222   :  { %v155_v16 = vadd.f32 %v173_v14, %v154_v15 }
 0x224   :  { %v159_v17 = vadd.f32 %v155_v16, %v224_v0 }
 0x226   :  { %161 = vst.msk [vmem:[%s305_s7] sm:$0xff] %vm31_vm0, %v159_v17 }
 0x229   :  { %v156_v18 = vpop.f32.mrf.mxu1 }
 0x22a   :  { %v157_v19 = vadd.f32 %v173_v14, %v156_v18 }
 0x22c   :  { %v160_v20 = vadd.f32 %v157_v19, %v231_v2 }
 0x22e   :  { %162 = vst.msk [vmem:[%s305_s7 + $0x8] sm:$0xf] %vm35_vm1, %v160_v20 }

// kernel: closed_call.247
= control target key start
LH: loop header
LB: loop body
LE: loop exit
PB: predicated region body
PF: predicated region fallthrough
CT: control target
= control target key end

     0   :  { %vm55_vm0 = vcmask 64512   ;;  %vm216_vm1 = vcmask 62464   ;;  %vm324_vm2 = vcmask 1043456   ;;  %s738_s1 = inlined_call_operand.vmem [shape: f32[8,8,8], index: 1, kind: input, shape index: {}]   ;;  %s739_s0 = inlined_call_operand.vmem [shape: f32[8,6,8], index: 0, kind: input, shape index: {}]   ;;  %s740_s2 = inlined_call_operand.vmem [shape: f32[8,8,8], index: 2, kind: input, shape index: {}]   ;;  %s741_s3 = inlined_call_operand.vmem [shape: f32[8,6,8], index: 3, kind: output, shape index: {}]  }
   0x1   :  { %v23_v0 = vld [vmem:[%s738_s1] sm:$0xff]  ;;  %v24_v1 = vld [vmem:[%s738_s1 + $0x8] sm:$0xff]  ;;  %v25_v2 = vld [vmem:[%s738_s1 + $0x10] sm:$0xff] }
   0x2   :  { %v47_v3 = vpack.c.bf16 %v23_v0, %v23_v0  ;;  %v48_v4 = vpack.c.bf16 %v24_v1, %v24_v1  ;;  %v49_v5 = vpack.c.bf16 %v25_v2, %v25_v2  ;;  %v26_v6 = vld [vmem:[%s738_s1 + $0x18] sm:$0xff]  ;;  %v29_v8 = vld [vmem:[%s738_s1 + $0x30] sm:$0xff]  ;;  %v28_v13 = vld [vmem:[%s738_s1 + $0x28] sm:$0xff] }
   0x3   :  { %v50_v7 = vpack.c.bf16 %v26_v6, %v26_v6  ;;  %v30_v12 = vld [vmem:[%s738_s1 + $0x38] sm:$0xff]  ;;  %v27_v14 = vld [vmem:[%s738_s1 + $0x20] sm:$0xff]  ;;  %v16_v17 = vld [vmem:[%s739_s0 + $0x8] sm:$0x3f]  ;;  %v53_v18 = vpack.c.bf16 %v29_v8, %v29_v8  ;;  %v52_v22 = vpack.c.bf16 %v28_v13, %v28_v13 }
   0x4   :  { %v60_v9 = vsel %vm55_vm0, %v47_v3, 0  ;;  %v79_v10 = vsel %vm55_vm0, %v48_v4, 0  ;;  %v98_v11 = vsel %vm55_vm0, %v49_v5, 0  ;;  %v15_v16 = vld [vmem:[%s739_s0] sm:$0x3f]  ;;  %v54_v19 = vpack.c.bf16 %v30_v12, %v30_v12 }
   0x5   :  { %69 = vmatpush.bf16.xpose.msra.mxu0 %v60_v9  ;;  %88 = vmatpush.bf16.xpose.msra.mxu1 %v79_v10  ;;  %v117_v15 = vsel %vm55_vm0, %v50_v7, 0  ;;  %v17_v20 = vld [vmem:[%s739_s0 + $0x10] sm:$0x3f]  ;;  %v18_v21 = vld [vmem:[%s739_s0 + $0x18] sm:$0x3f]  ;;  %v51_v23 = vpack.c.bf16 %v27_v14, %v27_v14  ;;  %v174_v24 = vsel %vm55_vm0, %v53_v18, 0  ;;  %v39_v26 = vpack.c.bf16 %v15_v16, %v15_v16 }
   0x6   :  { %107 = vmatpush.bf16.xpose.msra.mxu2 %v98_v11  ;;  %126 = vmatpush.bf16.xpose.msra.mxu3 %v117_v15  ;;  %v193_v25 = vsel %vm55_vm0, %v54_v19, 0  ;;  %v40_v27 = vpack.c.bf16 %v16_v17, %v16_v17  ;;  %v155_v28 = vsel %vm55_vm0, %v52_v22, 0  ;;  %v41_v30 = vpack.c.bf16 %v17_v20, %v17_v20  ;;  %v20_v32 = vld [vmem:[%s739_s0 + $0x28] sm:$0x3f]  ;;  %v19_v33 = vld [vmem:[%s739_s0 + $0x20] sm:$0x3f] }
   0x7   :  { %v136_v29 = vsel %vm55_vm0, %v51_v23, 0  ;;  %v42_v31 = vpack.c.bf16 %v18_v21, %v18_v21  ;;  %v21_v34 = vld [vmem:[%s739_s0 + $0x30] sm:$0x3f]  ;;  %v22_v35 = vld [vmem:[%s739_s0 + $0x38] sm:$0x3f]  ;;  %v44_v36 = vpack.c.bf16 %v20_v32, %v20_v32  ;;  %v43_v37 = vpack.c.bf16 %v19_v33, %v19_v33 }
   0x8   :  { %v45_v38 = vpack.c.bf16 %v21_v34, %v21_v34  ;;  %v46_v39 = vpack.c.bf16 %v22_v35, %v22_v35 }
   0xc   :  { %486 = vmatmul.msk.bf16.vlgmr.msra.gmra.mxu0 %vm55_vm0, %v39_v26  ;;  %487 = vmatmul.msk.bf16.vlgmr.msra.gmra.mxu1 %vm55_vm0, %v40_v27 }
   0xd   :  { %164 = vmatpush.bf16.xpose.msrb.mxu1 %v155_v28  ;;  %145 = vmatpush.bf16.xpose.msrb.mxu0 %v136_v29 }
   0xe   :  { %183 = vmatpush.bf16.xpose.msrb.mxu2 %v174_v24  ;;  %202 = vmatpush.bf16.xpose.msrb.mxu3 %v193_v25 }
   0xf   :  { %488 = vmatmul.msk.bf16.vlgmr.msra.gmra.mxu2 %vm55_vm0, %v41_v30  ;;  %489 = vmatmul.msk.bf16.vlgmr.msra.gmra.mxu3 %vm55_vm0, %v42_v31 }
  0x1c   :  { %491 = vmatmul.msk.bf16.vlgmr.msrb.gmra.mxu1 %vm55_vm0, %v44_v36  ;;  %490 = vmatmul.msk.bf16.vlgmr.msrb.gmra.mxu0 %vm55_vm0, %v43_v37 }
  0x1f   :  { %492 = vmatmul.msk.bf16.vlgmr.msrb.gmra.mxu2 %vm55_vm0, %v45_v38  ;;  %493 = vmatmul.msk.bf16.vlgmr.msrb.gmra.mxu3 %vm55_vm0, %v46_v39 }
  0x89   :  { %v71_v40 = vpop.f32.mrf.mxu0  ;;  %v90_v41 = vpop.f32.mrf.mxu1 }
  0x8a   :  { %v208_v42 = vmul.f32 0.35355338, %v71_v40  ;;  %v209_v44 = vmul.f32 0.35355338, %v90_v41 }
  0x8c   :  { %v217_v43 = vsel %vm216_vm1, %v208_v42, -inf  ;;  %v220_v50 = vsel %vm216_vm1, %v209_v44, -inf }
  0x8d   :  { %218 = vmax.xlane.f32.xlu1 %v217_v43 }
  0x91   :  { %v92_v48 = vpop.f32.mrf.mxu1  ;;  %v73_v49 = vpop.f32.mrf.mxu0 }
  0x92   :  { %v109_v45 = vpop.f32.mrf.mxu2  ;;  %v128_v46 = vpop.f32.mrf.mxu3  ;;  %v31_v48 = vld [vmem:[%s740_s2] sm:$0xff] }
  0x93   :  { %v210_v47 = vmul.f32 0.35355338, %v109_v45  ;;  %v211_v52 = vmul.f32 0.35355338, %v128_v46  ;;  %v313_v49 = vpack.c.bf16 %v31_v48, %v31_v48 }
  0x95   :  { %v223_v51 = vsel %vm216_vm1, %v210_v47, -inf  ;;  %221 = vmax.xlane.f32.xlu1 %v220_v50  ;;  %v226_v56 = vsel %vm216_vm1, %v211_v52, -inf  ;;  %v326_v50 = vsel %vm324_vm2, %v313_v49, 0 }
  0x96   :  { %224 = vmax.xlane.f32.xlu0 %v223_v51  ;;  %335 = vmatpush.bf16.msra.mxu0 %v326_v50  ;;  %v33_v51 = vld [vmem:[%s740_s2 + $0x10] sm:$0xff] }
  0x99   :  { %v166_v55 = vpop.f32.mrf.mxu1  ;;  %v147_v57 = vpop.f32.mrf.mxu0 }
  0x9a   :  { %v111_v53 = vpop.f32.mrf.mxu2  ;;  %v130_v54 = vpop.f32.mrf.mxu3  ;;  %v213_v58 = vmul.f32 0.35355338, %v166_v55  ;;  %v212_v60 = vmul.f32 0.35355338, %v147_v57  ;;  %v32_v57 = vld [vmem:[%s740_s2 + $0x8] sm:$0xff] }
  0x9b   :  { %v34_v54 = vld [vmem:[%s740_s2 + $0x18] sm:$0xff] }
  0x9c   :  { %v232_v59 = vsel %vm216_vm1, %v213_v58, -inf  ;;  %v229_v0 = vsel %vm216_vm1, %v212_v60, -inf  ;;  %v316_v55 = vpack.c.bf16 %v34_v54, %v34_v54 }
  0x9d   :  { %233 = vmax.xlane.f32.xlu1 %v232_v59 }
  0x9e   :  { %227 = vmax.xlane.f32.xlu0 %v226_v56  ;;  %v383_v56 = vsel %vm324_vm2, %v316_v55, 0 }
  0x9f   :  { %392 = vmatpush.bf16.msra.mxu3 %v383_v56 }
  0xa1   :  { %v149_v1 = vpop.f32.mrf.mxu0  ;;  %v168_v2 = vpop.f32.mrf.mxu1 }
  0xa2   :  { %v185_v61 = vpop.f32.mrf.mxu2  ;;  %v204_v62 = vpop.f32.mrf.mxu3 }
  0xa3   :  { %v214_v63 = vmul.f32 0.35355338, %v185_v61  ;;  %v215_v4 = vmul.f32 0.35355338, %v204_v62  ;;  %v35_v61 = vld [vmem:[%s740_s2 + $0x20] sm:$0xff] }
  0xa5   :  { %v235_v3 = vsel %vm216_vm1, %v214_v63, -inf  ;;  %v238_v7 = vsel %vm216_vm1, %v215_v4, -inf }
  0xa6   :  { %236 = vmax.xlane.f32.xlu2 %v235_v3  ;;  %230 = vmax.xlane.f32.xlu0 %v229_v0  ;;  %v38_v3 = vld [vmem:[%s740_s2 + $0x38] sm:$0xff] }
  0xaa   :  { %v187_v5 = vpop.f32.mrf.mxu2  ;;  %v206_v6 = vpop.f32.mrf.mxu3 }
  0xab   :  { %v36_v6 = vld [vmem:[%s740_s2 + $0x28] sm:$0xff] }
  0xae   :  { %239 = vmax.xlane.f32.xlu2 %v238_v7  ;;  %v318_v7 = vpack.c.bf16 %v36_v6, %v36_v6 }
 0x100   :  { %v219_v8 = vpop.xlane.xlu1 %218 }
 0x101   :  { %v241_v9 = vsub.f32 %v208_v42, %v219_v8 }
 0x103   :  { %v249_v10 = vmul.f32 1.442695, %v241_v9 }
 0x105   :  { %502 = vpow2.f32 %v249_v10 }
 0x108   :  { %v222_v13 = vpop.xlane.xlu1 %221 }
 0x109   :  { %v225_v11 = vpop.xlane.xlu0 %224  ;;  %v242_v15 = vsub.f32 %v209_v44, %v222_v13 }
 0x10a   :  { %v243_v12 = vsub.f32 %v210_v47, %v225_v11  ;;  %v421_v11 = vsel %vm324_vm2, %v318_v7, 0 }
 0x10b   :  { %v626_v16 = vpop.eup %502  ;;  %v251_v18 = vmul.f32 1.442695, %v242_v15 }
 0x10c   :  { %v253_v14 = vmul.f32 1.442695, %v243_v12  ;;  %v265_v17 = vsel %vm216_vm1, %v626_v16, 0.0 }
 0x10d   :  { %266 = vadd.xlane.f32.xlu1 %v265_v17 }
 0x10e   :  { %504 = vpow2.f32 %v253_v14 }
 0x10f   :  { %506 = vpow2.f32 %v251_v18 }
 0x110   :  { %v234_v24 = vpop.xlane.xlu1 %233 }
 0x111   :  { %v228_v19 = vpop.xlane.xlu0 %227  ;;  %v246_v31 = vsub.f32 %v213_v58, %v234_v24  ;;  %v314_v58 = vpack.c.bf16 %v32_v57, %v32_v57 }
 0x112   :  { %v244_v20 = vsub.f32 %v211_v52, %v228_v19  ;;  %v315_v52 = vpack.c.bf16 %v33_v51, %v33_v51 }
 0x113   :  { %v259_v36 = vmul.f32 1.442695, %v246_v31  ;;  %v345_v59 = vsel %vm324_vm2, %v314_v58, 0 }
 0x114   :  { %v630_v21 = vpop.eup %504  ;;  %v255_v22 = vmul.f32 1.442695, %v244_v20  ;;  %v364_v53 = vsel %vm324_vm2, %v315_v52, 0  ;;  %354 = vmatpush.bf16.msra.mxu1 %v345_v59 }
 0x115   :  { %v271_v23 = vsel %vm216_vm1, %v630_v21, 0.0  ;;  %v634_v27 = vpop.eup %506  ;;  %373 = vmatpush.bf16.msra.mxu2 %v364_v53 }
 0x116   :  { %508 = vpow2.f32 %v255_v22  ;;  %272 = vadd.xlane.f32.xlu2 %v271_v23  ;;  %v268_v34 = vsel %vm216_vm1, %v634_v27, 0.0 }
 0x118   :  { %430 = vmatpush.bf16.msrb.mxu1 %v421_v11 }
 0x119   :  { %v237_v25 = vpop.xlane.xlu2 %236  ;;  %v231_v26 = vpop.xlane.xlu0 %230 }
 0x11a   :  { %v247_v28 = vsub.f32 %v214_v63, %v237_v25  ;;  %v245_v29 = vsub.f32 %v212_v60, %v231_v26  ;;  %v37_v60 = vld [vmem:[%s740_s2 + $0x30] sm:$0xff]  ;;  %v317_v63 = vpack.c.bf16 %v35_v61, %v35_v61 }
 0x11b   :  { %v319_v62 = vpack.c.bf16 %v37_v60, %v37_v60 }
 0x11c   :  { %v636_v30 = vpop.eup %508  ;;  %v261_v32 = vmul.f32 1.442695, %v247_v28  ;;  %v257_v33 = vmul.f32 1.442695, %v245_v29  ;;  %v402_v2 = vsel %vm324_vm2, %v317_v63, 0 }
 0x11d   :  { %v274_v35 = vsel %vm216_vm1, %v636_v30, 0.0  ;;  %v440_v1 = vsel %vm324_vm2, %v319_v62, 0  ;;  %411 = vmatpush.bf16.msrb.mxu0 %v402_v2 }
 0x11e   :  { %510 = vpow2.f32 %v261_v32  ;;  %269 = vadd.xlane.f32.xlu2 %v268_v34  ;;  %275 = vadd.xlane.f32.xlu0 %v274_v35 }
 0x11f   :  { %512 = vpow2.f32 %v257_v33  ;;  %449 = vmatpush.bf16.msrb.mxu2 %v440_v1 }
 0x120   :  { %514 = vpow2.f32 %v259_v36 }
 0x121   :  { %v240_v37 = vpop.xlane.xlu2 %239 }
 0x122   :  { %v248_v38 = vsub.f32 %v215_v4, %v240_v37  ;;  %v320_v4 = vpack.c.bf16 %v38_v3, %v38_v3 }
 0x124   :  { %v642_v39 = vpop.eup %510  ;;  %v263_v40 = vmul.f32 1.442695, %v248_v38  ;;  %v459_v5 = vsel %vm324_vm2, %v320_v4, 0 }
 0x125   :  { %v644_v41 = vpop.eup %512  ;;  %v283_v42 = vsel %vm216_vm1, %v642_v39, 0.0  ;;  %468 = vmatpush.bf16.msrb.mxu3 %v459_v5 }
 0x126   :  { %516 = vpow2.f32 %v263_v40  ;;  %284 = vadd.xlane.f32.xlu0 %v283_v42  ;;  %v277_v43 = vsel %vm216_vm1, %v644_v41, 0.0  ;;  %v650_v44 = vpop.eup %514 }
 0x127   :  { %278 = vadd.xlane.f32.xlu2 %v277_v43  ;;  %v280_v47 = vsel %vm216_vm1, %v650_v44, 0.0 }
 0x12c   :  { %v652_v45 = vpop.eup %516 }
 0x12d   :  { %v286_v46 = vsel %vm216_vm1, %v652_v45, 0.0 }
 0x12e   :  { %287 = vadd.xlane.f32.xlu1 %v286_v46  ;;  %281 = vadd.xlane.f32.xlu0 %v280_v47 }
 0x180   :  { %v267_v0 = vpop.xlane.xlu1 %266 }
 0x181   :  { %518 = vrcp.f32 %v267_v0 }
 0x187   :  { %v519_v8 = vpop.eup %518 }
 0x188   :  { %v297_v10 = vmul.f32 %v519_v8, %v626_v16 }
 0x189   :  { %v273_v9 = vpop.xlane.xlu2 %272 }
 0x18a   :  { %520 = vrcp.f32 %v273_v9  ;;  %v305_v12 = vpack.c.bf16 %v297_v10, %v297_v10 }
 0x18c   :  { %494 = vmatmul.msk.bf16.vlgmr.msra.gmra.mxu0 %vm55_vm0, %v305_v12 }
 0x190   :  { %v521_v13 = vpop.eup %520 }
 0x191   :  { %v299_v14 = vmul.f32 %v521_v13, %v630_v21  ;;  %v270_v15 = vpop.xlane.xlu2 %269  ;;  %v276_v17 = vpop.xlane.xlu0 %275 }
 0x192   :  { %522 = vrcp.f32 %v270_v15 }
 0x193   :  { %v307_v18 = vpack.c.bf16 %v299_v14, %v299_v14  ;;  %524 = vrcp.f32 %v276_v17 }
 0x195   :  { %496 = vmatmul.msk.bf16.vlgmr.msra.gmra.mxu2 %vm55_vm0, %v307_v18 }
 0x198   :  { %v523_v19 = vpop.eup %522 }
 0x199   :  { %v525_v20 = vpop.eup %524  ;;  %v298_v16 = vmul.f32 %v523_v19, %v634_v27  ;;  %v285_v22 = vpop.xlane.xlu0 %284 }
 0x19a   :  { %v300_v23 = vmul.f32 %v525_v20, %v636_v30  ;;  %v279_v24 = vpop.xlane.xlu2 %278  ;;  %526 = vrcp.f32 %v285_v22 }
 0x19b   :  { %v306_v25 = vpack.c.bf16 %v298_v16, %v298_v16  ;;  %528 = vrcp.f32 %v279_v24 }
 0x19c   :  { %v308_v26 = vpack.c.bf16 %v300_v23, %v300_v23 }
 0x19d   :  { %495 = vmatmul.msk.bf16.vlgmr.msra.gmra.mxu1 %vm55_vm0, %v306_v25 }
 0x19e   :  { %497 = vmatmul.msk.bf16.vlgmr.msra.gmra.mxu3 %vm55_vm0, %v308_v26 }
 0x1a0   :  { %v527_v21 = vpop.eup %526 }
 0x1a1   :  { %v529_v28 = vpop.eup %528  ;;  %v303_v29 = vmul.f32 %v527_v21, %v642_v39  ;;  %v288_v31 = vpop.xlane.xlu1 %287 }
 0x1a2   :  { %v282_v32 = vpop.xlane.xlu0 %281  ;;  %v301_v27 = vmul.f32 %v529_v28, %v644_v41  ;;  %530 = vrcp.f32 %v288_v31 }
 0x1a3   :  { %v311_v33 = vpack.c.bf16 %v303_v29, %v303_v29  ;;  %532 = vrcp.f32 %v282_v32 }
 0x1a4   :  { %v309_v30 = vpack.c.bf16 %v301_v27, %v301_v27 }
 0x1a5   :  { %500 = vmatmul.msk.bf16.vlgmr.msrb.gmra.mxu2 %vm55_vm0, %v311_v33 }
 0x1a6   :  { %498 = vmatmul.msk.bf16.vlgmr.msrb.gmra.mxu0 %vm55_vm0, %v309_v30 }
 0x1a8   :  { %v531_v34 = vpop.eup %530 }
 0x1a9   :  { %v533_v35 = vpop.eup %532  ;;  %v304_v36 = vmul.f32 %v531_v34, %v652_v45 }
 0x1aa   :  { %v302_v37 = vmul.f32 %v533_v35, %v650_v44 }
 0x1ab   :  { %v312_v38 = vpack.c.bf16 %v304_v36, %v304_v36 }
 0x1ac   :  { %v310_v39 = vpack.c.bf16 %v302_v37, %v302_v37 }
 0x1ae   :  { %499 = vmatmul.msk.bf16.vlgmr.msrb.gmra.mxu1 %vm55_vm0, %v310_v39  ;;  %501 = vmatmul.msk.bf16.vlgmr.msrb.gmra.mxu3 %vm55_vm0, %v312_v38 }
 0x209   :  { %v337_v40 = vpop.f32.mrf.mxu0 }
 0x20a   :  { %474 = vst.msk [vmem:[%s741_s3] sm:$0x3f] %vm216_vm1, %v337_v40 }
 0x211   :  { %v339_v41 = vpop.f32.mrf.mxu0 }
 0x218   :  { %v375_v42 = vpop.f32.mrf.mxu2 }
 0x219   :  { %476 = vst.msk [vmem:[%s741_s3 + $0x10] sm:$0x3f] %vm216_vm1, %v375_v42 }
 0x21a   :  { %v356_v43 = vpop.f32.mrf.mxu1 }
 0x21b   :  { %475 = vst.msk [vmem:[%s741_s3 + $0x8] sm:$0x3f] %vm216_vm1, %v356_v43 }
 0x220   :  { %v377_v44 = vpop.f32.mrf.mxu2 }
 0x221   :  { %v394_v45 = vpop.f32.mrf.mxu3 }
 0x222   :  { %477 = vst.msk [vmem:[%s741_s3 + $0x18] sm:$0x3f] %vm216_vm1, %v394_v45  ;;  %v358_v46 = vpop.f32.mrf.mxu1 }
 0x223   :  { %v413_v47 = vpop.f32.mrf.mxu0 }
 0x224   :  { %478 = vst.msk [vmem:[%s741_s3 + $0x20] sm:$0x3f] %vm216_vm1, %v413_v47 }
 0x228   :  { %v451_v48 = vpop.f32.mrf.mxu2 }
 0x229   :  { %v396_v49 = vpop.f32.mrf.mxu3  ;;  %480 = vst.msk [vmem:[%s741_s3 + $0x30] sm:$0x3f] %vm216_vm1, %v451_v48 }
 0x22b   :  { %v415_v50 = vpop.f32.mrf.mxu0  ;;  %v432_v51 = vpop.f32.mrf.mxu1 }
 0x22c   :  { %479 = vst.msk [vmem:[%s741_s3 + $0x28] sm:$0x3f] %vm216_vm1, %v432_v51 }
 0x230   :  { %v453_v52 = vpop.f32.mrf.mxu2 }
 0x231   :  { %v470_v53 = vpop.f32.mrf.mxu3 }
 0x232   :  { %481 = vst.msk [vmem:[%s741_s3 + $0x38] sm:$0x3f] %vm216_vm1, %v470_v53 }
 0x233   :  { %v434_v54 = vpop.f32.mrf.mxu1 }
 0x239   :  { %v472_v55 = vpop.f32.mrf.mxu3 }

// kernel: closed_call.257
= control target key start
LH: loop header
LB: loop body
LE: loop exit
PB: predicated region body
PF: predicated region fallthrough
CT: control target
= control target key end

     0   :  { %vm24_vm0 = vcmask 254976   ;;  %v105_v2 = vmov 32.0   ;;  %vm73_vm5 = vcmask 261120   ;;  %vm90_vm6 = vcmask 517120   ;;  %s165_s0 = inlined_call_operand.vmem [shape: f32[2,32], index: 0, kind: input, shape index: {}]   ;;  %s166_s1 = inlined_call_operand.vmem [shape: f32[1,32], index: 1, kind: input, shape index: {}]   ;;  %s167_s2 = inlined_call_operand.vmem [shape: f32[1,32], index: 2, kind: input, shape index: {}]   ;;  %s168_s4 = inlined_call_operand.vmem [shape: f32[1,64], index: 4, kind: input, shape index: {}]   ;;  %s169_s3 = inlined_call_operand.vmem [shape: f32[32,64], index: 3, kind: input, shape index: {}]   ;;  %s170_s5 = inlined_call_operand.vmem [shape: f32[2,64], index: 5, kind: output, shape index: {}]  }
   0x1   :  { %v21_v0 = vld [vmem:[%s165_s0] sm:$0x3]  ;;  %101 = vrcp.f32 %v105_v2  ;;  %v64_v14 = vld [vmem:[%s169_s3 + $0x10] sm:$0xff]  ;;  %v65_v15 = vld [vmem:[%s169_s3 + $0x18] sm:$0xff] }
   0x2   :  { %v25_v1 = vsel %vm24_vm0, %v21_v0, 0.0  ;;  %v68_v16 = vpack.c.bf16 %v65_v15, %v64_v14  ;;  %v62_v17 = vld [vmem:[%s169_s3] sm:$0xff]  ;;  %v63_v18 = vld [vmem:[%s169_s3 + $0x8] sm:$0xff] }
   0x3   :  { %26 = vadd.xlane.f32.xlu0 %v25_v1  ;;  %v67_v19 = vpack.c.bf16 %v63_v18, %v62_v17  ;;  %v98_v29 = vld [vmem:[%s166_s1] ss:$0 sm:$0xff] }
   0x4   :  { %83 = vmatpush.bf16.msra.mxu0 %v68_v16  ;;  %v99_v32 = vld [vmem:[%s167_s2] ss:$0 sm:$0xff] }
   0x5   :  { %v100_v36 = vld [vmem:[%s168_s4] ss:$0 sm:$0xff] }
   0x7   :  { %v102_v3 = vpop.eup %101 }
   0x8   :  { %v29_v4 = vmul.f32 32.0, %v102_v3  ;;  %vm33_vm1 = vweird.f32 %v102_v3  ;;  %84 = vmatpush.bf16.msra.mxu0 %v67_v19 }
   0xa   :  { %v30_v5 = vsub.f32 1.0, %v29_v4 }
   0xc   :  { %v31_v6 = vmul.f32 %v102_v3, %v30_v5 }
   0xe   :  { %v32_v7 = vadd.f32 %v102_v3, %v31_v6 }
  0x10   :  { %v34_v8 = vsel %vm33_vm1, %v102_v3, %v32_v7 }
  0x76   :  { %v27_v9 = vpop.xlane.xlu0 %26 }
  0x77   :  { %v35_v10 = vmul.f32 %v34_v8, %v27_v9 }
  0x79   :  { %v36_v11 = vsub.f32 %v21_v0, %v35_v10 }
  0x7b   :  { %v37_v12 = vmul.f32 %v36_v11, %v36_v11 }
  0x7d   :  { %v38_v13 = vsel %vm24_vm0, %v37_v12, 0.0 }
  0x7e   :  { %39 = vadd.xlane.f32.xlu0 %v38_v13 }
  0xf1   :  { %v40_v20 = vpop.xlane.xlu0 %39 }
  0xf2   :  { %v41_v21 = vmul.f32 %v40_v20, %v34_v8 }
  0xf4   :  { %v42_v22 = vadd.f32 1e-05, %v41_v21 }
  0xf6   :  { %103 = vrsqrt.f32 %v42_v22  ;;  %vm49_vm3 = vweird.f32 %v42_v22 }
  0xfc   :  { %v104_v23 = vpop.eup %103 }
  0xfd   :  { %v44_v24 = vmul.f32 %v104_v23, %v42_v22  ;;  %vm50_vm2 = vweird.f32 %v104_v23 }
  0xfe   :  { %vm51_vm4 = vmor %vm49_vm3, %vm50_vm2 }
  0xff   :  { %v45_v25 = vmul.f32 %v104_v23, %v44_v24 }
 0x101   :  { %v46_v26 = vmul.f32 0.5, %v45_v25 }
 0x103   :  { %v47_v27 = vsub.f32 1.5, %v46_v26 }
 0x105   :  { %v48_v28 = vmul.f32 %v104_v23, %v47_v27 }
 0x107   :  { %v52_v30 = vsel %vm51_vm4, %v104_v23, %v48_v28 }
 0x108   :  { %v53_v31 = vmul.f32 %v52_v30, %v36_v11 }
 0x10a   :  { %v57_v33 = vmul.f32 %v98_v29, %v53_v31 }
 0x10c   :  { %v61_v34 = vadd.f32 %v99_v32, %v57_v33 }
 0x10e   :  { %v66_v35 = vpack.c.bf16 %v61_v34, %v61_v34 }
 0x110   :  { %96 = vmatmul.msk.bf16.vlgmr.msra.gmra.mxu0 %vm73_vm5, %v66_v35 }
 0x18d   :  { %v86_v37 = vpop.f32.mrf.mxu0 }
 0x18e   :  { %v87_v38 = vadd.f32 %v100_v36, %v86_v37 }
 0x190   :  { %91 = vst.msk [vmem:[%s170_s5] sm:$0x3] %vm90_vm6, %v87_v38 }
 0x195   :  { %v88_v39 = vpop.f32.mrf.mxu0 }

</bundles_post_ra>
